<compile_context>
chip_gen: v7x
topology: tpu7x:2x2x1
jax: 0.10.0
libtpu: 0.0.40
codegen_flags: <defaults>
</compile_context>

<pallas_src>
import math

import jax
import jax.numpy as jnp
from jax.experimental import pallas as pl
from jax.experimental.pallas import tpu as pltpu


# ----------------------------------------------------------------------------------
# small in-kernel math helpers
# ----------------------------------------------------------------------------------
def _erf_f32(x):
    # Abramowitz & Stegun 7.1.26 rational approximation, |abs err| < 1.5e-7,
    # i.e. matches torch's exact-erf GELU to within float32 rounding.
    p = 0.3275911
    a1, a2, a3, a4, a5 = (0.254829592, -0.284496736, 1.421413741,
                          -1.453152027, 1.061405429)
    sign = jnp.where(x >= 0, 1.0, -1.0).astype(x.dtype)
    ax = jnp.abs(x)
    t = 1.0 / (1.0 + p * ax)
    poly = ((((a5 * t + a4) * t + a3) * t + a2) * t + a1) * t
    return sign * (1.0 - poly * jnp.exp(-ax * ax))


def _gelu_exact(x):
    # nn.GELU() default = exact erf formulation
    return 0.5 * x * (1.0 + _erf_f32(x * (1.0 / math.sqrt(2.0))))


def _layernorm(x, g, b, eps=1e-5):
    mu = jnp.mean(x, axis=-1, keepdims=True)
    var = jnp.mean((x - mu) ** 2, axis=-1, keepdims=True)
    return (x - mu) * jax.lax.rsqrt(var + eps) * g + b


# ----------------------------------------------------------------------------------
# kernel
# ----------------------------------------------------------------------------------
def _make_kernel(hidden, num_heads, block_batch, tokens):
    H, NH, BB, L = hidden, num_heads, block_batch, tokens
    DH = H // NH
    f32, bf16 = jnp.float32, jnp.bfloat16

    def kernel(h0_ref, ln0g_ref, ln0b_ref,
               qkvw_ref, qkvb_ref, ow_ref, ob_ref, ln1g_ref, ln1b_ref,
               ff1w_ref, ff1b_ref, ff2w_ref, ff2b_ref, ln2g_ref, ln2b_ref,
               cw1_ref, cb1_ref, clng_ref, clnb_ref, cw2_ref, cb2_ref,
               o_ref,
               h_ref):
        layer = pl.program_id(1)

        # first layer step of this batch block: LayerNorm of the embedded tokens
        @pl.when(layer == 0)
        def _():
            h0 = h0_ref[...].reshape(BB * L, H)
            h_ref[...] = _layernorm(h0, ln0g_ref[...], ln0b_ref[...])

        h = h_ref[...]                                                # (BB*L, H) f32

        # ---- self-attention: fused full-width QKV projection (scale in Q weights)
        qkv = jnp.dot(h.astype(bf16), qkvw_ref[...],
                      preferred_element_type=f32) + qkvb_ref[...]     # (BB*L, 3H)
        qkv16 = qkv.astype(bf16)
        q3 = qkv16[:, 0 * H:1 * H].reshape(BB, L, H)
        k3 = qkv16[:, 1 * H:2 * H].reshape(BB, L, H)
        v3 = qkv16[:, 2 * H:3 * H].reshape(BB, L, H)

        # relayout heads lane -> batch so scores / softmax / context are single
        # head-batched ops (no per-head matmul unrolling, no lane-axis concat of
        # NH live context buffers).
        def to_heads(t):
            parts = [t[..., hd * DH:(hd + 1) * DH] for hd in range(NH)]
            return jnp.stack(parts, axis=0).reshape(NH * BB, L, DH)

        qh, kh, vh = to_heads(q3), to_heads(k3), to_heads(v3)

        # TODO(synk): for very long token counts, tile the KV axis with an
        # online-softmax (flash-style) loop so scores VMEM does not scale with L^2.
        s = jnp.einsum('bqd,bkd->bqk', qh, kh,
                       preferred_element_type=f32)                    # (NH*BB, L, L)
        s = s - jnp.max(s, axis=-1, keepdims=True)
        e = jnp.exp(s)
        p = (e / jnp.sum(e, axis=-1, keepdims=True)).astype(bf16)     # exact softmax
        ctx = jnp.einsum('bqk,bkd->bqd', p, vh,
                         preferred_element_type=f32)                  # (NH*BB, L, DH)
        ctx = ctx.reshape(NH, BB, L, DH)
        ctx = jnp.concatenate([ctx[hd] for hd in range(NH)], axis=-1) # (BB, L, H)

        # fused concat-heads output projection + residual + LN
        attn = jnp.dot(ctx.reshape(BB * L, H).astype(bf16), ow_ref[...],
                       preferred_element_type=f32) + ob_ref[...]
        h = _layernorm(h + attn, ln1g_ref[...], ln1b_ref[...])

        # ---- FFN (ReLU) + residual + LN ----
        ff = jnp.dot(h.astype(bf16), ff1w_ref[...],
                     preferred_element_type=f32) + ff1b_ref[...]
        ff = jnp.maximum(ff, 0.0)
        ff = jnp.dot(ff.astype(bf16), ff2w_ref[...],
                     preferred_element_type=f32) + ff2b_ref[...]
        h = _layernorm(h + ff, ln2g_ref[...], ln2b_ref[...])
        h_ref[...] = h

        # ---- after the last layer: mean-pool over tokens + classifier head ----
        @pl.when(layer == pl.num_programs(1) - 1)
        def _():
            pooled = jnp.mean(h.reshape(BB, L, H), axis=1)            # (BB, H)
            c = jnp.dot(pooled.astype(bf16), cw1_ref[...],
                        preferred_element_type=f32) + cb1_ref[...]
            c = _layernorm(c, clng_ref[...], clnb_ref[...])
            c = _gelu_exact(c)
            out = jnp.dot(c.astype(bf16), cw2_ref[...],
                          preferred_element_type=f32) + cb2_ref[...]
            o_ref[0] = out                                            # (BB, Cpad)

    return kernel


# ----------------------------------------------------------------------------------
# wrapper (glue: embedding/pos lookups, weight prep, VMEM-aware tiling, BlockSpecs)
# ----------------------------------------------------------------------------------
def _vmem_capacity_bytes():
    try:
        info = pltpu.get_tpu_info()
        for name in ("vmem_capacity_bytes", "vmem_size_bytes", "vmem_bytes"):
            v = getattr(info, name, None)
            if v:
                return int(v)
    except Exception:
        pass
    return 128 << 20   # conservative default if the hardware query is unavailable


def keypoints_transformer(x, params, *, num_heads, num_layers, block_batch=None):
    B, S, K, F = x.shape
    H = params["w_emb"].shape[1]
    C = params["cls_w2"].shape[1]
    FF = params["ff1_w"].shape[-1]
    NL, NH = num_layers, num_heads
    DH = H // NH
    L = S * K
    f32, bf16 = jnp.float32, jnp.bfloat16

    # ---- glue done in XLA (tiny vs. the transformer itself) --------------------
    # embedding lookups of arange indices == plain table slices
    pos = params["frame_pos"][:S][:, None, :] + params["kp_pos"][None, :, :]
    pos = pos.reshape(L, H)
    # K=3 keypoint-embedding matmul computed here so the kernel input is a
    # lane-dense (B, L, H) activation (no lane-padded (...,3) block in VMEM).
    h0 = jnp.einsum('blf,fh->blh', x.reshape(B, L, F).astype(f32),
                    params["w_emb"].astype(f32))
    h0 = (h0 + params["b_emb"][None, None, :] + pos[None, :, :]).astype(f32)

    # fold the 1/sqrt(DH) attention scale into the Q projection weights + bias
    scale = 1.0 / math.sqrt(DH)
    qkv_w = params["qkv_w"].at[:, :, :H].multiply(scale)
    qkv_b = params["qkv_b"].at[:, :H].multiply(scale)

    # pad classifier output lanes to a multiple of 128 (dense stores); sliced back
    Cp = max(128, ((C + 127) // 128) * 128)
    cls_w2 = params["cls_w2"]
    cls_b2 = params["cls_b2"]
    if Cp != C:
        cls_w2 = jnp.pad(cls_w2, ((0, 0), (0, Cp - C)))
        cls_b2 = jnp.pad(cls_b2, ((0, Cp - C),))

    row = lambda a: a.astype(f32).reshape(1, -1)                       # (X,)   -> (1, X)
    lrow = lambda a: a.astype(f32).reshape(a.shape[0], 1, a.shape[1])  # (NL,X) -> (NL,1,X)

    layer_arrays = [
        qkv_w.astype(bf16), lrow(qkv_b),
        params["o_w"].astype(bf16), lrow(params["o_b"]),
        lrow(params["ln1_g"]), lrow(params["ln1_b"]),
        params["ff1_w"].astype(bf16), lrow(params["ff1_b"]),
        params["ff2_w"].astype(bf16), lrow(params["ff2_b"]),
        lrow(params["ln2_g"]), lrow(params["ln2_b"]),
    ]
    invariant_head = [row(params["ln0_g"]), row(params["ln0_b"])]
    invariant_tail = [
        params["cls_w1"].astype(bf16), row(params["cls_b1"]),
        row(params["cls_ln_g"]), row(params["cls_ln_b"]),
        cls_w2.astype(bf16), row(cls_b2),
    ]
    inputs = [h0] + invariant_head + layer_arrays + invariant_tail

    # ---- generation-aware VMEM budget and batch-block selection ----------------
    vmem_cap = _vmem_capacity_bytes()
    usable = int(vmem_cap * 0.85)                 # ~108 MiB on v5e/v6e, ~54 MiB on v7x
    multi_core = vmem_cap <= (96 << 20)           # v7x: 2 TensorCores, 64 MiB VMEM each

    nbytes = lambda a: int(a.size) * a.dtype.itemsize
    per_layer_bytes = sum(nbytes(a) for a in layer_arrays) // NL
    invariant_bytes = sum(nbytes(a) for a in invariant_head + invariant_tail)
    weight_resident = 2 * per_layer_bytes + 2 * invariant_bytes   # double-buffered

    lp = ((L + 127) // 128) * 128
    dhp = ((DH + 127) // 128) * 128

    def act_bytes(bb):
        toks = bb * L
        b = 0
        b += 2 * toks * H * 4            # (BB, L, H) input block (double-buffered)
        b += toks * H * 4                # carried activation scratch
        b += toks * 3 * H * 6            # QKV projection output (f32 + bf16 copy)
        b += 3 * NH * bb * L * dhp * 2   # head-batched q/k/v (bf16, lane-padded)
        b += 3 * NH * bb * L * lp * 4    # scores / exp / probs transients
        b += NH * bb * L * dhp * 4       # head-batched context (f32)
        b += 2 * toks * H * 4            # concat-heads context + attn output
        b += toks * FF * 6               # FFN intermediate (f32 + bf16)
        b += 4 * toks * H * 4            # residual / LayerNorm temporaries (slack)
        return b

    if block_batch is None:
        budget = usable - weight_resident - (4 << 20)
        divisors = [d for d in range(B, 0, -1) if B % d == 0]
        fit = [d for d in divisors if act_bytes(d) <= budget]
        cands = fit if fit else [1]
        BB = cands[0]
        # On 2-TensorCore chips keep >=2 batch blocks so both cores get work.
        if multi_core and BB == B and B >= 2:
            smaller = [d for d in cands if d < B]
            if smaller:
                BB = smaller[0]
    else:
        BB = block_batch
    assert B % BB == 0, "block_batch must divide batch"
    nb = B // BB

    vmem_limit = int(min(max(usable, 32 << 20), 128 << 20))

    # ---- BlockSpecs -------------------------------------------------------------
    h0_spec = pl.BlockSpec((BB, L, H), lambda b, l: (b, 0, 0))

    def inv_spec(a):
        nd = a.ndim
        return pl.BlockSpec(a.shape, lambda b, l, _nd=nd: (0,) * _nd)

    def layer_spec(a):
        # weights stacked on a leading NL axis: stream layer l's slice per grid step
        return pl.BlockSpec((None,) + a.shape[1:], lambda b, l: (l, 0, 0))

    in_specs = ([h0_spec]
                + [inv_spec(a) for a in invariant_head]
                + [layer_spec(a) for a in layer_arrays]
                + [inv_spec(a) for a in invariant_tail])
    out_specs = pl.BlockSpec((1, BB, Cp), lambda b, l: (b, 0, 0))

    kernel = _make_kernel(H, NH, BB, L)

    out = pl.pallas_call(
        kernel,
        out_shape=jax.ShapeDtypeStruct((nb, BB, Cp), f32),
        grid_spec=pltpu.PrefetchScalarGridSpec(
            num_scalar_prefetch=0,
            grid=(nb, NL),
            in_specs=in_specs,
            out_specs=out_specs,
            scratch_shapes=[pltpu.VMEM((BB * L, H), f32)],   # activation carry
        ),
        compiler_params=pltpu.CompilerParams(
            dimension_semantics=("parallel", "arbitrary"),   # batch blocks || layers
            vmem_limit_bytes=vmem_limit,
        ),
    )(*inputs)

    return out.reshape(B, Cp)[:, :C]


# ----------------------------------------------------------------------------------
# deterministic parameter construction (synthetic init).  PyTorch (out, in) weight
# matrices are stored pre-transposed as (in, out); the attention in_proj weight maps
# to qkv_w = in_proj_weight.T with [q | k | v] column blocks; out_proj.weight.T -> o_w.
# ----------------------------------------------------------------------------------
def init_params(key, *, num_keypoints, feature_dim, hidden_size, num_layers,
                num_classes, max_frames=1000):
    H, F, NL, C = hidden_size, feature_dim, num_layers, num_classes
    FF = 4 * H
    ks = jax.random.split(key, 12)
    std = 0.02

    def n(k, shape):
        return (std * jax.random.normal(k, shape)).astype(jnp.float32)

    zeros = lambda shape: jnp.zeros(shape, jnp.float32)
    ones = lambda shape: jnp.ones(shape, jnp.float32)

    return dict(
        w_emb=n(ks[0], (F, H)), b_emb=zeros((H,)),
        kp_pos=n(ks[1], (num_keypoints, H)),
        frame_pos=n(ks[2], (max_frames, H)),
        ln0_g=ones((H,)), ln0_b=zeros((H,)),
        qkv_w=n(ks[3], (NL, H, 3 * H)), qkv_b=zeros((NL, 3 * H)),
        o_w=n(ks[4], (NL, H, H)), o_b=zeros((NL, H)),
        ln1_g=ones((NL, H)), ln1_b=zeros((NL, H)),
        ff1_w=n(ks[5], (NL, H, FF)), ff1_b=zeros((NL, FF)),
        ff2_w=n(ks[6], (NL, FF, H)), ff2_b=zeros((NL, H)),
        ln2_g=ones((NL, H)), ln2_b=zeros((NL, H)),
        cls_w1=n(ks[7], (H, H)), cls_b1=zeros((H,)),
        cls_ln_g=ones((H,)), cls_ln_b=zeros((H,)),
        cls_w2=n(ks[8], (H, C)), cls_b2=zeros((C,)),
    )


if __name__ == "__main__":
    # small shapes consistent with forward(): x is (batch, seq_len, num_keypoints, 3)
    B, S, K, F = 2, 4, 8, 3
    H, NH, NL, C = 32, 4, 2, 16

    key = jax.random.PRNGKey(0)
    kx, kp = jax.random.split(key)
    x = jax.random.normal(kx, (B, S, K, F), jnp.float32)
    params = init_params(kp, num_keypoints=K, feature_dim=F, hidden_size=H,
                         num_layers=NL, num_classes=C)

    out = keypoints_transformer(x, params, num_heads=NH, num_layers=NL)
    out = jax.block_until_ready(out)
    assert out.shape == (B, C) and out.dtype == jnp.float32
    assert bool(jnp.all(jnp.isfinite(out)))
    # TODO(synk): dropout layers are treated as identity (eval-mode semantics).
    print("KERNEL_OK")
</pallas_src>

<mosaic_0001>
module attributes {stable_mosaic.version = 11 : i64} {
  func.func @kernel(%arg0: i32, %arg1: i32, %arg2: memref<2x32x32xf32, #tpu.memory_space<vmem>>, %arg3: memref<1x32xf32, #tpu.memory_space<vmem>>, %arg4: memref<1x32xf32, #tpu.memory_space<vmem>>, %arg5: memref<1x32x96xbf16, #tpu.memory_space<vmem>>, %arg6: memref<1x1x96xf32, #tpu.memory_space<vmem>>, %arg7: memref<1x32x32xbf16, #tpu.memory_space<vmem>>, %arg8: memref<1x1x32xf32, #tpu.memory_space<vmem>>, %arg9: memref<1x1x32xf32, #tpu.memory_space<vmem>>, %arg10: memref<1x1x32xf32, #tpu.memory_space<vmem>>, %arg11: memref<1x32x128xbf16, #tpu.memory_space<vmem>>, %arg12: memref<1x1x128xf32, #tpu.memory_space<vmem>>, %arg13: memref<1x128x32xbf16, #tpu.memory_space<vmem>>, %arg14: memref<1x1x32xf32, #tpu.memory_space<vmem>>, %arg15: memref<1x1x32xf32, #tpu.memory_space<vmem>>, %arg16: memref<1x1x32xf32, #tpu.memory_space<vmem>>, %arg17: memref<32x32xbf16, #tpu.memory_space<vmem>>, %arg18: memref<1x32xf32, #tpu.memory_space<vmem>>, %arg19: memref<1x32xf32, #tpu.memory_space<vmem>>, %arg20: memref<1x32xf32, #tpu.memory_space<vmem>>, %arg21: memref<32x128xbf16, #tpu.memory_space<vmem>>, %arg22: memref<1x128xf32, #tpu.memory_space<vmem>>, %arg23: memref<1x2x128xf32, #tpu.memory_space<vmem>>, %arg24: memref<64x32xf32, #tpu.memory_space<vmem>>) attributes {dimension_semantics = [#tpu.dimension_semantics<parallel>, #tpu.dimension_semantics<arbitrary>], iteration_bounds = array<i64: 1, 2>, scalar_prefetch = 0 : i64, scratch_operands = 1 : i64, tpu.core_type = #tpu.core_type<tc>, window_params = [{transform_indices = @transform_0, window_bounds = array<i64: 2, 32, 32>}, {pipeline_mode = #tpu.pipeline_mode<synchronous>, transform_indices = @transform_1, window_bounds = array<i64: 1, 32>}, {pipeline_mode = #tpu.pipeline_mode<synchronous>, transform_indices = @transform_2, window_bounds = array<i64: 1, 32>}, {transform_indices = @transform_3, window_bounds = array<i64: 1, 32, 96>}, {transform_indices = @transform_4, window_bounds = array<i64: 1, 1, 96>}, {transform_indices = @transform_5, window_bounds = array<i64: 1, 32, 32>}, {transform_indices = @transform_6, window_bounds = array<i64: 1, 1, 32>}, {transform_indices = @transform_7, window_bounds = array<i64: 1, 1, 32>}, {transform_indices = @transform_8, window_bounds = array<i64: 1, 1, 32>}, {transform_indices = @transform_9, window_bounds = array<i64: 1, 32, 128>}, {transform_indices = @transform_10, window_bounds = array<i64: 1, 1, 128>}, {transform_indices = @transform_11, window_bounds = array<i64: 1, 128, 32>}, {transform_indices = @transform_12, window_bounds = array<i64: 1, 1, 32>}, {transform_indices = @transform_13, window_bounds = array<i64: 1, 1, 32>}, {transform_indices = @transform_14, window_bounds = array<i64: 1, 1, 32>}, {pipeline_mode = #tpu.pipeline_mode<synchronous>, transform_indices = @transform_15, window_bounds = array<i64: 32, 32>}, {pipeline_mode = #tpu.pipeline_mode<synchronous>, transform_indices = @transform_16, window_bounds = array<i64: 1, 32>}, {pipeline_mode = #tpu.pipeline_mode<synchronous>, transform_indices = @transform_17, window_bounds = array<i64: 1, 32>}, {pipeline_mode = #tpu.pipeline_mode<synchronous>, transform_indices = @transform_18, window_bounds = array<i64: 1, 32>}, {pipeline_mode = #tpu.pipeline_mode<synchronous>, transform_indices = @transform_19, window_bounds = array<i64: 32, 128>}, {pipeline_mode = #tpu.pipeline_mode<synchronous>, transform_indices = @transform_20, window_bounds = array<i64: 1, 128>}, {transform_indices = @transform_21, window_bounds = array<i64: 1, 2, 128>}]} {
    %c0_i32 = arith.constant 0 : i32
    %0 = arith.cmpi eq, %arg1, %c0_i32 : i32
    %1 = arith.extui %0 : i1 to i32
    %c0_i32_0 = arith.constant 0 : i32
    %2 = arith.cmpi ne, %1, %c0_i32_0 : i32
    scf.if %2 {
      %c0_59 = arith.constant 0 : index
      %c0_60 = arith.constant 0 : index
      %c0_61 = arith.constant 0 : index
      %156 = vector.load %arg2[%c0_59, %c0_60, %c0_61] : memref<2x32x32xf32, #tpu.memory_space<vmem>>, vector<2x32x32xf32>
      %157 = vector.shape_cast %156 : vector<2x32x32xf32> to vector<64x32xf32>
      %c0_62 = arith.constant 0 : index
      %c0_63 = arith.constant 0 : index
      %158 = vector.load %arg3[%c0_62, %c0_63] : memref<1x32xf32, #tpu.memory_space<vmem>>, vector<1x32xf32>
      %c0_64 = arith.constant 0 : index
      %c0_65 = arith.constant 0 : index
      %159 = vector.load %arg4[%c0_64, %c0_65] : memref<1x32xf32, #tpu.memory_space<vmem>>, vector<1x32xf32>
      %cst_66 = arith.constant dense<0.000000e+00> : vector<64xf32>
      %160 = vector.multi_reduction <add>, %157, %cst_66 [1] : vector<64x32xf32> to vector<64xf32>
      %161 = vector.shape_cast %160 : vector<64xf32> to vector<64x1xf32>
      %cst_67 = arith.constant 3.200000e+01 : f32
      %162 = vector.broadcast %cst_67 : f32 to vector<64x1xf32>
      %163 = arith.divf %161, %162 : vector<64x1xf32>
      %164 = vector.broadcast %163 : vector<64x1xf32> to vector<64x32xf32>
      %165 = arith.subf %157, %164 : vector<64x32xf32>
      %166 = arith.mulf %165, %165 : vector<64x32xf32>
      %cst_68 = arith.constant dense<0.000000e+00> : vector<64xf32>
      %167 = vector.multi_reduction <add>, %166, %cst_68 [1] : vector<64x32xf32> to vector<64xf32>
      %168 = vector.shape_cast %167 : vector<64xf32> to vector<64x1xf32>
      %cst_69 = arith.constant 3.200000e+01 : f32
      %169 = vector.broadcast %cst_69 : f32 to vector<64x1xf32>
      %170 = arith.divf %168, %169 : vector<64x1xf32>
      %171 = vector.broadcast %163 : vector<64x1xf32> to vector<64x32xf32>
      %172 = arith.subf %157, %171 : vector<64x32xf32>
      %cst_70 = arith.constant 9.99999974E-6 : f32
      %173 = vector.broadcast %cst_70 : f32 to vector<64x1xf32>
      %174 = arith.addf %170, %173 : vector<64x1xf32>
      %175 = math.rsqrt %174 : vector<64x1xf32>
      %176 = vector.broadcast %175 : vector<64x1xf32> to vector<64x32xf32>
      %177 = arith.mulf %172, %176 : vector<64x32xf32>
      %178 = vector.broadcast %158 : vector<1x32xf32> to vector<64x32xf32>
      %179 = arith.mulf %177, %178 : vector<64x32xf32>
      %180 = vector.broadcast %159 : vector<1x32xf32> to vector<64x32xf32>
      %181 = arith.addf %179, %180 : vector<64x32xf32>
      %c0_71 = arith.constant 0 : index
      %c0_72 = arith.constant 0 : index
      %182 = vector.load %arg24[%c0_71, %c0_72] : memref<64x32xf32, #tpu.memory_space<vmem>>, vector<64x32xf32>
      tpu.vector_store %arg24[%c0_71, %c0_72], %181 {strides = array<i32>} : memref<64x32xf32, #tpu.memory_space<vmem>>, vector<64x32xf32>,
    } else {
    }
    %c0 = arith.constant 0 : index
    %c0_1 = arith.constant 0 : index
    %3 = vector.load %arg24[%c0, %c0_1] : memref<64x32xf32, #tpu.memory_space<vmem>>, vector<64x32xf32>
    %4 = arith.truncf %3 : vector<64x32xf32> to vector<64x32xbf16>
    %c0_2 = arith.constant 0 : index
    %c0_3 = arith.constant 0 : index
    %c0_4 = arith.constant 0 : index
    %5 = vector.load %arg5[%c0_2, %c0_3, %c0_4] : memref<1x32x96xbf16, #tpu.memory_space<vmem>>, vector<1x32x96xbf16>
    %6 = vector.shape_cast %5 : vector<1x32x96xbf16> to vector<32x96xbf16>
    %cst = arith.constant dense<0.000000e+00> : vector<64x96xf32>
    %7 = tpu.matmul %4, %6, %cst {dimension_numbers = #tpu.dot_dimension_numbers<[1], [0], [0], [1], [0, 0, 1, 1], [], []>} : vector<64x32xbf16>, vector<32x96xbf16>, vector<64x96xf32> -> vector<64x96xf32>
    %c0_5 = arith.constant 0 : index
    %c0_6 = arith.constant 0 : index
    %c0_7 = arith.constant 0 : index
    %8 = vector.load %arg6[%c0_5, %c0_6, %c0_7] : memref<1x1x96xf32, #tpu.memory_space<vmem>>, vector<1x1x96xf32>
    %9 = vector.shape_cast %8 : vector<1x1x96xf32> to vector<1x96xf32>
    %10 = vector.broadcast %9 : vector<1x96xf32> to vector<64x96xf32>
    %11 = arith.addf %7, %10 : vector<64x96xf32>
    %12 = arith.truncf %11 : vector<64x96xf32> to vector<64x96xbf16>
    %13 = vector.extract_strided_slice %12 {offsets = [0, 0], sizes = [64, 32], strides = [1, 1]} : vector<64x96xbf16> to vector<64x32xbf16>
    %14 = vector.shape_cast %13 : vector<64x32xbf16> to vector<2x32x32xbf16>
    %15 = vector.extract_strided_slice %12 {offsets = [0, 32], sizes = [64, 32], strides = [1, 1]} : vector<64x96xbf16> to vector<64x32xbf16>
    %16 = vector.shape_cast %15 : vector<64x32xbf16> to vector<2x32x32xbf16>
    %17 = vector.extract_strided_slice %12 {offsets = [0, 64], sizes = [64, 32], strides = [1, 1]} : vector<64x96xbf16> to vector<64x32xbf16>
    %18 = vector.shape_cast %17 : vector<64x32xbf16> to vector<2x32x32xbf16>
    %19 = vector.extract_strided_slice %14 {offsets = [0, 0, 0], sizes = [2, 32, 8], strides = [1, 1, 1]} : vector<2x32x32xbf16> to vector<2x32x8xbf16>
    %20 = vector.extract_strided_slice %14 {offsets = [0, 0, 8], sizes = [2, 32, 8], strides = [1, 1, 1]} : vector<2x32x32xbf16> to vector<2x32x8xbf16>
    %21 = vector.extract_strided_slice %14 {offsets = [0, 0, 16], sizes = [2, 32, 8], strides = [1, 1, 1]} : vector<2x32x32xbf16> to vector<2x32x8xbf16>
    %22 = vector.extract_strided_slice %14 {offsets = [0, 0, 24], sizes = [2, 32, 8], strides = [1, 1, 1]} : vector<2x32x32xbf16> to vector<2x32x8xbf16>
    %23 = vector.shape_cast %19 : vector<2x32x8xbf16> to vector<1x2x32x8xbf16>
    %24 = vector.shape_cast %20 : vector<2x32x8xbf16> to vector<1x2x32x8xbf16>
    %25 = vector.shape_cast %21 : vector<2x32x8xbf16> to vector<1x2x32x8xbf16>
    %26 = vector.shape_cast %22 : vector<2x32x8xbf16> to vector<1x2x32x8xbf16>
    %27 = tpu.concatenate %23, %24, %25, %26 in 0 : vector<1x2x32x8xbf16>, vector<1x2x32x8xbf16>, vector<1x2x32x8xbf16>, vector<1x2x32x8xbf16> -> vector<4x2x32x8xbf16>
    %28 = vector.shape_cast %27 : vector<4x2x32x8xbf16> to vector<8x32x8xbf16>
    %29 = vector.extract_strided_slice %16 {offsets = [0, 0, 0], sizes = [2, 32, 8], strides = [1, 1, 1]} : vector<2x32x32xbf16> to vector<2x32x8xbf16>
    %30 = vector.extract_strided_slice %16 {offsets = [0, 0, 8], sizes = [2, 32, 8], strides = [1, 1, 1]} : vector<2x32x32xbf16> to vector<2x32x8xbf16>
    %31 = vector.extract_strided_slice %16 {offsets = [0, 0, 16], sizes = [2, 32, 8], strides = [1, 1, 1]} : vector<2x32x32xbf16> to vector<2x32x8xbf16>
    %32 = vector.extract_strided_slice %16 {offsets = [0, 0, 24], sizes = [2, 32, 8], strides = [1, 1, 1]} : vector<2x32x32xbf16> to vector<2x32x8xbf16>
    %33 = vector.shape_cast %29 : vector<2x32x8xbf16> to vector<1x2x32x8xbf16>
    %34 = vector.shape_cast %30 : vector<2x32x8xbf16> to vector<1x2x32x8xbf16>
    %35 = vector.shape_cast %31 : vector<2x32x8xbf16> to vector<1x2x32x8xbf16>
    %36 = vector.shape_cast %32 : vector<2x32x8xbf16> to vector<1x2x32x8xbf16>
    %37 = tpu.concatenate %33, %34, %35, %36 in 0 : vector<1x2x32x8xbf16>, vector<1x2x32x8xbf16>, vector<1x2x32x8xbf16>, vector<1x2x32x8xbf16> -> vector<4x2x32x8xbf16>
    %38 = vector.shape_cast %37 : vector<4x2x32x8xbf16> to vector<8x32x8xbf16>
    %39 = vector.extract_strided_slice %18 {offsets = [0, 0, 0], sizes = [2, 32, 8], strides = [1, 1, 1]} : vector<2x32x32xbf16> to vector<2x32x8xbf16>
    %40 = vector.extract_strided_slice %18 {offsets = [0, 0, 8], sizes = [2, 32, 8], strides = [1, 1, 1]} : vector<2x32x32xbf16> to vector<2x32x8xbf16>
    %41 = vector.extract_strided_slice %18 {offsets = [0, 0, 16], sizes = [2, 32, 8], strides = [1, 1, 1]} : vector<2x32x32xbf16> to vector<2x32x8xbf16>
    %42 = vector.extract_strided_slice %18 {offsets = [0, 0, 24], sizes = [2, 32, 8], strides = [1, 1, 1]} : vector<2x32x32xbf16> to vector<2x32x8xbf16>
    %43 = vector.shape_cast %39 : vector<2x32x8xbf16> to vector<1x2x32x8xbf16>
    %44 = vector.shape_cast %40 : vector<2x32x8xbf16> to vector<1x2x32x8xbf16>
    %45 = vector.shape_cast %41 : vector<2x32x8xbf16> to vector<1x2x32x8xbf16>
    %46 = vector.shape_cast %42 : vector<2x32x8xbf16> to vector<1x2x32x8xbf16>
    %47 = tpu.concatenate %43, %44, %45, %46 in 0 : vector<1x2x32x8xbf16>, vector<1x2x32x8xbf16>, vector<1x2x32x8xbf16>, vector<1x2x32x8xbf16> -> vector<4x2x32x8xbf16>
    %48 = vector.shape_cast %47 : vector<4x2x32x8xbf16> to vector<8x32x8xbf16>
    "tpu.trace_start"() <{level = 10 : i32, message = "bqd,bkd->bqk"}> : () -> ()
    %cst_8 = arith.constant dense<0.000000e+00> : vector<8x32x32xf32>
    %49 = tpu.matmul %28, %38, %cst_8 {dimension_numbers = #tpu.dot_dimension_numbers<[2], [2], [1], [1], [0, 0, 0, 1, 1, 1], [0], [0]>} : vector<8x32x8xbf16>, vector<8x32x8xbf16>, vector<8x32x32xf32> -> vector<8x32x32xf32>
    "tpu.trace_stop"() : () -> ()
    %cst_9 = arith.constant dense<0xFF800000> : vector<8x32xf32>
    %50 = vector.multi_reduction <maximumf>, %49, %cst_9 [2] : vector<8x32x32xf32> to vector<8x32xf32>
    %51 = vector.shape_cast %50 : vector<8x32xf32> to vector<8x32x1xf32>
    %52 = vector.broadcast %51 : vector<8x32x1xf32> to vector<8x32x32xf32>
    %53 = arith.subf %49, %52 : vector<8x32x32xf32>
    %54 = math.exp %53 : vector<8x32x32xf32>
    %cst_10 = arith.constant dense<0.000000e+00> : vector<8x32xf32>
    %55 = vector.multi_reduction <add>, %54, %cst_10 [2] : vector<8x32x32xf32> to vector<8x32xf32>
    %56 = vector.shape_cast %55 : vector<8x32xf32> to vector<8x32x1xf32>
    %57 = vector.broadcast %56 : vector<8x32x1xf32> to vector<8x32x32xf32>
    %58 = arith.divf %54, %57 : vector<8x32x32xf32>
    %59 = arith.truncf %58 : vector<8x32x32xf32> to vector<8x32x32xbf16>
    "tpu.trace_start"() <{level = 10 : i32, message = "bqk,bkd->bqd"}> : () -> ()
    %cst_11 = arith.constant dense<0.000000e+00> : vector<8x32x8xf32>
    %60 = tpu.matmul %59, %48, %cst_11 {dimension_numbers = #tpu.dot_dimension_numbers<[2], [1], [1], [2], [0, 0, 0, 1, 1, 2], [0], [0]>} : vector<8x32x32xbf16>, vector<8x32x8xbf16>, vector<8x32x8xf32> -> vector<8x32x8xf32>
    "tpu.trace_stop"() : () -> ()
    %61 = vector.shape_cast %60 : vector<8x32x8xf32> to vector<4x2x32x8xf32>
    %62 = vector.extract_strided_slice %61 {offsets = [0, 0, 0, 0], sizes = [1, 2, 32, 8], strides = [1, 1, 1, 1]} : vector<4x2x32x8xf32> to vector<1x2x32x8xf32>
    %63 = vector.shape_cast %62 : vector<1x2x32x8xf32> to vector<2x32x8xf32>
    %64 = vector.extract_strided_slice %61 {offsets = [1, 0, 0, 0], sizes = [1, 2, 32, 8], strides = [1, 1, 1, 1]} : vector<4x2x32x8xf32> to vector<1x2x32x8xf32>
    %65 = vector.shape_cast %64 : vector<1x2x32x8xf32> to vector<2x32x8xf32>
    %66 = vector.extract_strided_slice %61 {offsets = [2, 0, 0, 0], sizes = [1, 2, 32, 8], strides = [1, 1, 1, 1]} : vector<4x2x32x8xf32> to vector<1x2x32x8xf32>
    %67 = vector.shape_cast %66 : vector<1x2x32x8xf32> to vector<2x32x8xf32>
    %68 = vector.extract_strided_slice %61 {offsets = [3, 0, 0, 0], sizes = [1, 2, 32, 8], strides = [1, 1, 1, 1]} : vector<4x2x32x8xf32> to vector<1x2x32x8xf32>
    %69 = vector.shape_cast %68 : vector<1x2x32x8xf32> to vector<2x32x8xf32>
    %70 = tpu.concatenate %63, %65, %67, %69 in 2 : vector<2x32x8xf32>, vector<2x32x8xf32>, vector<2x32x8xf32>, vector<2x32x8xf32> -> vector<2x32x32xf32>
    %71 = vector.shape_cast %70 : vector<2x32x32xf32> to vector<64x32xf32>
    %72 = arith.truncf %71 : vector<64x32xf32> to vector<64x32xbf16>
    %c0_12 = arith.constant 0 : index
    %c0_13 = arith.constant 0 : index
    %c0_14 = arith.constant 0 : index
    %73 = vector.load %arg7[%c0_12, %c0_13, %c0_14] : memref<1x32x32xbf16, #tpu.memory_space<vmem>>, vector<1x32x32xbf16>
    %74 = vector.shape_cast %73 : vector<1x32x32xbf16> to vector<32x32xbf16>
    %cst_15 = arith.constant dense<0.000000e+00> : vector<64x32xf32>
    %75 = tpu.matmul %72, %74, %cst_15 {dimension_numbers = #tpu.dot_dimension_numbers<[1], [0], [0], [1], [0, 0, 1, 1], [], []>} : vector<64x32xbf16>, vector<32x32xbf16>, vector<64x32xf32> -> vector<64x32xf32>
    %c0_16 = arith.constant 0 : index
    %c0_17 = arith.constant 0 : index
    %c0_18 = arith.constant 0 : index
    %76 = vector.load %arg8[%c0_16, %c0_17, %c0_18] : memref<1x1x32xf32, #tpu.memory_space<vmem>>, vector<1x1x32xf32>
    %77 = vector.shape_cast %76 : vector<1x1x32xf32> to vector<1x32xf32>
    %78 = vector.broadcast %77 : vector<1x32xf32> to vector<64x32xf32>
    %79 = arith.addf %75, %78 : vector<64x32xf32>
    %80 = arith.addf %3, %79 : vector<64x32xf32>
    %c0_19 = arith.constant 0 : index
    %c0_20 = arith.constant 0 : index
    %c0_21 = arith.constant 0 : index
    %81 = vector.load %arg9[%c0_19, %c0_20, %c0_21] : memref<1x1x32xf32, #tpu.memory_space<vmem>>, vector<1x1x32xf32>
    %82 = vector.shape_cast %81 : vector<1x1x32xf32> to vector<1x32xf32>
    %c0_22 = arith.constant 0 : index
    %c0_23 = arith.constant 0 : index
    %c0_24 = arith.constant 0 : index
    %83 = vector.load %arg10[%c0_22, %c0_23, %c0_24] : memref<1x1x32xf32, #tpu.memory_space<vmem>>, vector<1x1x32xf32>
    %84 = vector.shape_cast %83 : vector<1x1x32xf32> to vector<1x32xf32>
    %cst_25 = arith.constant dense<0.000000e+00> : vector<64xf32>
    %85 = vector.multi_reduction <add>, %80, %cst_25 [1] : vector<64x32xf32> to vector<64xf32>
    %86 = vector.shape_cast %85 : vector<64xf32> to vector<64x1xf32>
    %cst_26 = arith.constant 3.200000e+01 : f32
    %87 = vector.broadcast %cst_26 : f32 to vector<64x1xf32>
    %88 = arith.divf %86, %87 : vector<64x1xf32>
    %89 = vector.broadcast %88 : vector<64x1xf32> to vector<64x32xf32>
    %90 = arith.subf %80, %89 : vector<64x32xf32>
    %91 = arith.mulf %90, %90 : vector<64x32xf32>
    %cst_27 = arith.constant dense<0.000000e+00> : vector<64xf32>
    %92 = vector.multi_reduction <add>, %91, %cst_27 [1] : vector<64x32xf32> to vector<64xf32>
    %93 = vector.shape_cast %92 : vector<64xf32> to vector<64x1xf32>
    %cst_28 = arith.constant 3.200000e+01 : f32
    %94 = vector.broadcast %cst_28 : f32 to vector<64x1xf32>
    %95 = arith.divf %93, %94 : vector<64x1xf32>
    %96 = vector.broadcast %88 : vector<64x1xf32> to vector<64x32xf32>
    %97 = arith.subf %80, %96 : vector<64x32xf32>
    %cst_29 = arith.constant 9.99999974E-6 : f32
    %98 = vector.broadcast %cst_29 : f32 to vector<64x1xf32>
    %99 = arith.addf %95, %98 : vector<64x1xf32>
    %100 = math.rsqrt %99 : vector<64x1xf32>
    %101 = vector.broadcast %100 : vector<64x1xf32> to vector<64x32xf32>
    %102 = arith.mulf %97, %101 : vector<64x32xf32>
    %103 = vector.broadcast %82 : vector<1x32xf32> to vector<64x32xf32>
    %104 = arith.mulf %102, %103 : vector<64x32xf32>
    %105 = vector.broadcast %84 : vector<1x32xf32> to vector<64x32xf32>
    %106 = arith.addf %104, %105 : vector<64x32xf32>
    %107 = arith.truncf %106 : vector<64x32xf32> to vector<64x32xbf16>
    %c0_30 = arith.constant 0 : index
    %c0_31 = arith.constant 0 : index
    %c0_32 = arith.constant 0 : index
    %108 = vector.load %arg11[%c0_30, %c0_31, %c0_32] : memref<1x32x128xbf16, #tpu.memory_space<vmem>>, vector<1x32x128xbf16>
    %109 = vector.shape_cast %108 : vector<1x32x128xbf16> to vector<32x128xbf16>
    %cst_33 = arith.constant dense<0.000000e+00> : vector<64x128xf32>
    %110 = tpu.matmul %107, %109, %cst_33 {dimension_numbers = #tpu.dot_dimension_numbers<[1], [0], [0], [1], [0, 0, 1, 1], [], []>} : vector<64x32xbf16>, vector<32x128xbf16>, vector<64x128xf32> -> vector<64x128xf32>
    %c0_34 = arith.constant 0 : index
    %c0_35 = arith.constant 0 : index
    %c0_36 = arith.constant 0 : index
    %111 = vector.load %arg12[%c0_34, %c0_35, %c0_36] : memref<1x1x128xf32, #tpu.memory_space<vmem>>, vector<1x1x128xf32>
    %112 = vector.shape_cast %111 : vector<1x1x128xf32> to vector<1x128xf32>
    %113 = vector.broadcast %112 : vector<1x128xf32> to vector<64x128xf32>
    %114 = arith.addf %110, %113 : vector<64x128xf32>
    %cst_37 = arith.constant 0.000000e+00 : f32
    %115 = vector.broadcast %cst_37 : f32 to vector<64x128xf32>
    %116 = arith.maximumf %114, %115 : vector<64x128xf32>
    %117 = arith.truncf %116 : vector<64x128xf32> to vector<64x128xbf16>
    %c0_38 = arith.constant 0 : index
    %c0_39 = arith.constant 0 : index
    %c0_40 = arith.constant 0 : index
    %118 = vector.load %arg13[%c0_38, %c0_39, %c0_40] : memref<1x128x32xbf16, #tpu.memory_space<vmem>>, vector<1x128x32xbf16>
    %119 = vector.shape_cast %118 : vector<1x128x32xbf16> to vector<128x32xbf16>
    %cst_41 = arith.constant dense<0.000000e+00> : vector<64x32xf32>
    %120 = tpu.matmul %117, %119, %cst_41 {dimension_numbers = #tpu.dot_dimension_numbers<[1], [0], [0], [1], [0, 0, 1, 1], [], []>} : vector<64x128xbf16>, vector<128x32xbf16>, vector<64x32xf32> -> vector<64x32xf32>
    %c0_42 = arith.constant 0 : index
    %c0_43 = arith.constant 0 : index
    %c0_44 = arith.constant 0 : index
    %121 = vector.load %arg14[%c0_42, %c0_43, %c0_44] : memref<1x1x32xf32, #tpu.memory_space<vmem>>, vector<1x1x32xf32>
    %122 = vector.shape_cast %121 : vector<1x1x32xf32> to vector<1x32xf32>
    %123 = vector.broadcast %122 : vector<1x32xf32> to vector<64x32xf32>
    %124 = arith.addf %120, %123 : vector<64x32xf32>
    %125 = arith.addf %106, %124 : vector<64x32xf32>
    %c0_45 = arith.constant 0 : index
    %c0_46 = arith.constant 0 : index
    %c0_47 = arith.constant 0 : index
    %126 = vector.load %arg15[%c0_45, %c0_46, %c0_47] : memref<1x1x32xf32, #tpu.memory_space<vmem>>, vector<1x1x32xf32>
    %127 = vector.shape_cast %126 : vector<1x1x32xf32> to vector<1x32xf32>
    %c0_48 = arith.constant 0 : index
    %c0_49 = arith.constant 0 : index
    %c0_50 = arith.constant 0 : index
    %128 = vector.load %arg16[%c0_48, %c0_49, %c0_50] : memref<1x1x32xf32, #tpu.memory_space<vmem>>, vector<1x1x32xf32>
    %129 = vector.shape_cast %128 : vector<1x1x32xf32> to vector<1x32xf32>
    %cst_51 = arith.constant dense<0.000000e+00> : vector<64xf32>
    %130 = vector.multi_reduction <add>, %125, %cst_51 [1] : vector<64x32xf32> to vector<64xf32>
    %131 = vector.shape_cast %130 : vector<64xf32> to vector<64x1xf32>
    %cst_52 = arith.constant 3.200000e+01 : f32
    %132 = vector.broadcast %cst_52 : f32 to vector<64x1xf32>
    %133 = arith.divf %131, %132 : vector<64x1xf32>
    %134 = vector.broadcast %133 : vector<64x1xf32> to vector<64x32xf32>
    %135 = arith.subf %125, %134 : vector<64x32xf32>
    %136 = arith.mulf %135, %135 : vector<64x32xf32>
    %cst_53 = arith.constant dense<0.000000e+00> : vector<64xf32>
    %137 = vector.multi_reduction <add>, %136, %cst_53 [1] : vector<64x32xf32> to vector<64xf32>
    %138 = vector.shape_cast %137 : vector<64xf32> to vector<64x1xf32>
    %cst_54 = arith.constant 3.200000e+01 : f32
    %139 = vector.broadcast %cst_54 : f32 to vector<64x1xf32>
    %140 = arith.divf %138, %139 : vector<64x1xf32>
    %141 = vector.broadcast %133 : vector<64x1xf32> to vector<64x32xf32>
    %142 = arith.subf %125, %141 : vector<64x32xf32>
    %cst_55 = arith.constant 9.99999974E-6 : f32
    %143 = vector.broadcast %cst_55 : f32 to vector<64x1xf32>
    %144 = arith.addf %140, %143 : vector<64x1xf32>
    %145 = math.rsqrt %144 : vector<64x1xf32>
    %146 = vector.broadcast %145 : vector<64x1xf32> to vector<64x32xf32>
    %147 = arith.mulf %142, %146 : vector<64x32xf32>
    %148 = vector.broadcast %127 : vector<1x32xf32> to vector<64x32xf32>
    %149 = arith.mulf %147, %148 : vector<64x32xf32>
    %150 = vector.broadcast %129 : vector<1x32xf32> to vector<64x32xf32>
    %151 = arith.addf %149, %150 : vector<64x32xf32>
    %c0_56 = arith.constant 0 : index
    %c0_57 = arith.constant 0 : index
    %152 = vector.load %arg24[%c0_56, %c0_57] : memref<64x32xf32, #tpu.memory_space<vmem>>, vector<64x32xf32>
    tpu.vector_store %arg24[%c0_56, %c0_57], %151 {strides = array<i32>} : memref<64x32xf32, #tpu.memory_space<vmem>>, vector<64x32xf32>,
    %c1_i32 = arith.constant 1 : i32
    %153 = arith.cmpi eq, %arg1, %c1_i32 : i32
    %154 = arith.extui %153 : i1 to i32
    %c0_i32_58 = arith.constant 0 : i32
    %155 = arith.cmpi ne, %154, %c0_i32_58 : i32
    scf.if %155 {
      %156 = vector.shape_cast %151 : vector<64x32xf32> to vector<2x32x32xf32>
      %cst_59 = arith.constant dense<0.000000e+00> : vector<2x32xf32>
      %157 = vector.multi_reduction <add>, %156, %cst_59 [1] : vector<2x32x32xf32> to vector<2x32xf32>
      %cst_60 = arith.constant 3.200000e+01 : f32
      %158 = vector.broadcast %cst_60 : f32 to vector<2x32xf32>
      %159 = arith.divf %157, %158 : vector<2x32xf32>
      %160 = arith.truncf %159 : vector<2x32xf32> to vector<2x32xbf16>
      %c0_61 = arith.constant 0 : index
      %c0_62 = arith.constant 0 : index
      %161 = vector.load %arg17[%c0_61, %c0_62] : memref<32x32xbf16, #tpu.memory_space<vmem>>, vector<32x32xbf16>
      %cst_63 = arith.constant dense<0.000000e+00> : vector<2x32xf32>
      %162 = tpu.matmul %160, %161, %cst_63 {dimension_numbers = #tpu.dot_dimension_numbers<[1], [0], [0], [1], [0, 0, 1, 1], [], []>} : vector<2x32xbf16>, vector<32x32xbf16>, vector<2x32xf32> -> vector<2x32xf32>
      %c0_64 = arith.constant 0 : index
      %c0_65 = arith.constant 0 : index
      %163 = vector.load %arg18[%c0_64, %c0_65] : memref<1x32xf32, #tpu.memory_space<vmem>>, vector<1x32xf32>
      %164 = vector.broadcast %163 : vector<1x32xf32> to vector<2x32xf32>
      %165 = arith.addf %162, %164 : vector<2x32xf32>
      %c0_66 = arith.constant 0 : index
      %c0_67 = arith.constant 0 : index
      %166 = vector.load %arg19[%c0_66, %c0_67] : memref<1x32xf32, #tpu.memory_space<vmem>>, vector<1x32xf32>
      %c0_68 = arith.constant 0 : index
      %c0_69 = arith.constant 0 : index
      %167 = vector.load %arg20[%c0_68, %c0_69] : memref<1x32xf32, #tpu.memory_space<vmem>>, vector<1x32xf32>
      %cst_70 = arith.constant dense<0.000000e+00> : vector<2xf32>
      %168 = vector.multi_reduction <add>, %165, %cst_70 [1] : vector<2x32xf32> to vector<2xf32>
      %169 = vector.shape_cast %168 : vector<2xf32> to vector<2x1xf32>
      %cst_71 = arith.constant 3.200000e+01 : f32
      %170 = vector.broadcast %cst_71 : f32 to vector<2x1xf32>
      %171 = arith.divf %169, %170 : vector<2x1xf32>
      %172 = vector.broadcast %171 : vector<2x1xf32> to vector<2x32xf32>
      %173 = arith.subf %165, %172 : vector<2x32xf32>
      %174 = arith.mulf %173, %173 : vector<2x32xf32>
      %cst_72 = arith.constant dense<0.000000e+00> : vector<2xf32>
      %175 = vector.multi_reduction <add>, %174, %cst_72 [1] : vector<2x32xf32> to vector<2xf32>
      %176 = vector.shape_cast %175 : vector<2xf32> to vector<2x1xf32>
      %cst_73 = arith.constant 3.200000e+01 : f32
      %177 = vector.broadcast %cst_73 : f32 to vector<2x1xf32>
      %178 = arith.divf %176, %177 : vector<2x1xf32>
      %179 = vector.broadcast %171 : vector<2x1xf32> to vector<2x32xf32>
      %180 = arith.subf %165, %179 : vector<2x32xf32>
      %cst_74 = arith.constant 9.99999974E-6 : f32
      %181 = vector.broadcast %cst_74 : f32 to vector<2x1xf32>
      %182 = arith.addf %178, %181 : vector<2x1xf32>
      %183 = math.rsqrt %182 : vector<2x1xf32>
      %184 = vector.broadcast %183 : vector<2x1xf32> to vector<2x32xf32>
      %185 = arith.mulf %180, %184 : vector<2x32xf32>
      %186 = vector.broadcast %166 : vector<1x32xf32> to vector<2x32xf32>
      %187 = arith.mulf %185, %186 : vector<2x32xf32>
      %188 = vector.broadcast %167 : vector<1x32xf32> to vector<2x32xf32>
      %189 = arith.addf %187, %188 : vector<2x32xf32>
      %cst_75 = arith.constant 5.000000e-01 : f32
      %190 = vector.broadcast %cst_75 : f32 to vector<2x32xf32>
      %191 = arith.mulf %190, %189 : vector<2x32xf32>
      %cst_76 = arith.constant 0.707106769 : f32
      %192 = vector.broadcast %cst_76 : f32 to vector<2x32xf32>
      %193 = arith.mulf %189, %192 : vector<2x32xf32>
      %cst_77 = arith.constant 0.000000e+00 : f32
      %194 = vector.broadcast %cst_77 : f32 to vector<2x32xf32>
      %195 = arith.cmpf oge, %193, %194 : vector<2x32xf32>
      %cst_78 = arith.constant 1.000000e+00 : f32
      %cst_79 = arith.constant -1.000000e+00 : f32
      %196 = vector.broadcast %cst_78 : f32 to vector<2x32xf32>
      %197 = vector.broadcast %cst_79 : f32 to vector<2x32xf32>
      %198 = arith.select %195, %196, %197 : vector<2x32xi1>, vector<2x32xf32>
      %199 = math.absf %193 : vector<2x32xf32>
      %cst_80 = arith.constant 0.327591091 : f32
      %200 = vector.broadcast %cst_80 : f32 to vector<2x32xf32>
      %201 = arith.mulf %200, %199 : vector<2x32xf32>
      %cst_81 = arith.constant 1.000000e+00 : f32
      %202 = vector.broadcast %cst_81 : f32 to vector<2x32xf32>
      %203 = arith.addf %202, %201 : vector<2x32xf32>
      %cst_82 = arith.constant 1.000000e+00 : f32
      %204 = vector.broadcast %cst_82 : f32 to vector<2x32xf32>
      %205 = arith.divf %204, %203 : vector<2x32xf32>
      %cst_83 = arith.constant 1.06140542 : f32
      %206 = vector.broadcast %cst_83 : f32 to vector<2x32xf32>
      %207 = arith.mulf %206, %205 : vector<2x32xf32>
      %cst_84 = arith.constant -1.45315206 : f32
      %208 = vector.broadcast %cst_84 : f32 to vector<2x32xf32>
      %209 = arith.addf %207, %208 : vector<2x32xf32>
      %210 = arith.mulf %209, %205 : vector<2x32xf32>
      %cst_85 = arith.constant 1.42141378 : f32
      %211 = vector.broadcast %cst_85 : f32 to vector<2x32xf32>
      %212 = arith.addf %210, %211 : vector<2x32xf32>
      %213 = arith.mulf %212, %205 : vector<2x32xf32>
      %cst_86 = arith.constant -0.284496725 : f32
      %214 = vector.broadcast %cst_86 : f32 to vector<2x32xf32>
      %215 = arith.addf %213, %214 : vector<2x32xf32>
      %216 = arith.mulf %215, %205 : vector<2x32xf32>
      %cst_87 = arith.constant 0.254829586 : f32
      %217 = vector.broadcast %cst_87 : f32 to vector<2x32xf32>
      %218 = arith.addf %216, %217 : vector<2x32xf32>
      %219 = arith.mulf %218, %205 : vector<2x32xf32>
      %cst_88 = arith.constant 0.000000e+00 : f32
      %220 = vector.broadcast %cst_88 : f32 to vector<2x32xf32>
      %221 = arith.subf %220, %199 : vector<2x32xf32>
      %222 = arith.mulf %221, %199 : vector<2x32xf32>
      %223 = math.exp %222 : vector<2x32xf32>
      %224 = arith.mulf %219, %223 : vector<2x32xf32>
      %cst_89 = arith.constant 1.000000e+00 : f32
      %225 = vector.broadcast %cst_89 : f32 to vector<2x32xf32>
      %226 = arith.subf %225, %224 : vector<2x32xf32>
      %227 = arith.mulf %198, %226 : vector<2x32xf32>
      %cst_90 = arith.constant 1.000000e+00 : f32
      %228 = vector.broadcast %cst_90 : f32 to vector<2x32xf32>
      %229 = arith.addf %228, %227 : vector<2x32xf32>
      %230 = arith.mulf %191, %229 : vector<2x32xf32>
      %231 = arith.truncf %230 : vector<2x32xf32> to vector<2x32xbf16>
      %c0_91 = arith.constant 0 : index
      %c0_92 = arith.constant 0 : index
      %232 = vector.load %arg21[%c0_91, %c0_92] : memref<32x128xbf16, #tpu.memory_space<vmem>>, vector<32x128xbf16>
      %cst_93 = arith.constant dense<0.000000e+00> : vector<2x128xf32>
      %233 = tpu.matmul %231, %232, %cst_93 {dimension_numbers = #tpu.dot_dimension_numbers<[1], [0], [0], [1], [0, 0, 1, 1], [], []>} : vector<2x32xbf16>, vector<32x128xbf16>, vector<2x128xf32> -> vector<2x128xf32>
      %c0_94 = arith.constant 0 : index
      %c0_95 = arith.constant 0 : index
      %234 = vector.load %arg22[%c0_94, %c0_95] : memref<1x128xf32, #tpu.memory_space<vmem>>, vector<1x128xf32>
      %235 = vector.broadcast %234 : vector<1x128xf32> to vector<2x128xf32>
      %236 = arith.addf %233, %235 : vector<2x128xf32>
      %c0_96 = arith.constant 0 : index
      %c0_97 = arith.constant 0 : index
      %c0_98 = arith.constant 0 : index
      %237 = vector.load %arg23[%c0_96, %c0_97, %c0_98] : memref<1x2x128xf32, #tpu.memory_space<vmem>>, vector<1x2x128xf32>
      %238 = vector.shape_cast %237 : vector<1x2x128xf32> to vector<2x128xf32>
      %239 = vector.shape_cast %236 : vector<2x128xf32> to vector<1x2x128xf32>
      tpu.vector_store %arg23[%c0_96, %c0_97, %c0_98], %239 {strides = array<i32>} : memref<1x2x128xf32, #tpu.memory_space<vmem>>, vector<1x2x128xf32>,
    } else {
    }
    return
  }
  func.func @transform_0(%arg0: i32, %arg1: i32) -> (i32, i32, i32) {
    %c0_i32 = arith.constant 0 : i32
    %c0_i32_0 = arith.constant 0 : i32
    %c0_i32_1 = arith.constant 0 : i32
    return %arg0, %c0_i32, %c0_i32_0 : i32, i32, i32
  }
  func.func @transform_1(%arg0: i32, %arg1: i32) -> (i32, i32) {
    %c0_i32 = arith.constant 0 : i32
    %c0_i32_0 = arith.constant 0 : i32
    %c0_i32_1 = arith.constant 0 : i32
    return %c0_i32, %c0_i32_0 : i32, i32
  }
  func.func @transform_2(%arg0: i32, %arg1: i32) -> (i32, i32) {
    %c0_i32 = arith.constant 0 : i32
    %c0_i32_0 = arith.constant 0 : i32
    %c0_i32_1 = arith.constant 0 : i32
    return %c0_i32, %c0_i32_0 : i32, i32
  }
  func.func @transform_3(%arg0: i32, %arg1: i32) -> (i32, i32, i32) {
    %c0_i32 = arith.constant 0 : i32
    %c0_i32_0 = arith.constant 0 : i32
    %c0_i32_1 = arith.constant 0 : i32
    return %arg1, %c0_i32, %c0_i32_0 : i32, i32, i32
  }
  func.func @transform_4(%arg0: i32, %arg1: i32) -> (i32, i32, i32) {
    %c0_i32 = arith.constant 0 : i32
    %c0_i32_0 = arith.constant 0 : i32
    %c0_i32_1 = arith.constant 0 : i32
    return %arg1, %c0_i32, %c0_i32_0 : i32, i32, i32
  }
  func.func @transform_5(%arg0: i32, %arg1: i32) -> (i32, i32, i32) {
    %c0_i32 = arith.constant 0 : i32
    %c0_i32_0 = arith.constant 0 : i32
    %c0_i32_1 = arith.constant 0 : i32
    return %arg1, %c0_i32, %c0_i32_0 : i32, i32, i32
  }
  func.func @transform_6(%arg0: i32, %arg1: i32) -> (i32, i32, i32) {
    %c0_i32 = arith.constant 0 : i32
    %c0_i32_0 = arith.constant 0 : i32
    %c0_i32_1 = arith.constant 0 : i32
    return %arg1, %c0_i32, %c0_i32_0 : i32, i32, i32
  }
  func.func @transform_7(%arg0: i32, %arg1: i32) -> (i32, i32, i32) {
    %c0_i32 = arith.constant 0 : i32
    %c0_i32_0 = arith.constant 0 : i32
    %c0_i32_1 = arith.constant 0 : i32
    return %arg1, %c0_i32, %c0_i32_0 : i32, i32, i32
  }
  func.func @transform_8(%arg0: i32, %arg1: i32) -> (i32, i32, i32) {
    %c0_i32 = arith.constant 0 : i32
    %c0_i32_0 = arith.constant 0 : i32
    %c0_i32_1 = arith.constant 0 : i32
    return %arg1, %c0_i32, %c0_i32_0 : i32, i32, i32
  }
  func.func @transform_9(%arg0: i32, %arg1: i32) -> (i32, i32, i32) {
    %c0_i32 = arith.constant 0 : i32
    %c0_i32_0 = arith.constant 0 : i32
    %c0_i32_1 = arith.constant 0 : i32
    return %arg1, %c0_i32, %c0_i32_0 : i32, i32, i32
  }
  func.func @transform_10(%arg0: i32, %arg1: i32) -> (i32, i32, i32) {
    %c0_i32 = arith.constant 0 : i32
    %c0_i32_0 = arith.constant 0 : i32
    %c0_i32_1 = arith.constant 0 : i32
    return %arg1, %c0_i32, %c0_i32_0 : i32, i32, i32
  }
  func.func @transform_11(%arg0: i32, %arg1: i32) -> (i32, i32, i32) {
    %c0_i32 = arith.constant 0 : i32
    %c0_i32_0 = arith.constant 0 : i32
    %c0_i32_1 = arith.constant 0 : i32
    return %arg1, %c0_i32, %c0_i32_0 : i32, i32, i32
  }
  func.func @transform_12(%arg0: i32, %arg1: i32) -> (i32, i32, i32) {
    %c0_i32 = arith.constant 0 : i32
    %c0_i32_0 = arith.constant 0 : i32
    %c0_i32_1 = arith.constant 0 : i32
    return %arg1, %c0_i32, %c0_i32_0 : i32, i32, i32
  }
  func.func @transform_13(%arg0: i32, %arg1: i32) -> (i32, i32, i32) {
    %c0_i32 = arith.constant 0 : i32
    %c0_i32_0 = arith.constant 0 : i32
    %c0_i32_1 = arith.constant 0 : i32
    return %arg1, %c0_i32, %c0_i32_0 : i32, i32, i32
  }
  func.func @transform_14(%arg0: i32, %arg1: i32) -> (i32, i32, i32) {
    %c0_i32 = arith.constant 0 : i32
    %c0_i32_0 = arith.constant 0 : i32
    %c0_i32_1 = arith.constant 0 : i32
    return %arg1, %c0_i32, %c0_i32_0 : i32, i32, i32
  }
  func.func @transform_15(%arg0: i32, %arg1: i32) -> (i32, i32) {
    %c0_i32 = arith.constant 0 : i32
    %c0_i32_0 = arith.constant 0 : i32
    %c0_i32_1 = arith.constant 0 : i32
    return %c0_i32, %c0_i32_0 : i32, i32
  }
  func.func @transform_16(%arg0: i32, %arg1: i32) -> (i32, i32) {
    %c0_i32 = arith.constant 0 : i32
    %c0_i32_0 = arith.constant 0 : i32
    %c0_i32_1 = arith.constant 0 : i32
    return %c0_i32, %c0_i32_0 : i32, i32
  }
  func.func @transform_17(%arg0: i32, %arg1: i32) -> (i32, i32) {
    %c0_i32 = arith.constant 0 : i32
    %c0_i32_0 = arith.constant 0 : i32
    %c0_i32_1 = arith.constant 0 : i32
    return %c0_i32, %c0_i32_0 : i32, i32
  }
  func.func @transform_18(%arg0: i32, %arg1: i32) -> (i32, i32) {
    %c0_i32 = arith.constant 0 : i32
    %c0_i32_0 = arith.constant 0 : i32
    %c0_i32_1 = arith.constant 0 : i32
    return %c0_i32, %c0_i32_0 : i32, i32
  }
  func.func @transform_19(%arg0: i32, %arg1: i32) -> (i32, i32) {
    %c0_i32 = arith.constant 0 : i32
    %c0_i32_0 = arith.constant 0 : i32
    %c0_i32_1 = arith.constant 0 : i32
    return %c0_i32, %c0_i32_0 : i32, i32
  }
  func.func @transform_20(%arg0: i32, %arg1: i32) -> (i32, i32) {
    %c0_i32 = arith.constant 0 : i32
    %c0_i32_0 = arith.constant 0 : i32
    %c0_i32_1 = arith.constant 0 : i32
    return %c0_i32, %c0_i32_0 : i32, i32
  }
  func.func @transform_21(%arg0: i32, %arg1: i32) -> (i32, i32, i32) {
    %c0_i32 = arith.constant 0 : i32
    %c0_i32_0 = arith.constant 0 : i32
    %c0_i32_1 = arith.constant 0 : i32
    return %arg0, %c0_i32, %c0_i32_0 : i32, i32, i32
  }
}

</mosaic_0001>

<bundles_post_ra>
// kernel: tpu_custom_call.1
= control target key start
LH: loop header
LB: loop body
LE: loop exit
PB: predicated region body
PF: predicated region fallthrough
CT: control target
= control target key end

     0   :  { %s7691_s0 = inlined_call_operand.hbm [shape: f32[2,32,32], index: 0, kind: input, shape index: {}]   ;;  %s7692_s1 = inlined_call_operand.hbm [shape: f32[1,32], index: 1, kind: input, shape index: {}]   ;;  %s7693_s2 = inlined_call_operand.hbm [shape: f32[1,32], index: 2, kind: input, shape index: {}]   ;;  %s7694_s3 = inlined_call_operand.hbm [shape: bf16[2,32,96], index: 3, kind: input, shape index: {}]   ;;  %s7695_s4 = inlined_call_operand.hbm [shape: f32[2,1,96], index: 4, kind: input, shape index: {}]   ;;  %s7696_s5 = inlined_call_operand.hbm [shape: bf16[2,32,32], index: 5, kind: input, shape index: {}]   ;;  %s7697_s6 = inlined_call_operand.hbm [shape: f32[2,1,32], index: 6, kind: input, shape index: {}]   ;;  %s7698_s7 = inlined_call_operand.hbm [shape: f32[2,1,32], index: 7, kind: input, shape index: {}]   ;;  %s7699_s8 = inlined_call_operand.hbm [shape: f32[2,1,32], index: 8, kind: input, shape index: {}]   ;;  %s7700_s9 = inlined_call_operand.hbm [shape: bf16[2,32,128], index: 9, kind: input, shape index: {}]   ;;  %s7701_s10 = inlined_call_operand.hbm [shape: f32[2,1,128], index: 10, kind: input, shape index: {}]   ;;  %s7702_s11 = inlined_call_operand.hbm [shape: bf16[2,128,32], index: 11, kind: input, shape index: {}]   ;;  %s7703_s12 = inlined_call_operand.hbm [shape: f32[2,1,32], index: 12, kind: input, shape index: {}]   ;;  %s7704_s13 = inlined_call_operand.hbm [shape: f32[2,1,32], index: 13, kind: input, shape index: {}]   ;;  %s7705_s14 = inlined_call_operand.hbm [shape: f32[2,1,32], index: 14, kind: input, shape index: {}]   ;;  %s7706_s15 = inlined_call_operand.hbm [shape: bf16[32,32], index: 15, kind: input, shape index: {}]   ;;  %s7707_s16 = inlined_call_operand.hbm [shape: f32[1,32], index: 16, kind: input, shape index: {}]   ;;  %s7708_s17 = inlined_call_operand.hbm [shape: f32[1,32], index: 17, kind: input, shape index: {}]   ;;  %s7709_s18 = inlined_call_operand.hbm [shape: f32[1,32], index: 18, kind: input, shape index: {}]   ;;  %s7710_s19 = inlined_call_operand.hbm [shape: bf16[32,128], index: 19, kind: input, shape index: {}]   ;;  %s7711_s20 = inlined_call_operand.hbm [shape: f32[1,128], index: 20, kind: input, shape index: {}]   ;;  %s7712_s21 = inlined_call_operand.hbm [shape: f32[1,2,128], index: 21, kind: output, shape index: {}]  }
   0x1   :  { %7755 = sst [smem:[#allocation57_spill]] %s7691_s0 }
   0x2   :  { %7756 = sst [smem:[#allocation58_spill]] %s7692_s1 }
   0x3   :  { %7757 = sst [smem:[#allocation59_spill]] %s7693_s2 }
   0x4   :  { %7758 = sst [smem:[#allocation60_spill]] %s7694_s3 }
   0x5   :  { %7759 = sst [smem:[#allocation61_spill]] %s7695_s4 }
   0x6   :  { %7760 = sst [smem:[#allocation62_spill]] %s7696_s5 }
   0x7   :  { %7761 = sst [smem:[#allocation63_spill]] %s7697_s6 }
   0x8   :  { %7762 = sst [smem:[#allocation64_spill]] %s7698_s7 }
   0x9   :  { %7763 = sst [smem:[#allocation65_spill]] %s7699_s8 }
   0xa   :  { %7764 = sst [smem:[#allocation66_spill]] %s7700_s9 }
   0xb   :  { %7765 = sst [smem:[#allocation67_spill]] %s7701_s10 }
   0xc   :  { %7766 = sst [smem:[#allocation68_spill]] %s7702_s11 }
   0xd   :  { %7767 = sst [smem:[#allocation69_spill]] %s7703_s12 }
   0xe   :  { %7768 = sst [smem:[#allocation70_spill]] %s7705_s14 }
   0xf   :  { %7769 = sst [smem:[#allocation71_spill]] %s7706_s15 }
  0x10   :  { %7770 = sst [smem:[#allocation72_spill]] %s7708_s17 }
  0x11   :  { %7771 = sst [smem:[#allocation73_spill]] %s7710_s19 }
  0x12   :  { %7772 = sst [smem:[#allocation74_spill]] %s7712_s21 }
  0x13   :  { %26 = vsyncpa [#allocation4], 0 }
  0x14   :  { %27 = vsyncpa [#allocation7], 0 }
  0x15   :  { %28 = vsyncpa [#allocation10], 0 }
  0x16   :  { %30 = vsyncpa [#allocation10 + $0x1], 0 }
  0x17   :  { %31 = vsyncpa [#allocation13], 0 }
  0x18   :  { %33 = vsyncpa [#allocation13 + $0x1], 0 }
  0x19   :  { %34 = vsyncpa [#allocation16], 0 }
  0x1a   :  { %36 = vsyncpa [#allocation16 + $0x1], 0 }
  0x1b   :  { %37 = vsyncpa [#allocation19], 0 }
  0x1c   :  { %39 = vsyncpa [#allocation19 + $0x1], 0 }
  0x1d   :  { %40 = vsyncpa [#allocation22], 0 }
  0x1e   :  { %42 = vsyncpa [#allocation22 + $0x1], 0 }
  0x1f   :  { %43 = vsyncpa [#allocation25], 0 }
  0x20   :  { %45 = vsyncpa [#allocation25 + $0x1], 0 }
  0x21   :  { %46 = vsyncpa [#allocation28], 0 }
  0x22   :  { %47 = vsyncpa [#allocation31], 0 }
  0x23   :  { %48 = vsyncpa [#allocation34], 0 }
  0x24   :  { %49 = vsyncpa [#allocation5], 0  ;;  %s6062_s2 = smov 0   ;;  %s6064_s25 = smov 0  }
  0x25   :  { %s6066_s26 = smov 0   ;;  %s6068_s27 = smov 0  }
  0x26   :  { %s6070_s3 = smov 0   ;;  %s6072_s28 = smov 0  }
  0x27 LB: > { %7773 = sst [smem:[#allocation49_spill]] %s5897_s25  ;;  %s5915_s29 = smov [#allocation6]   ;;  %s5913_s28 = sphi %s6072_s28, %s55_s28   ;;  %s5909_s3 = sphi %s6070_s3, %s7854_s3   ;;  %s5905_s27 = sphi %s6068_s27, %s7853_s27   ;;  %s5901_s26 = sphi %s6066_s26, %s7851_s26   ;;  %s5897_s25 = sphi %s6064_s25, %s7850_s25   ;;  %s5893_s2 = sphi %s6062_s2, %s7849_s2  }
  0x28   : > { %7774 = sst [smem:[#allocation50_spill]] %s5901_s26  ;;  %s634_s0 = sshll.u32 %s5915_s29, 4  ;;  %s635_s0 = int_to_ptr.vmem [resolvable:$true] %s634_s0 }
  0x29   : > { %7775 = sst [smem:[#allocation51_spill]] %s5905_s27  ;;  %s6093_s4 = sadd.s32 4294967295, %s5913_s28  }
  0x2a   : > { %7776 = sst [smem:[#allocation52_spill]] %s5913_s28  ;;  %p4237_p0 = scmp.ge.s32.totalorder %s5913_s28, 1 }
  0x2b   : > { %p7725_p1 = scmp.eq.s32.totalorder %s6093_s4, 0  ;;  %p604_p2 = scmp.lt.s32.totalorder %s5913_s28, 3 }
  0x2c   : > { %s5916_s5 = smov [#allocation27]   ;;  %s5917_s1 = smov [#allocation30]  }
  0x2d   : > { %p6098_p3 = pnand %p4237_p0, %p604_p2  ;;  %s655_s22 = sshll.u32 %s5916_s5, 4  ;;  %s6104_s22 = int_to_ptr.vmem [resolvable:$true] %s655_s22 }
  0x2e   : > { %s680_s24 = sshll.u32 %s5917_s1, 4  ;;  %s7780_s27 = sld [smem:[#allocation58_spill]]  ;;  %s6112_s24 = int_to_ptr.vmem [resolvable:$true] %s680_s24 }
  0x2f   : > { %s7777_s30 = scalar_select %p6098_p3, 1, 0 }
  0x30   : > { %p4754_p4 = pneg %p6098_p3 }
  0x31   : > { %7778 = sst [smem:[#allocation53_spill]] %s7777_s30 }
  0x32   : > { %p6108_p5 = pnand %p4754_p4, %p7725_p1 }
  0x34   : > { %s7779_s23 = scalar_select %p6108_p5, 1, 0 }
  0x35   : > { %s7781_s14 = smov %s7780_s27  ;;  %s5181_s12 = scalar_lea.hbm %s7780_s27, 16 }
  0x36   : > { %p5182_p6 = scmp.ne.s32.totalorder %s7781_s14, %s5181_s12  ;;  %p6122_p7 = pneg %p6108_p5 }
  0x37   : > { %p5188_p10 = scmp.lt.u32.totalorder %s5181_s12, %s7781_s14 }
  0x38   : > { %s7782_s5 = scalar_select %p6122_p7, 1, 0 }
  0x39   : > { %p5184_p8 = pnand %p6122_p7, %p5182_p6 }
  0x3b   : > { %p5185_p9 = pneg %p5184_p8 }
  0x3d   : > { %p5190_p11 = pnand %p5188_p10, %p5185_p9 }
  0x3f   : > { %5193 = shalt.err (!%p5190_p11)
}
  0x40   : > { %s5194_s21 = scalar_lea.vmem %s635_s0, 16  ;;  %s5201_s10 = scalar_lea.vmem %s635_s0, 32 }
  0x41   : > { %p5195_p12 = scmp.ne.s32.totalorder %s635_s0, %s5194_s21  ;;  %p5202_p2 = scmp.lt.s32.totalorder %s635_s0, %s635_s0 }
  0x42   : > { %p5203_p4 = scmp.lt.s32.totalorder %s5201_s10, %s5194_s21 }
  0x43   : > { %p5197_p13 = pnand %p5195_p12, %p6122_p7 }
  0x44   : > { %p5204_p1 = por %p5203_p4, %p5202_p2 }
  0x45   : > { %p5198_p0 = pneg %p5197_p13 }
  0x47   : > { %p5205_p3 = pnand %p5204_p1, %p5198_p0 }
  0x49   : > { %5208 = shalt.err (!%p5205_p3)
}
  0x4a   : > { %4760 = dma.hbm_to_vmem [thread:$0]  (!%p6108_p5), %s7781_s14, 16, %s635_s0, [#allocation7]  }
  0x4b   : > { %s7783_s15 = sld [smem:[#allocation71_spill]] }
  0x51   : > { %s5209_s29 = scalar_lea.hbm %s7783_s15, 256 }
  0x52   : > { %p5210_p6 = scmp.ne.s32.totalorder %s7783_s15, %s5209_s29  ;;  %p5216_p1 = scmp.lt.u32.totalorder %s5209_s29, %s7783_s15 }
  0x54   : > { %p5212_p8 = pnand %p5210_p6, %p6122_p7 }
  0x56   : > { %p5213_p9 = pneg %p5212_p8 }
  0x58   : > { %p5218_p3 = pnand %p5216_p1, %p5213_p9 }
  0x5a   : > { %5221 = shalt.err (!%p5218_p3)
}
  0x5b   : > { %s5222_s0 = scalar_lea.vmem %s6104_s22, 256  ;;  %p5230_p13 = scmp.lt.s32.totalorder %s6104_s22, %s6104_s22 }
  0x5c   : > { %p5223_p10 = scmp.ne.s32.totalorder %s6104_s22, %s5222_s0  ;;  %p5231_p0 = scmp.lt.s32.totalorder %s5222_s0, %s5222_s0 }
  0x5e   : > { %p5225_p11 = pnand %p5223_p10, %p6122_p7  ;;  %p5232_p2 = por %p5231_p0, %p5230_p13 }
  0x60   : > { %p5226_p12 = pneg %p5225_p11 }
  0x62   : > { %p5233_p4 = pnand %p5232_p2, %p5226_p12 }
  0x64   : > { %5236 = shalt.err (!%p5233_p4)
}
  0x65   : > { %s7729_s6 = smov 64   ;;  %s7731_s27 = smov 4  }
  0x66   : > { %4766 = dma.hbm_to_vmem [thread:$0]  (!%p6108_p5), %s7783_s15, 256, %s6104_s22, [#allocation28], %s7729_s6, %s7729_s6, %s7731_s27  }
  0x67   : > { %s7784_s17 = sld [smem:[#allocation72_spill]] }
  0x6d   : > { %s5237_s1 = scalar_lea.hbm %s7784_s17, 16 }
  0x6e   : > { %p5238_p6 = scmp.ne.s32.totalorder %s7784_s17, %s5237_s1  ;;  %p5244_p1 = scmp.lt.u32.totalorder %s5237_s1, %s7784_s17 }
  0x70   : > { %p5240_p8 = pnand %p5238_p6, %p6122_p7 }
  0x72   : > { %p5241_p9 = pneg %p5240_p8 }
  0x74   : > { %p5246_p3 = pnand %p5244_p1, %p5241_p9 }
  0x76   : > { %5249 = shalt.err (!%p5246_p3)
}
  0x77   : > { %s5250_s22 = scalar_lea.vmem %s6112_s24, 16  ;;  %s5257_s30 = scalar_lea.vmem %s6112_s24, 32 }
  0x78   : > { %p5251_p10 = scmp.ne.s32.totalorder %s6112_s24, %s5250_s22  ;;  %p5258_p13 = scmp.lt.s32.totalorder %s6112_s24, %s6112_s24 }
  0x79   : > { %p5259_p0 = scmp.lt.s32.totalorder %s5257_s30, %s5250_s22 }
  0x7a   : > { %p5253_p11 = pnand %p5251_p10, %p6122_p7 }
  0x7b   : > { %p5260_p2 = por %p5259_p0, %p5258_p13 }
  0x7c   : > { %p5254_p12 = pneg %p5253_p11 }
  0x7e   : > { %p5261_p4 = pnand %p5260_p2, %p5254_p12 }
  0x80   : > { %5264 = shalt.err (!%p5261_p4)
}
  0x81   : > { %4772 = dma.hbm_to_vmem [thread:$0]  (!%p6108_p5), %s7784_s17, 16, %s6112_s24, [#allocation31]  }
  0x82   : > { %s5920_s12 = smov [#allocation33]   ;;  %s7785_s19 = sld [smem:[#allocation73_spill]] }
  0x83   : > { %s701_s29 = sshll.u32 %s5920_s12, 4  ;;  %s702_s29 = int_to_ptr.vmem [resolvable:$true] %s701_s29 }
  0x88   : > { %s5265_s10 = scalar_lea.hbm %s7785_s19, 256 }
  0x89   : > { %p5266_p6 = scmp.ne.s32.totalorder %s7785_s19, %s5265_s10  ;;  %p5272_p1 = scmp.lt.u32.totalorder %s5265_s10, %s7785_s19 }
  0x8b   : > { %p5268_p8 = pnand %p5266_p6, %p6122_p7 }
  0x8d   : > { %p5269_p9 = pneg %p5268_p8 }
  0x8f   : > { %p5274_p3 = pnand %p5272_p1, %p5269_p9 }
  0x91   : > { %5277 = shalt.err (!%p5274_p3)
}
  0x92   : > { %s5278_s24 = scalar_lea.vmem %s702_s29, 256  ;;  %p5286_p13 = scmp.lt.s32.totalorder %s702_s29, %s702_s29 }
  0x93   : > { %p5279_p10 = scmp.ne.s32.totalorder %s702_s29, %s5278_s24  ;;  %p5287_p0 = scmp.lt.s32.totalorder %s5278_s24, %s5278_s24 }
  0x95   : > { %p5281_p11 = pnand %p5279_p10, %p6122_p7  ;;  %p5288_p2 = por %p5287_p0, %p5286_p13 }
  0x97   : > { %p5282_p12 = pneg %p5281_p11 }
  0x99   : > { %p5289_p4 = pnand %p5288_p2, %p5282_p12 }
  0x9b   : > { %5292 = shalt.err (!%p5289_p4)
}
  0x9c   : > { %s7786_s14 = smov 64   ;;  %s64_s12 = sadd.s32 1, %s5909_s3 }
  0x9d   : > { %4778 = dma.hbm_to_vmem [thread:$0]  (!%p6108_p5), %s7785_s19, 256, %s702_s29, [#allocation34], %s7786_s14, %s7786_s14, %s7731_s27  }
  0x9e   : > { %s142_s1 = sadd.s32 1, %s5901_s26  ;;  %p65_p6 = scmp.ge.s32.totalorder %s64_s12, 2 }
  0x9f   : > { %p149_p8 = scmp.ne.s32.totalorder %s5901_s26, %s5897_s25  ;;  %p150_p9 = scmp.eq.s32.totalorder %s5913_s28, 0 }
  0xa0   : > { %p155_p1 = scmp.ne.s32.totalorder %s5897_s25, %s5893_s2  ;;  %s7856_s12 = smov (%p65_p6, %s64_s12), 0 }
  0xa1   : > { %7787 = sst [smem:[#allocation54_spill]] %s7856_s12  ;;  %p6218_p3 = por %p150_p9, %p149_p8 }
  0xa2   : > { %p7789_p10 = scmp.eq.s32.totalorder %s6093_s4, 0  ;;  %s139_s29 = ssub.s32 %s5909_s3, %s7856_s12 }
  0xa3   : > { %p4828_p12 = scmp.lt.s32.totalorder %s5913_s28, 2  ;;  %p140_p13 = scmp.eq.s32.totalorder %s139_s29, 0 }
  0xa4   : > { %p6224_p11 = por %p7789_p10, %p155_p1  ;;  %s6232_s0 = sand.u32 1, %s5913_s28  }
  0xa5   : > { %s6235_s2 = sand.u32 1, %s5901_s26   ;;  %s6244_s24 = sshll.u32 %s5909_s3, 8 }
  0xa6   : > { %s7790_s10 = scalar_select %p6224_p11, 1, 0 }
  0xa7   : > { %s6238_s22 = scalar_select %p140_p13, %s5901_s26, %s142_s1  }
  0xa8   : > { %7791 = sst [smem:[#allocation55_spill]] %s7790_s10  ;;  %s6241_s30 = sshll.u32 %s6235_s2, 4 }
  0xa9   : > { %7792 = sst [smem:[#allocation56_spill]] %s6238_s22  ;;  %s7793_s27 = sld [smem:[#allocation60_spill]] }
  0xaa   : > { %s730_s29 = scalar_lea.vmem [#allocation9], %s6241_s30  ;;  %p6255_p0 = pnand %p4828_p12, %p6218_p3 }
  0xab   : > { %s737_s19 = sshll.u32 %s730_s29, 4  ;;  %s6259_s19 = int_to_ptr.vmem [resolvable:$true] %s737_s19 }
  0xac   : > { %s7795_s1 = scalar_select %p6255_p0, 1, 0 }
  0xad   : > { %p6266_p4 = pneg %p6255_p0 }
  0xaf   : > { %s7794_s15 = smov %s7793_s27  ;;  %s6250_s17 = scalar_lea.hbm %s7793_s27, %s6244_s24 }
  0xb0   : > { %s5293_s22 = scalar_lea.hbm %s6250_s17, 256  ;;  %s5298_s8 = scalar_lea.hbm %s7794_s15, 512 }
  0xb1   : > { %p5294_p2 = scmp.ne.s32.totalorder %s6250_s17, %s5293_s22  ;;  %p5299_p9 = scmp.lt.u32.totalorder %s6250_s17, %s7794_s15 }
  0xb2   : > { %s7796_s27 = scalar_select %p6266_p4, 1, 0 }
  0xb3   : > { %p5296_p6 = pnand %p6266_p4, %p5294_p2  ;;  %p5300_p1 = scmp.lt.u32.totalorder %s5298_s8, %s5293_s22 }
  0xb4   : > { %p5302_p10 = scmp.lt.u32.totalorder %s5293_s22, %s6250_s17 }
  0xb5   : > { %p5297_p8 = pneg %p5296_p6  ;;  %p5301_p3 = por %p5300_p1, %p5299_p9 }
  0xb7   : > { %p5303_p12 = por %p5302_p10, %p5301_p3 }
  0xb9   : > { %p5304_p13 = pnand %p5303_p12, %p5297_p8 }
  0xbb   : > { %5307 = shalt.err (!%p5304_p13)
}
  0xbc   : > { %s5308_s12 = scalar_lea.vmem %s6259_s19, 256  ;;  %s5921_s21 = smov [#allocation9]  }
  0xbd   : > { %p5309_p2 = scmp.ne.s32.totalorder %s6259_s19, %s5308_s12  ;;  %s5313_s6 = sshll.u32 %s5921_s21, 4  ;;  %s5314_s6 = int_to_ptr.vmem [resolvable:$false] %s5313_s6 }
  0xbe   : > { %s5315_s26 = scalar_lea.vmem %s5314_s6, 512  ;;  %p5316_p5 = scmp.lt.s32.totalorder %s6259_s19, %s5314_s6 }
  0xbf   : > { %p5311_p6 = pnand %p5309_p2, %p6266_p4  ;;  %p5317_p7 = scmp.lt.s32.totalorder %s5315_s26, %s5308_s12 }
  0xc1   : > { %p5312_p11 = pneg %p5311_p6  ;;  %p5318_p9 = por %p5317_p7, %p5316_p5 }
  0xc3   : > { %p5319_p1 = pnand %p5318_p9, %p5312_p11 }
  0xc5   : > { %5322 = shalt.err (!%p5319_p1)
}
  0xc6   : > { %s7797_s22 = smov 4   ;;  %s7798_s8 = scalar_lea.sflag [#allocation10], %s6232_s0 }
  0xc7   : > { %4785 = dma.hbm_to_vmem [thread:$0]  (!%p6255_p0), %s6250_s17, 256, %s6259_s19, %s7798_s8, %s7786_s14, %s7786_s14, %s7797_s22  }
  0xc8   : > { %s7799_s21 = sld [smem:[#allocation62_spill]]  ;;  %s768_s26 = scalar_lea.vmem [#allocation12], %s6241_s30 }
  0xc9   : > { %s775_s15 = sshll.u32 %s768_s26, 4  ;;  %s6304_s28 = sshll.u32 %s5909_s3, 4  ;;  %s6301_s15 = int_to_ptr.vmem [resolvable:$true] %s775_s15 }
  0xca   : > { %s7746_s10 = scalar_lea.sflag [#allocation13], %s6232_s0 }
  0xce   : > { %s6298_s6 = scalar_lea.hbm %s7799_s21, %s6244_s24  ;;  %s5328_s8 = scalar_lea.hbm %s7799_s21, 512 }
  0xcf   : > { %s5323_s25 = scalar_lea.hbm %s6298_s6, 256  ;;  %p5329_p8 = scmp.lt.u32.totalorder %s6298_s6, %s7799_s21 }
  0xd0   : > { %p5324_p5 = scmp.ne.s32.totalorder %s6298_s6, %s5323_s25  ;;  %p5330_p3 = scmp.lt.u32.totalorder %s5328_s8, %s5323_s25 }
  0xd1   : > { %p5332_p12 = scmp.lt.u32.totalorder %s5323_s25, %s6298_s6 }
  0xd2   : > { %p5326_p7 = pnand %p5324_p5, %p6266_p4  ;;  %p5331_p10 = por %p5330_p3, %p5329_p8 }
  0xd4   : > { %p5327_p11 = pneg %p5326_p7  ;;  %p5333_p13 = por %p5332_p12, %p5331_p10 }
  0xd6   : > { %p5334_p2 = pnand %p5333_p13, %p5327_p11 }
  0xd8   : > { %5337 = shalt.err (!%p5334_p2)
}
  0xd9   : > { %s5338_s26 = scalar_lea.vmem %s6301_s15, 256  ;;  %s5922_s17 = smov [#allocation12]  }
  0xda   : > { %p5339_p6 = scmp.ne.s32.totalorder %s6301_s15, %s5338_s26  ;;  %s5343_s19 = sshll.u32 %s5922_s17, 4  ;;  %s5344_s19 = int_to_ptr.vmem [resolvable:$false] %s5343_s19 }
  0xdb   : > { %s5345_s29 = scalar_lea.vmem %s5344_s19, 512  ;;  %p5346_p5 = scmp.lt.s32.totalorder %s6301_s15, %s5344_s19 }
  0xdc   : > { %p5341_p9 = pnand %p5339_p6, %p6266_p4  ;;  %p5347_p7 = scmp.lt.s32.totalorder %s5345_s29, %s5338_s26 }
  0xde   : > { %p5342_p1 = pneg %p5341_p9  ;;  %p5348_p8 = por %p5347_p7, %p5346_p5 }
  0xe0   : > { %p5349_p3 = pnand %p5348_p8, %p5342_p1 }
  0xe2   : > { %5352 = shalt.err (!%p5349_p3)
}
  0xe3   : > { %4791 = dma.hbm_to_vmem [thread:$0]  (!%p6255_p0), %s6298_s6, 256, %s6301_s15, %s7746_s10, %s7786_s14, %s7786_s14, %s7797_s22  }
  0xe4   : > { %s7800_s7 = sld [smem:[#allocation64_spill]]  ;;  %s805_s26 = scalar_lea.vmem [#allocation15], %s6235_s2 }
  0xe5   : > { %s812_s17 = sshll.u32 %s805_s26, 4  ;;  %s813_s17 = int_to_ptr.vmem [resolvable:$true] %s812_s17 }
  0xea   : > { %s6337_s12 = scalar_lea.hbm %s7800_s7, %s6304_s28  ;;  %s5358_s6 = scalar_lea.hbm %s7800_s7, 32 }
  0xeb   : > { %s5353_s29 = scalar_lea.hbm %s6337_s12, 16  ;;  %p5359_p13 = scmp.lt.u32.totalorder %s6337_s12, %s7800_s7 }
  0xec   : > { %p5354_p11 = scmp.ne.s32.totalorder %s6337_s12, %s5353_s29  ;;  %p5360_p2 = scmp.lt.u32.totalorder %s5358_s6, %s5353_s29 }
  0xed   : > { %p5362_p9 = scmp.lt.u32.totalorder %s5353_s29, %s6337_s12 }
  0xee   : > { %p5356_p10 = pnand %p5354_p11, %p6266_p4  ;;  %p5361_p6 = por %p5360_p2, %p5359_p13 }
  0xf0   : > { %p5357_p12 = pneg %p5356_p10  ;;  %p5363_p1 = por %p5362_p9, %p5361_p6 }
  0xf2   : > { %p5364_p5 = pnand %p5363_p1, %p5357_p12 }
  0xf4   : > { %5367 = shalt.err (!%p5364_p5)
}
  0xf5   : > { %s5368_s26 = scalar_lea.vmem %s813_s17, 16  ;;  %s5923_s10 = smov [#allocation15]  }
  0xf6   : > { %p5369_p7 = scmp.ne.s32.totalorder %s813_s17, %s5368_s26  ;;  %s5373_s19 = sshll.u32 %s5923_s10, 4  ;;  %s5374_s19 = int_to_ptr.vmem [resolvable:$false] %s5373_s19 }
  0xf7   : > { %s5375_s21 = scalar_lea.vmem %s5374_s19, 32  ;;  %p5376_p11 = scmp.lt.s32.totalorder %s813_s17, %s5374_s19 }
  0xf8   : > { %p5371_p8 = pnand %p5369_p7, %p6266_p4  ;;  %p5377_p10 = scmp.lt.s32.totalorder %s5375_s21, %s5368_s26 }
  0xfa   : > { %p5372_p3 = pneg %p5371_p8  ;;  %p5378_p0 = por %p5377_p10, %p5376_p11 }
  0xfc   : > { %p5379_p2 = pnand %p5378_p0, %p5372_p3 }
  0xfe   : > { %5382 = shalt.err (!%p5379_p2)
}
  0xff   : > { %p7801_p13 = scmp.ne.s32.totalorder %s7795_s1, 0  ;;  %s7802_s29 = scalar_lea.sflag [#allocation16], %s6232_s0 }
 0x100   : > { %s7803_s9 = sld [smem:[#allocation66_spill]]  ;;  %s840_s19 = scalar_lea.vmem [#allocation18], %s6241_s30 }
 0x101   : > { %4797 = dma.hbm_to_vmem [thread:$0]  (!%p7801_p13), %s6337_s12, 16, %s813_s17, %s7802_s29  }
 0x102   : > { %s847_s25 = sshll.u32 %s840_s19, 4  ;;  %s4262_s8 = sshll.u32 %s6235_s2, 6  ;;  %s6367_s25 = int_to_ptr.vmem [resolvable:$true] %s847_s25 }
 0x103   : > { %s7752_s26 = scalar_lea.sflag [#allocation19], %s6232_s0 }
 0x106   : > { %s6364_s6 = scalar_lea.hbm %s7803_s9, %s6244_s24  ;;  %s5388_s24 = scalar_lea.hbm %s7803_s9, 512 }
 0x107   : > { %s5383_s21 = scalar_lea.hbm %s6364_s6, 256  ;;  %p5389_p9 = scmp.lt.u32.totalorder %s6364_s6, %s7803_s9 }
 0x108   : > { %p5384_p0 = scmp.ne.s32.totalorder %s6364_s6, %s5383_s21  ;;  %p5390_p1 = scmp.lt.u32.totalorder %s5388_s24, %s5383_s21 }
 0x109   : > { %p5392_p7 = scmp.lt.u32.totalorder %s5383_s21, %s6364_s6 }
 0x10a   : > { %p5386_p12 = pnand %p5384_p0, %p6266_p4  ;;  %p5391_p5 = por %p5390_p1, %p5389_p9 }
 0x10c   : > { %p5387_p6 = pneg %p5386_p12  ;;  %p5393_p8 = por %p5392_p7, %p5391_p5 }
 0x10e   : > { %p5394_p3 = pnand %p5393_p8, %p5387_p6 }
 0x110   : > { %5397 = shalt.err (!%p5394_p3)
}
 0x111   : > { %s5398_s30 = scalar_lea.vmem %s6367_s25, 256  ;;  %s5924_s10 = smov [#allocation18]  }
 0x112   : > { %p5399_p11 = scmp.ne.s32.totalorder %s6367_s25, %s5398_s30  ;;  %s5403_s19 = sshll.u32 %s5924_s10, 4  ;;  %s5404_s19 = int_to_ptr.vmem [resolvable:$false] %s5403_s19 }
 0x113   : > { %s5405_s12 = scalar_lea.vmem %s5404_s19, 512  ;;  %p5406_p0 = scmp.lt.s32.totalorder %s6367_s25, %s5404_s19 }
 0x114   : > { %p5401_p10 = pnand %p5399_p11, %p6266_p4  ;;  %p5407_p12 = scmp.lt.s32.totalorder %s5405_s12, %s5398_s30 }
 0x116   : > { %p5402_p2 = pneg %p5401_p10  ;;  %p5408_p9 = por %p5407_p12, %p5406_p0 }
 0x118   : > { %p5409_p1 = pnand %p5408_p9, %p5402_p2 }
 0x11a   : > { %5412 = shalt.err (!%p5409_p1)
}
 0x11b   : > { %4803 = dma.hbm_to_vmem [thread:$0]  (!%p7801_p13), %s6364_s6, 256, %s6367_s25, %s7752_s26, %s7786_s14, %s7786_s14, %s7797_s22  }
 0x11c   : > { %s4369_s21 = sshll.u32 %s5909_s3, 10  ;;  %s7804_s11 = sld [smem:[#allocation68_spill]] }
 0x11d   : > { %s878_s15 = scalar_lea.vmem [#allocation21], %s4262_s8  ;;  %s7751_s10 = scalar_lea.sflag [#allocation22], %s6232_s0 }
 0x11e   : > { %s885_s30 = sshll.u32 %s878_s15, 4  ;;  %s6405_s30 = int_to_ptr.vmem [resolvable:$true] %s885_s30 }
 0x122   : > { %s6401_s29 = scalar_lea.hbm %s7804_s11, %s4369_s21  ;;  %s5418_s12 = scalar_lea.hbm %s7804_s11, 2048 }
 0x123   : > { %s5413_s19 = scalar_lea.hbm %s6401_s29, 1024  ;;  %p5419_p8 = scmp.lt.u32.totalorder %s6401_s29, %s7804_s11 }
 0x124   : > { %p5414_p6 = scmp.ne.s32.totalorder %s6401_s29, %s5413_s19  ;;  %p5420_p3 = scmp.lt.u32.totalorder %s5418_s12, %s5413_s19 }
 0x125   : > { %p5422_p10 = scmp.lt.u32.totalorder %s5413_s19, %s6401_s29 }
 0x126   : > { %p5416_p5 = pnand %p5414_p6, %p6266_p4  ;;  %p5421_p11 = por %p5420_p3, %p5419_p8 }
 0x128   : > { %p5417_p7 = pneg %p5416_p5  ;;  %p5423_p2 = por %p5422_p10, %p5421_p11 }
 0x12a   : > { %p5424_p0 = pnand %p5423_p2, %p5417_p7 }
 0x12c   : > { %5427 = shalt.err (!%p5424_p0)
}
 0x12d   : > { %s5428_s8 = scalar_lea.vmem %s6405_s30, 1024  ;;  %s5925_s24 = smov [#allocation21]  }
 0x12e   : > { %p5429_p12 = scmp.ne.s32.totalorder %s6405_s30, %s5428_s8  ;;  %s5433_s15 = sshll.u32 %s5925_s24, 4  ;;  %s5434_s15 = int_to_ptr.vmem [resolvable:$false] %s5433_s15 }
 0x12f   : > { %s5435_s6 = scalar_lea.vmem %s5434_s15, 2048  ;;  %p5436_p6 = scmp.lt.s32.totalorder %s6405_s30, %s5434_s15 }
 0x130   : > { %p5431_p9 = pnand %p5429_p12, %p6266_p4  ;;  %p5437_p5 = scmp.lt.s32.totalorder %s5435_s6, %s5428_s8 }
 0x132   : > { %p5432_p1 = pneg %p5431_p9  ;;  %p5438_p8 = por %p5437_p5, %p5436_p6 }
 0x134   : > { %p5439_p3 = pnand %p5438_p8, %p5432_p1 }
 0x136   : > { %5442 = shalt.err (!%p5439_p3)
}
 0x137   : > { %4809 = dma.hbm_to_vmem [thread:$0]  (!%p7801_p13), %s6401_s29, 1024, %s6405_s30, %s7751_s10, %s7786_s14, %s7786_s14, %s7797_s22  }
 0x138   : > { %s6438_s12 = scalar_lea.hbm %s7704_s13, %s6304_s28  ;;  %s915_s21 = scalar_lea.vmem [#allocation24], %s6235_s2 }
 0x139   : > { %s922_s17 = sshll.u32 %s915_s21, 4  ;;  %s7750_s8 = scalar_lea.sflag [#allocation25], %s6232_s0  ;;  %s923_s17 = int_to_ptr.vmem [resolvable:$true] %s922_s17 }
 0x13a   : > { %s5443_s24 = scalar_lea.hbm %s6438_s12, 16  ;;  %s5448_s22 = scalar_lea.hbm %s7704_s13, 32 }
 0x13b   : > { %p5444_p7 = scmp.ne.s32.totalorder %s6438_s12, %s5443_s24  ;;  %p5449_p2 = scmp.lt.u32.totalorder %s6438_s12, %s7704_s13 }
 0x13c   : > { %p5450_p0 = scmp.lt.u32.totalorder %s5448_s22, %s5443_s24  ;;  %p5452_p9 = scmp.lt.u32.totalorder %s5443_s24, %s6438_s12 }
 0x13d   : > { %p5446_p11 = pnand %p5444_p7, %p6266_p4 }
 0x13e   : > { %p5451_p12 = por %p5450_p0, %p5449_p2 }
 0x13f   : > { %p5447_p10 = pneg %p5446_p11 }
 0x140   : > { %p5453_p1 = por %p5452_p9, %p5451_p12 }
 0x142   : > { %p5454_p6 = pnand %p5453_p1, %p5447_p10 }
 0x144   : > { %5457 = shalt.err (!%p5454_p6)
}
 0x145   : > { %s5458_s6 = scalar_lea.vmem %s923_s17, 16  ;;  %s5926_s19 = smov [#allocation24]  }
 0x146   : > { %p5459_p5 = scmp.ne.s32.totalorder %s923_s17, %s5458_s6  ;;  %s5463_s25 = sshll.u32 %s5926_s19, 4  ;;  %s5464_s25 = int_to_ptr.vmem [resolvable:$false] %s5463_s25 }
 0x147   : > { %s5465_s21 = scalar_lea.vmem %s5464_s25, 32  ;;  %p5466_p7 = scmp.lt.s32.totalorder %s923_s17, %s5464_s25 }
 0x148   : > { %p5461_p8 = pnand %p5459_p5, %p6266_p4  ;;  %p5467_p11 = scmp.lt.s32.totalorder %s5465_s21, %s5458_s6 }
 0x14a   : > { %p5462_p3 = pneg %p5461_p8  ;;  %p5468_p13 = por %p5467_p11, %p5466_p7 }
 0x14c   : > { %p5469_p0 = pnand %p5468_p13, %p5462_p3 }
 0x14e   : > { %5472 = shalt.err (!%p5469_p0)
}
 0x14f   : > { %p7805_p2 = scmp.ne.s32.totalorder %s7795_s1, 0  ;;  %s5927_s24 = smov [#allocation3]  }
 0x150   : > { %s620_s15 = sshll.u32 %s5927_s24, 4  ;;  %s7806_s29 = sld [smem:[#allocation57_spill]]  ;;  %s621_s15 = int_to_ptr.vmem [resolvable:$true] %s620_s15 }
 0x151   : > { %4815 = dma.hbm_to_vmem [thread:$0]  (!%p7805_p2), %s6438_s12, 16, %s923_s17, %s7750_s8  }
 0x152   : > { %p7807_p13 = scmp.ne.s32.totalorder %s7782_s5, 0 }
 0x156   : > { %s5473_s30 = scalar_lea.hbm %s7806_s29, 1024 }
 0x157   : > { %p5474_p10 = scmp.ne.s32.totalorder %s7806_s29, %s5473_s30  ;;  %p5480_p1 = scmp.lt.u32.totalorder %s5473_s30, %s7806_s29 }
 0x159   : > { %p5476_p12 = pnand %p5474_p10, %p7807_p13 }
 0x15b   : > { %p5477_p9 = pneg %p5476_p12 }
 0x15d   : > { %p5482_p6 = pnand %p5480_p1, %p5477_p9 }
 0x15f   : > { %5485 = shalt.err (!%p5482_p6)
}
 0x160   : > { %s5486_s12 = scalar_lea.vmem %s621_s15, 1024  ;;  %p5494_p7 = scmp.lt.s32.totalorder %s621_s15, %s621_s15 }
 0x161   : > { %p5487_p5 = scmp.ne.s32.totalorder %s621_s15, %s5486_s12  ;;  %p5495_p11 = scmp.lt.s32.totalorder %s5486_s12, %s5486_s12 }
 0x163   : > { %p5489_p8 = pnand %p5487_p5, %p7807_p13  ;;  %p5496_p0 = por %p5495_p11, %p5494_p7 }
 0x165   : > { %p5490_p3 = pneg %p5489_p8 }
 0x167   : > { %p5497_p2 = pnand %p5496_p0, %p5490_p3 }
 0x169   : > { %5500 = shalt.err (!%p5497_p2)
}
 0x16a   : > { %s5928_s17 = smov 128   ;;  %s5929_s24 = smov 8  }
 0x16b   : > { %p7808_p10 = scmp.ne.s32.totalorder %s7779_s23, 0  ;;  %s5930_s30 = smov [#allocation8]  }
 0x16c   : > { %s645_s19 = sshll.u32 %s5930_s30, 4  ;;  %s5931_s25 = smov [#allocation29]   ;;  %s646_s19 = int_to_ptr.vmem [resolvable:$true] %s645_s19 }
 0x16d   : > { %4757 = dma.hbm_to_vmem [thread:$0]  (!%p7808_p10), %s7806_s29, 1024, %s621_s15, [#allocation4], %s5928_s17, %s5928_s17, %s5929_s24  }
 0x16e   : > { %s669_s6 = sshll.u32 %s5931_s25, 4  ;;  %s7809_s12 = sld [smem:[#allocation59_spill]]  ;;  %s670_s6 = int_to_ptr.vmem [resolvable:$true] %s669_s6 }
 0x174   : > { %s5501_s10 = scalar_lea.hbm %s7809_s12, 16 }
 0x175   : > { %p5502_p2 = scmp.ne.s32.totalorder %s7809_s12, %s5501_s10  ;;  %p5508_p1 = scmp.lt.u32.totalorder %s5501_s10, %s7809_s12 }
 0x177   : > { %p5504_p12 = pnand %p5502_p2, %p7807_p13 }
 0x179   : > { %p5505_p9 = pneg %p5504_p12 }
 0x17b   : > { %p5510_p6 = pnand %p5508_p1, %p5505_p9 }
 0x17d   : > { %5513 = shalt.err (!%p5510_p6)
}
 0x17e   : > { %s5514_s15 = scalar_lea.vmem %s646_s19, 16  ;;  %s5521_s8 = scalar_lea.vmem %s646_s19, 32 }
 0x17f   : > { %p5515_p5 = scmp.ne.s32.totalorder %s646_s19, %s5514_s15  ;;  %p5522_p7 = scmp.lt.s32.totalorder %s646_s19, %s646_s19 }
 0x180   : > { %p5523_p11 = scmp.lt.s32.totalorder %s5521_s8, %s5514_s15 }
 0x181   : > { %p5517_p8 = pnand %p5515_p5, %p7807_p13 }
 0x182   : > { %p5524_p0 = por %p5523_p11, %p5522_p7 }
 0x183   : > { %p5518_p3 = pneg %p5517_p8 }
 0x185   : > { %p5525_p4 = pnand %p5524_p0, %p5518_p3 }
 0x187   : > { %5528 = shalt.err (!%p5525_p4)
}
 0x188   : > { %4763 = dma.hbm_to_vmem [thread:$0]  (!%p7808_p10), %s7809_s12, 16, %s646_s19, [#allocation7]  }
 0x189   : > { %s5529_s10 = scalar_lea.hbm %s7707_s16, 16 }
 0x18a   : > { %p5530_p2 = scmp.ne.s32.totalorder %s7707_s16, %s5529_s10  ;;  %p5536_p4 = scmp.lt.u32.totalorder %s5529_s10, %s7707_s16 }
 0x18c   : > { %p5532_p12 = pnand %p5530_p2, %p7807_p13 }
 0x18e   : > { %p5533_p9 = pneg %p5532_p12 }
 0x190   : > { %p5538_p1 = pnand %p5536_p4, %p5533_p9 }
 0x192   : > { %5541 = shalt.err (!%p5538_p1)
}
 0x193   : > { %s5542_s30 = scalar_lea.vmem %s670_s6, 16  ;;  %s5549_s19 = scalar_lea.vmem %s670_s6, 32 }
 0x194   : > { %p5543_p6 = scmp.ne.s32.totalorder %s670_s6, %s5542_s30  ;;  %p5550_p3 = scmp.lt.s32.totalorder %s670_s6, %s670_s6 }
 0x195   : > { %p5551_p7 = scmp.lt.s32.totalorder %s5549_s19, %s5542_s30 }
 0x196   : > { %p5545_p5 = pnand %p5543_p6, %p7807_p13 }
 0x197   : > { %p5552_p11 = por %p5551_p7, %p5550_p3 }
 0x198   : > { %p5546_p8 = pneg %p5545_p5 }
 0x19a   : > { %p5553_p0 = pnand %p5552_p11, %p5546_p8 }
 0x19c   : > { %5556 = shalt.err (!%p5553_p0)
}
 0x19d   : > { %4769 = dma.hbm_to_vmem [thread:$0]  (!%p7808_p10), %s7707_s16, 16, %s670_s6, [#allocation28]  }
 0x19e   : > { %s5932_s15 = smov [#allocation32]   ;;  %s5933_s7 = smov [#allocation35]  }
 0x19f   : > { %s691_s8 = sshll.u32 %s5932_s15, 4  ;;  %s715_s26 = sshll.u32 %s5933_s7, 4  ;;  %s692_s8 = int_to_ptr.vmem [resolvable:$true] %s691_s8  ;;  %s716_s26 = int_to_ptr.vmem [resolvable:$true] %s715_s26 }
 0x1a0   : > { %s5557_s10 = scalar_lea.hbm %s7709_s18, 16 }
 0x1a1   : > { %p5558_p2 = scmp.ne.s32.totalorder %s7709_s18, %s5557_s10  ;;  %p5564_p4 = scmp.lt.u32.totalorder %s5557_s10, %s7709_s18 }
 0x1a3   : > { %p5560_p12 = pnand %p5558_p2, %p7807_p13 }
 0x1a5   : > { %p5561_p9 = pneg %p5560_p12 }
 0x1a7   : > { %p5566_p1 = pnand %p5564_p4, %p5561_p9 }
 0x1a9   : > { %5569 = shalt.err (!%p5566_p1)
}
 0x1aa   : > { %s5570_s6 = scalar_lea.vmem %s692_s8, 16  ;;  %s5577_s30 = scalar_lea.vmem %s692_s8, 32 }
 0x1ab   : > { %p5571_p6 = scmp.ne.s32.totalorder %s692_s8, %s5570_s6  ;;  %p5578_p3 = scmp.lt.s32.totalorder %s692_s8, %s692_s8 }
 0x1ac   : > { %p5579_p7 = scmp.lt.s32.totalorder %s5577_s30, %s5570_s6 }
 0x1ad   : > { %p5573_p5 = pnand %p5571_p6, %p7807_p13 }
 0x1ae   : > { %p5580_p11 = por %p5579_p7, %p5578_p3 }
 0x1af   : > { %p5574_p8 = pneg %p5573_p5 }
 0x1b1   : > { %p5581_p0 = pnand %p5580_p11, %p5574_p8 }
 0x1b3   : > { %5584 = shalt.err (!%p5581_p0)
}
 0x1b4   : > { %4775 = dma.hbm_to_vmem [thread:$0]  (!%p7808_p10), %s7709_s18, 16, %s692_s8, [#allocation31]  }
 0x1b5   : > { %s5585_s7 = scalar_lea.hbm %s7711_s20, 16 }
 0x1b6   : > { %p5586_p2 = scmp.ne.s32.totalorder %s7711_s20, %s5585_s7  ;;  %p5592_p4 = scmp.lt.u32.totalorder %s5585_s7, %s7711_s20 }
 0x1b8   : > { %p5588_p12 = pnand %p5586_p2, %p7807_p13 }
 0x1ba   : > { %p5589_p9 = pneg %p5588_p12 }
 0x1bc   : > { %p5594_p1 = pnand %p5592_p4, %p5589_p9 }
 0x1be   : > { %5597 = shalt.err (!%p5594_p1)
}
 0x1bf   : > { %s5598_s24 = scalar_lea.vmem %s716_s26, 16  ;;  %s5605_s8 = scalar_lea.vmem %s716_s26, 32 }
 0x1c0   : > { %p5599_p6 = scmp.ne.s32.totalorder %s716_s26, %s5598_s24  ;;  %p5606_p3 = scmp.lt.s32.totalorder %s716_s26, %s716_s26 }
 0x1c1   : > { %p5607_p7 = scmp.lt.s32.totalorder %s5605_s8, %s5598_s24 }
 0x1c2   : > { %p5601_p5 = pnand %p5599_p6, %p7807_p13 }
 0x1c3   : > { %p5608_p11 = por %p5607_p7, %p5606_p3 }
 0x1c4   : > { %p5602_p8 = pneg %p5601_p5 }
 0x1c6   : > { %p5609_p0 = pnand %p5608_p11, %p5602_p8 }
 0x1c8   : > { %5612 = shalt.err (!%p5609_p0)
}
 0x1c9   : > { %4781 = dma.hbm_to_vmem [thread:$0]  (!%p7808_p10), %s7711_s20, 16, %s716_s26, [#allocation34]  }
 0x1ca   : > { %s7810_s5 = sld [smem:[#allocation61_spill]]  ;;  %s750_s25 = scalar_lea.vmem [#allocation11], %s6235_s2 }
 0x1cb   : > { %s757_s21 = sshll.u32 %s750_s25, 4  ;;  %p7811_p2 = scmp.ne.s32.totalorder %s7796_s27, 0  ;;  %s758_s21 = int_to_ptr.vmem [resolvable:$true] %s757_s21 }
 0x1d0   : > { %s6555_s19 = scalar_lea.hbm %s7810_s5, %s6304_s28  ;;  %s5618_s26 = scalar_lea.hbm %s7810_s5, 32 }
 0x1d1   : > { %s5613_s23 = scalar_lea.hbm %s6555_s19, 16  ;;  %p5619_p10 = scmp.lt.u32.totalorder %s6555_s19, %s7810_s5 }
 0x1d2   : > { %p5614_p13 = scmp.ne.s32.totalorder %s6555_s19, %s5613_s23  ;;  %p5620_p4 = scmp.lt.u32.totalorder %s5618_s26, %s5613_s23 }
 0x1d3   : > { %p5622_p6 = scmp.lt.u32.totalorder %s5613_s23, %s6555_s19 }
 0x1d4   : > { %p5616_p12 = pnand %p5614_p13, %p7811_p2  ;;  %p5621_p1 = por %p5620_p4, %p5619_p10 }
 0x1d6   : > { %p5617_p9 = pneg %p5616_p12  ;;  %p5623_p5 = por %p5622_p6, %p5621_p1 }
 0x1d8   : > { %p5624_p8 = pnand %p5623_p5, %p5617_p9 }
 0x1da   : > { %5627 = shalt.err (!%p5624_p8)
}
 0x1db   : > { %s5628_s10 = scalar_lea.vmem %s758_s21, 16  ;;  %s5934_s17 = smov [#allocation11]  }
 0x1dc   : > { %p5629_p3 = scmp.ne.s32.totalorder %s758_s21, %s5628_s10  ;;  %s5633_s24 = sshll.u32 %s5934_s17, 4  ;;  %s5634_s24 = int_to_ptr.vmem [resolvable:$false] %s5633_s24 }
 0x1dd   : > { %s5635_s8 = scalar_lea.vmem %s5634_s24, 32  ;;  %p5636_p0 = scmp.lt.s32.totalorder %s758_s21, %s5634_s24 }
 0x1de   : > { %p5631_p7 = pnand %p5629_p3, %p7811_p2  ;;  %p5637_p13 = scmp.lt.s32.totalorder %s5635_s8, %s5628_s10 }
 0x1e0   : > { %p5632_p11 = pneg %p5631_p7  ;;  %p5638_p12 = por %p5637_p13, %p5636_p0 }
 0x1e2   : > { %p5639_p4 = pnand %p5638_p12, %p5632_p11 }
 0x1e4   : > { %5642 = shalt.err (!%p5639_p4)
}
 0x1e5   : > { %p7812_p10 = scmp.ne.s32.totalorder %s7795_s1, 0  ;;  %s7813_s14 = scalar_lea.sflag [#allocation10], %s6232_s0 }
 0x1e6   : > { %s7814_s30 = sld [smem:[#allocation63_spill]]  ;;  %s788_s23 = scalar_lea.vmem [#allocation14], %s6235_s2 }
 0x1e7   : > { %4788 = dma.hbm_to_vmem [thread:$0]  (!%p7812_p10), %s6555_s19, 16, %s758_s21, %s7813_s14  }
 0x1e8   : > { %s795_s15 = sshll.u32 %s788_s23, 4  ;;  %s796_s15 = int_to_ptr.vmem [resolvable:$true] %s795_s15 }
 0x1ec   : > { %s6581_s25 = scalar_lea.hbm %s7814_s30, %s6304_s28  ;;  %s5648_s19 = scalar_lea.hbm %s7814_s30, 32 }
 0x1ed   : > { %s5643_s7 = scalar_lea.hbm %s6581_s25, 16  ;;  %p5649_p5 = scmp.lt.u32.totalorder %s6581_s25, %s7814_s30 }
 0x1ee   : > { %p5644_p9 = scmp.ne.s32.totalorder %s6581_s25, %s5643_s7  ;;  %p5650_p8 = scmp.lt.u32.totalorder %s5648_s19, %s5643_s7 }
 0x1ef   : > { %p5652_p7 = scmp.lt.u32.totalorder %s5643_s7, %s6581_s25 }
 0x1f0   : > { %p5646_p1 = pnand %p5644_p9, %p7811_p2  ;;  %p5651_p3 = por %p5650_p8, %p5649_p5 }
 0x1f2   : > { %p5647_p6 = pneg %p5646_p1  ;;  %p5653_p11 = por %p5652_p7, %p5651_p3 }
 0x1f4   : > { %p5654_p0 = pnand %p5653_p11, %p5647_p6 }
 0x1f6   : > { %5657 = shalt.err (!%p5654_p0)
}
 0x1f7   : > { %s5658_s10 = scalar_lea.vmem %s796_s15, 16  ;;  %s5935_s17 = smov [#allocation14]  }
 0x1f8   : > { %p5659_p13 = scmp.ne.s32.totalorder %s796_s15, %s5658_s10  ;;  %s5663_s24 = sshll.u32 %s5935_s17, 4  ;;  %s5664_s24 = int_to_ptr.vmem [resolvable:$false] %s5663_s24 }
 0x1f9   : > { %s5665_s8 = scalar_lea.vmem %s5664_s24, 32  ;;  %p5666_p9 = scmp.lt.s32.totalorder %s796_s15, %s5664_s24 }
 0x1fa   : > { %p5661_p12 = pnand %p5659_p13, %p7811_p2  ;;  %p5667_p1 = scmp.lt.s32.totalorder %s5665_s8, %s5658_s10 }
 0x1fc   : > { %p5662_p4 = pneg %p5661_p12  ;;  %p5668_p10 = por %p5667_p1, %p5666_p9 }
 0x1fe   : > { %p5669_p5 = pnand %p5668_p10, %p5662_p4 }
 0x200   : > { %5672 = shalt.err (!%p5669_p5)
}
 0x201   : > { %p7815_p8 = scmp.ne.s32.totalorder %s7795_s1, 0  ;;  %s7816_s14 = scalar_lea.sflag [#allocation13], %s6232_s0 }
 0x202   : > { %s7817_s23 = sld [smem:[#allocation65_spill]]  ;;  %s822_s26 = scalar_lea.vmem [#allocation17], %s6235_s2 }
 0x203   : > { %4794 = dma.hbm_to_vmem [thread:$0]  (!%p7815_p8), %s6581_s25, 16, %s796_s15, %s7816_s14  }
 0x204   : > { %s829_s9 = sshll.u32 %s822_s26, 4  ;;  %s830_s9 = int_to_ptr.vmem [resolvable:$true] %s829_s9 }
 0x208   : > { %s6607_s7 = scalar_lea.hbm %s7817_s23, %s6304_s28  ;;  %s5678_s25 = scalar_lea.hbm %s7817_s23, 32 }
 0x209   : > { %s5673_s19 = scalar_lea.hbm %s6607_s7, 16  ;;  %p5679_p7 = scmp.lt.u32.totalorder %s6607_s7, %s7817_s23 }
 0x20a   : > { %p5674_p10 = scmp.ne.s32.totalorder %s6607_s7, %s5673_s19  ;;  %p5680_p11 = scmp.lt.u32.totalorder %s5678_s25, %s5673_s19 }
 0x20b   : > { %p5682_p13 = scmp.lt.u32.totalorder %s5673_s19, %s6607_s7 }
 0x20c   : > { %p5676_p6 = pnand %p5674_p10, %p7811_p2  ;;  %p5681_p0 = por %p5680_p11, %p5679_p7 }
 0x20e   : > { %p5677_p3 = pneg %p5676_p6  ;;  %p5683_p12 = por %p5682_p13, %p5681_p0 }
 0x210   : > { %p5684_p4 = pnand %p5683_p12, %p5677_p3 }
 0x212   : > { %5687 = shalt.err (!%p5684_p4)
}
 0x213   : > { %s5688_s17 = scalar_lea.vmem %s830_s9, 16  ;;  %s5936_s24 = smov [#allocation17]  }
 0x214   : > { %p5689_p9 = scmp.ne.s32.totalorder %s830_s9, %s5688_s17  ;;  %s5693_s8 = sshll.u32 %s5936_s24, 4  ;;  %s5694_s8 = int_to_ptr.vmem [resolvable:$false] %s5693_s8 }
 0x215   : > { %s5695_s14 = scalar_lea.vmem %s5694_s8, 32  ;;  %p5696_p10 = scmp.lt.s32.totalorder %s830_s9, %s5694_s8 }
 0x216   : > { %p5691_p1 = pnand %p5689_p9, %p7811_p2  ;;  %p5697_p6 = scmp.lt.s32.totalorder %s5695_s14, %s5688_s17 }
 0x218   : > { %p5692_p5 = pneg %p5691_p1  ;;  %p5698_p8 = por %p5697_p6, %p5696_p10 }
 0x21a   : > { %p5699_p7 = pnand %p5698_p8, %p5692_p5 }
 0x21c   : > { %5702 = shalt.err (!%p5699_p7)
}
 0x21d   : > { %p7818_p11 = scmp.ne.s32.totalorder %s7795_s1, 0  ;;  %s7819_s22 = scalar_lea.sflag [#allocation16], %s6232_s0 }
 0x21e   : > { %s7820_s19 = sld [smem:[#allocation67_spill]]  ;;  %s860_s11 = scalar_lea.vmem [#allocation20], %s6235_s2 }
 0x21f   : > { %4800 = dma.hbm_to_vmem [thread:$0]  (!%p7818_p11), %s6607_s7, 16, %s830_s9, %s7819_s22  }
 0x220   : > { %s867_s25 = sshll.u32 %s860_s11, 4  ;;  %s868_s25 = int_to_ptr.vmem [resolvable:$true] %s867_s25 }
 0x224   : > { %s6633_s21 = scalar_lea.hbm %s7820_s19, %s6304_s28  ;;  %s5708_s7 = scalar_lea.hbm %s7820_s19, 32 }
 0x225   : > { %s5703_s15 = scalar_lea.hbm %s6633_s21, 16  ;;  %p5709_p13 = scmp.lt.u32.totalorder %s6633_s21, %s7820_s19 }
 0x226   : > { %p5704_p8 = scmp.ne.s32.totalorder %s6633_s21, %s5703_s15  ;;  %p5710_p12 = scmp.lt.u32.totalorder %s5708_s7, %s5703_s15 }
 0x227   : > { %p5712_p9 = scmp.lt.u32.totalorder %s5703_s15, %s6633_s21 }
 0x228   : > { %p5706_p3 = pnand %p5704_p8, %p7811_p2  ;;  %p5711_p4 = por %p5710_p12, %p5709_p13 }
 0x22a   : > { %p5707_p0 = pneg %p5706_p3  ;;  %p5713_p1 = por %p5712_p9, %p5711_p4 }
 0x22c   : > { %p5714_p5 = pnand %p5713_p1, %p5707_p0 }
 0x22e   : > { %5717 = shalt.err (!%p5714_p5)
}
 0x22f   : > { %s5718_s8 = scalar_lea.vmem %s868_s25, 16  ;;  %s5937_s14 = smov [#allocation20]  }
 0x230   : > { %p5719_p10 = scmp.ne.s32.totalorder %s868_s25, %s5718_s8  ;;  %s5723_s22 = sshll.u32 %s5937_s14, 4  ;;  %s5724_s22 = int_to_ptr.vmem [resolvable:$false] %s5723_s22 }
 0x231   : > { %s5725_s6 = scalar_lea.vmem %s5724_s22, 32  ;;  %p5726_p8 = scmp.lt.s32.totalorder %s868_s25, %s5724_s22 }
 0x232   : > { %p5721_p6 = pnand %p5719_p10, %p7811_p2  ;;  %p5727_p3 = scmp.lt.s32.totalorder %s5725_s6, %s5718_s8 }
 0x234   : > { %p5722_p7 = pneg %p5721_p6  ;;  %p5728_p11 = por %p5727_p3, %p5726_p8 }
 0x236   : > { %p5729_p12 = pnand %p5728_p11, %p5722_p7 }
 0x238   : > { %5732 = shalt.err (!%p5729_p12)
}
 0x239   : > { %p7821_p13 = scmp.ne.s32.totalorder %s7795_s1, 0  ;;  %s7822_s26 = scalar_lea.sflag [#allocation19], %s6232_s0 }
 0x23a   : > { %s7823_s10 = sld [smem:[#allocation69_spill]]  ;;  %s898_s7 = scalar_lea.vmem [#allocation23], %s6235_s2 }
 0x23b   : > { %4806 = dma.hbm_to_vmem [thread:$0]  (!%p7821_p13), %s6633_s21, 16, %s868_s25, %s7822_s26  }
 0x23c   : > { %s905_s9 = sshll.u32 %s898_s7, 4  ;;  %s906_s9 = int_to_ptr.vmem [resolvable:$true] %s905_s9 }
 0x240   : > { %s6659_s17 = scalar_lea.hbm %s7823_s10, %s6304_s28  ;;  %s5738_s21 = scalar_lea.hbm %s7823_s10, 32 }
 0x241   : > { %s5733_s24 = scalar_lea.hbm %s6659_s17, 16  ;;  %p5739_p9 = scmp.lt.u32.totalorder %s6659_s17, %s7823_s10 }
 0x242   : > { %p5734_p11 = scmp.ne.s32.totalorder %s6659_s17, %s5733_s24  ;;  %p5740_p1 = scmp.lt.u32.totalorder %s5738_s21, %s5733_s24 }
 0x243   : > { %p5742_p10 = scmp.lt.u32.totalorder %s5733_s24, %s6659_s17 }
 0x244   : > { %p5736_p0 = pnand %p5734_p11, %p7811_p2  ;;  %p5741_p5 = por %p5740_p1, %p5739_p9 }
 0x246   : > { %p5737_p4 = pneg %p5736_p0  ;;  %p5743_p6 = por %p5742_p10, %p5741_p5 }
 0x248   : > { %p5744_p7 = pnand %p5743_p6, %p5737_p4 }
 0x24a   : > { %5747 = shalt.err (!%p5744_p7)
}
 0x24b   : > { %s5748_s6 = scalar_lea.vmem %s906_s9, 16  ;;  %s5938_s26 = smov [#allocation23]  }
 0x24c   : > { %p5749_p8 = scmp.ne.s32.totalorder %s906_s9, %s5748_s6  ;;  %s5753_s11 = sshll.u32 %s5938_s26, 4  ;;  %s5754_s11 = int_to_ptr.vmem [resolvable:$false] %s5753_s11 }
 0x24d   : > { %s5755_s15 = scalar_lea.vmem %s5754_s11, 32  ;;  %p5756_p11 = scmp.lt.s32.totalorder %s906_s9, %s5754_s11 }
 0x24e   : > { %p5751_p3 = pnand %p5749_p8, %p7811_p2  ;;  %p5757_p0 = scmp.lt.s32.totalorder %s5755_s15, %s5748_s6 }
 0x250   : > { %p5752_p12 = pneg %p5751_p3  ;;  %p5758_p13 = por %p5757_p0, %p5756_p11 }
 0x252   : > { %p5759_p1 = pnand %p5758_p13, %p5752_p12 }
 0x254   : > { %5762 = shalt.err (!%p5759_p1)
}
 0x255   : > { %p7824_p9 = scmp.ne.s32.totalorder %s7795_s1, 0  ;;  %s7825_s7 = scalar_lea.sflag [#allocation22], %s6232_s0 }
 0x256   : > { %s7826_s14 = sld [smem:[#allocation70_spill]]  ;;  %s932_s25 = scalar_lea.vmem [#allocation26], %s6235_s2 }
 0x257   : > { %4812 = dma.hbm_to_vmem [thread:$0]  (!%p7824_p9), %s6659_s17, 16, %s906_s9, %s7825_s7  }
 0x258   : > { %s939_s22 = sshll.u32 %s932_s25, 4  ;;  %s940_s22 = int_to_ptr.vmem [resolvable:$true] %s939_s22 }
 0x25c   : > { %s6685_s21 = scalar_lea.hbm %s7826_s14, %s6304_s28  ;;  %s5768_s17 = scalar_lea.hbm %s7826_s14, 32 }
 0x25d   : > { %s5763_s6 = scalar_lea.hbm %s6685_s21, 16  ;;  %p5769_p10 = scmp.lt.u32.totalorder %s6685_s21, %s7826_s14 }
 0x25e   : > { %p5764_p13 = scmp.ne.s32.totalorder %s6685_s21, %s5763_s6  ;;  %p5770_p6 = scmp.lt.u32.totalorder %s5768_s17, %s5763_s6 }
 0x25f   : > { %p5772_p8 = scmp.lt.u32.totalorder %s5763_s6, %s6685_s21 }
 0x260   : > { %p5766_p4 = pnand %p5764_p13, %p7811_p2  ;;  %p5771_p7 = por %p5770_p6, %p5769_p10 }
 0x262   : > { %p5767_p5 = pneg %p5766_p4  ;;  %p5773_p3 = por %p5772_p8, %p5771_p7 }
 0x264   : > { %p5774_p12 = pnand %p5773_p3, %p5767_p5 }
 0x266   : > { %5777 = shalt.err (!%p5774_p12)
}
 0x267   : > { %s5778_s28 = scalar_lea.vmem %s940_s22, 16  ;;  %s5939_s2 = smov [#allocation26]  }
 0x268   : > { %p5779_p11 = scmp.ne.s32.totalorder %s940_s22, %s5778_s28  ;;  %s5783_s7 = sshll.u32 %s5939_s2, 4  ;;  %s5784_s7 = int_to_ptr.vmem [resolvable:$false] %s5783_s7 }
 0x269   : > { %s5785_s24 = scalar_lea.vmem %s5784_s7, 32  ;;  %p5786_p13 = scmp.lt.s32.totalorder %s940_s22, %s5784_s7 }
 0x26a   : > { %p5781_p0 = pnand %p5779_p11, %p7811_p2  ;;  %p5787_p4 = scmp.lt.s32.totalorder %s5785_s24, %s5778_s28 }
 0x26c   : > { %p5782_p1 = pneg %p5781_p0  ;;  %p5788_p9 = por %p5787_p4, %p5786_p13 }
 0x26e   : > { %p5789_p6 = pnand %p5788_p9, %p5782_p1 }
 0x270   : > { %5792 = shalt.err (!%p5789_p6)
}
 0x271   : > { %p7827_p10 = scmp.ne.s32.totalorder %s7795_s1, 0  ;;  %s7828_s8 = scalar_lea.sflag [#allocation25], %s6232_s0 }
 0x272   : > { %s7829_s25 = sld [smem:[#allocation53_spill]] }
 0x273   : > { %4818 = dma.hbm_to_vmem [thread:$0]  (!%p7827_p10), %s6685_s21, 16, %s940_s22, %s7828_s8  }
 0x278   : > { %p7830_p5 = scmp.ne.s32.totalorder %s7829_s25, 0 }
 0x279   : > { %p7831_p2 = scmp.eq.s32.totalorder (!%p7830_p5), %s6093_s4, 0 }
 0x27a   : > { %948 = sbr.rel (%p7830_p5) target bundleno = 4563 (0x11d3), region = 104 }
 0x281   : > { %5844 = dma.done.wait (%p7831_p2), [#allocation4], 1024   ;;  %p7832_p7 = pmov %p7831_p2 }
 0x282   : > { %p7833_p8 = pmov %p7831_p2 }
 0x283   : > { %5846 = vsyncadd (%p7832_p7), [#allocation4], 4294966272 }
 0x284   : > { %5848 = dma.done.wait (%p7833_p8), [#allocation7], 32   ;;  %p7834_p9 = pmov %p7831_p2 }
 0x285   : > { %s7835_s1 = sld [smem:[#allocation49_spill]]  ;;  %s7836_s0 = sld [smem:[#allocation55_spill]] }
 0x286   : > { %5850 = vsyncadd (%p7834_p9), [#allocation7], 4294967264  ;;  %s6718_s27 = sand.u32 1, %s6093_s4  }
 0x287   : > { %s963_s6 = scalar_lea.sflag [#allocation10], %s6718_s27 }
 0x28b   : > { %s6721_s21 = sand.u32 1, %s7835_s1   ;;  %p7837_p3 = scmp.ne.s32.totalorder %s7836_s0, 0 }
 0x28c   : > { %s6724_s22 = sshll.u32 %s6721_s21, 4 }
 0x28d   : > { %s966_s26 = scalar_lea.vmem [#allocation9], %s6724_s22 }
 0x28e   : > { %5852 = dma.done.wait (%p7837_p3), %s963_s6, 272  }
 0x28f   : > { %5854 = vsyncadd (%p7837_p3), %s963_s6, 4294967024  ;;  %s974_s11 = scalar_lea.vmem [#allocation11], %s6721_s21  ;;  %s980_s17 = scalar_lea.sflag [#allocation13], %s6718_s27 }
 0x290   : > { %s983_s9 = scalar_lea.vmem [#allocation12], %s6724_s22 }
 0x291   : > { %5856 = dma.done.wait (%p7837_p3), %s980_s17, 272  }
 0x292   : > { %5858 = vsyncadd (%p7837_p3), %s980_s17, 4294967024  ;;  %s991_s15 = scalar_lea.vmem [#allocation14], %s6721_s21  ;;  %s997_s28 = scalar_lea.sflag [#allocation16], %s6718_s27 }
 0x293   : > { %s999_s2 = scalar_lea.vmem [#allocation15], %s6721_s21 }
 0x294   : > { %5860 = dma.done.wait (%p7837_p3), %s997_s28, 32  }
 0x295   : > { %5862 = vsyncadd (%p7837_p3), %s997_s28, 4294967264  ;;  %s1013_s24 = scalar_lea.sflag [#allocation19], %s6718_s27  ;;  %s1016_s8 = scalar_lea.vmem [#allocation18], %s6724_s22 }
 0x296   : > { %5864 = dma.done.wait (%p7837_p3), %s1013_s24, 272  }
 0x297   : > { %5866 = vsyncadd (%p7837_p3), %s1013_s24, 4294967024  ;;  %s4275_s25 = sshll.u32 %s6721_s21, 6  ;;  %s1024_s1 = scalar_lea.vmem [#allocation20], %s6721_s21 }
 0x298   : > { %s1030_s6 = scalar_lea.sflag [#allocation22], %s6718_s27  ;;  %s6756_s17 = scalar_lea.vmem [#allocation21], %s4275_s25 }
 0x299   : > { %5868 = dma.done.wait (%p7837_p3), %s1030_s6, 1040  }
 0x29a   : > { %5870 = vsyncadd (%p7837_p3), %s1030_s6, 4294966256  ;;  %s1041_s28 = scalar_lea.vmem [#allocation23], %s6721_s21  ;;  %s1047_s24 = scalar_lea.sflag [#allocation25], %s6718_s27 }
 0x29b   : > { %s1049_s7 = scalar_lea.vmem [#allocation24], %s6721_s21 }
 0x29c   : > { %5872 = dma.done.wait (%p7837_p3), %s1047_s24, 32  }
 0x29d   : > { %5874 = vsyncadd (%p7837_p3), %s1047_s24, 4294967264  ;;  %s1057_s25 = scalar_lea.vmem [#allocation26], %s6721_s21  ;;  %p7838_p12 = pmov %p7831_p2 }
 0x29e   : > { %p7839_p11 = pmov %p7831_p2 }
 0x29f   : > { %5876 = dma.done.wait (%p7838_p12), [#allocation28], 272  }
 0x2a0   : > { %5878 = vsyncadd (%p7839_p11), [#allocation28], 4294967024  ;;  %p7840_p0 = pmov %p7831_p2 }
 0x2a2   : > { %5880 = dma.done.wait (%p7840_p0), [#allocation31], 32   ;;  %p7841_p1 = pmov %p7840_p0 }
 0x2a3   : > { %p7842_p13 = pmov %p7840_p0 }
 0x2a4   : > { %5882 = vsyncadd (%p7841_p1), [#allocation31], 4294967264 }
 0x2a5   : > { %5884 = dma.done.wait (%p7842_p13), [#allocation34], 272   ;;  %p7843_p4 = pmov %p7840_p0 }
 0x2a6   : > { %s7844_s0 = sld [smem:[#allocation51_spill]] }
 0x2a7   : > { %5886 = vsyncadd (%p7843_p4), [#allocation34], 4294967024 }
 0x2ac   : > { %p4282_p6 = scmp.ne.s32.totalorder %s7844_s0, 0 }
 0x2ad   : > { %v1188_v0 = vld [vmem:[#allocation3] sm:$0xff] (!%p4282_p6)  ;;  %vm1198_vm0 = vcmask (!%p4282_p6), 261120   ;;  %v1190_v1 = vld [vmem:[#allocation3 + $0x10] sm:$0xff] (!%p4282_p6)  ;;  %v1189_v2 = vld [vmem:[#allocation3 + $0x8] sm:$0xff] (!%p4282_p6) }
 0x2ae   : > { %1187 = sbr.rel (%p4282_p6) target bundleno = 1016 (0x3f8), region = 192  ;;  %v1199_v3 = vsel (!%p4282_p6), %vm1198_vm0, %v1188_v0, 0.0  ;;  %v1205_v4 = vsel (!%p4282_p6), %vm1198_vm0, %v1190_v1, 0.0  ;;  %v1191_v5 = vld [vmem:[#allocation3 + $0x18] sm:$0xff] (!%p4282_p6)  ;;  %v1202_v6 = vsel (!%p4282_p6), %vm1198_vm0, %v1189_v2, 0.0  ;;  %v1192_v8 = vld [vmem:[#allocation3 + $0x20] sm:$0xff] (!%p4282_p6) }
 0x2af   : > { %1200 = vadd.xlane.f32.xlu0 (!%p4282_p6), %v1199_v3  ;;  %1206 = vadd.xlane.f32.xlu1 (!%p4282_p6), %v1205_v4  ;;  %v1208_v7 = vsel (!%p4282_p6), %vm1198_vm0, %v1191_v5, 0.0  ;;  %v1193_v9 = vld [vmem:[#allocation3 + $0x28] sm:$0xff] (!%p4282_p6)  ;;  %v1211_v10 = vsel (!%p4282_p6), %vm1198_vm0, %v1192_v8, 0.0  ;;  %v1194_v12 = vld [vmem:[#allocation3 + $0x30] sm:$0xff] (!%p4282_p6)  ;;  %v1195_v13 = vld [vmem:[#allocation3 + $0x38] sm:$0xff] (!%p4282_p6) }
 0x2b0   : > { %v1214_v11 = vsel (!%p4282_p6), %vm1198_vm0, %v1193_v9, 0.0  ;;  %v1217_v14 = vsel (!%p4282_p6), %vm1198_vm0, %v1194_v12, 0.0  ;;  %v1220_v15 = vsel (!%p4282_p6), %vm1198_vm0, %v1195_v13, 0.0 }
 0x2b3   : > { %1203 = vadd.xlane.f32.xlu0 (!%p4282_p6), %v1202_v6  ;;  %1209 = vadd.xlane.f32.xlu1 (!%p4282_p6), %v1208_v7 }
 0x2b7   : > { %1212 = vadd.xlane.f32.xlu0 %v1211_v10  ;;  %1215 = vadd.xlane.f32.xlu1 %v1214_v11 }
 0x2bb   : > { %1218 = vadd.xlane.f32.xlu0 %v1217_v14  ;;  %1221 = vadd.xlane.f32.xlu1 %v1220_v15 }
 0x33c   : > { %v1201_v16 = vpop.xlane.xlu0 %1200  ;;  %v1207_v17 = vpop.xlane.xlu1 %1206 }
 0x33d   : > { %v1224_v18 = vmul.f32 0.03125, %v1201_v16  ;;  %v1226_v19 = vmul.f32 0.03125, %v1207_v17  ;;  %v4284_v17 = vld [vmem:[#allocation8] ss:$0 sm:$0xff] }
 0x33f   : > { %v6791_v20 = vsub.f32 %v1188_v0, %v1224_v18  ;;  %v6793_v21 = vsub.f32 %v1190_v1, %v1226_v19 }
 0x340   : > { %v1204_v22 = vpop.xlane.xlu0 %1203  ;;  %v1210_v23 = vpop.xlane.xlu1 %1209 }
 0x341   : > { %v1225_v24 = vmul.f32 0.03125, %v1204_v22  ;;  %v1227_v25 = vmul.f32 0.03125, %v1210_v23  ;;  %v1240_v26 = vmul.f32 %v6791_v20, %v6791_v20  ;;  %v1242_v27 = vmul.f32 %v6793_v21, %v6793_v21 }
 0x343   : > { %v6799_v28 = vsub.f32 %v1189_v2, %v1225_v24  ;;  %v6801_v29 = vsub.f32 %v1191_v5, %v1227_v25  ;;  %v1248_v30 = vsel %vm1198_vm0, %v1240_v26, 0.0  ;;  %v1254_v33 = vsel %vm1198_vm0, %v1242_v27, 0.0 }
 0x344   : > { %1249 = vadd.xlane.f32.xlu0 %v1248_v30  ;;  %v1213_v31 = vpop.xlane.xlu0 %1212  ;;  %v1216_v32 = vpop.xlane.xlu1 %1215 }
 0x345   : > { %v1228_v34 = vmul.f32 0.03125, %v1213_v31  ;;  %v1229_v35 = vmul.f32 0.03125, %v1216_v32  ;;  %v1241_v36 = vmul.f32 %v6799_v28, %v6799_v28  ;;  %v1243_v37 = vmul.f32 %v6801_v29, %v6801_v29 }
 0x347   : > { %v6809_v38 = vsub.f32 %v1192_v8, %v1228_v34  ;;  %v6811_v39 = vsub.f32 %v1193_v9, %v1229_v35  ;;  %v1251_v40 = vsel %vm1198_vm0, %v1241_v36, 0.0  ;;  %v1257_v43 = vsel %vm1198_vm0, %v1243_v37, 0.0 }
 0x348   : > { %1255 = vadd.xlane.f32.xlu0 %v1254_v33  ;;  %1252 = vadd.xlane.f32.xlu1 %v1251_v40  ;;  %v1219_v41 = vpop.xlane.xlu0 %1218  ;;  %v1222_v42 = vpop.xlane.xlu1 %1221 }
 0x349   : > { %v1230_v44 = vmul.f32 0.03125, %v1219_v41  ;;  %v1231_v45 = vmul.f32 0.03125, %v1222_v42  ;;  %v1244_v46 = vmul.f32 %v6809_v38, %v6809_v38  ;;  %v1245_v47 = vmul.f32 %v6811_v39, %v6811_v39 }
 0x34b   : > { %v6819_v48 = vsub.f32 %v1194_v12, %v1230_v44  ;;  %v6821_v49 = vsub.f32 %v1195_v13, %v1231_v45  ;;  %v1260_v50 = vsel %vm1198_vm0, %v1244_v46, 0.0  ;;  %v1263_v51 = vsel %vm1198_vm0, %v1245_v47, 0.0  ;;  %v4283_v12 = vld [vmem:[#allocation6] ss:$0 sm:$0xff] }
 0x34c   : > { %1258 = vadd.xlane.f32.xlu1 %v1257_v43  ;;  %1261 = vadd.xlane.f32.xlu0 %v1260_v50 }
 0x34d   : > { %v1246_v52 = vmul.f32 %v6819_v48, %v6819_v48  ;;  %v1247_v53 = vmul.f32 %v6821_v49, %v6821_v49 }
 0x34f   : > { %v1266_v54 = vsel %vm1198_vm0, %v1246_v52, 0.0  ;;  %v1269_v55 = vsel %vm1198_vm0, %v1247_v53, 0.0 }
 0x350   : > { %1264 = vadd.xlane.f32.xlu1 %v1263_v51  ;;  %1267 = vadd.xlane.f32.xlu0 %v1266_v54 }
 0x354   : > { %1270 = vadd.xlane.f32.xlu1 %v1269_v55 }
 0x3d1   : > { %v1250_v56 = vpop.xlane.xlu0 %1249 }
 0x3d2   : > { %v1272_v57 = vmul.f32 0.03125, %v1250_v56 }
 0x3d4   : > { %v1280_v58 = vadd.f32 1e-05, %v1272_v57 }
 0x3d5   : > { %v1253_v59 = vpop.xlane.xlu1 %1252  ;;  %v1256_v60 = vpop.xlane.xlu0 %1255 }
 0x3d6   : > { %4913 = vrsqrt.f32 %v1280_v58  ;;  %v1273_v61 = vmul.f32 0.03125, %v1253_v59  ;;  %v1274_v62 = vmul.f32 0.03125, %v1256_v60 }
 0x3d8   : > { %v1281_v63 = vadd.f32 1e-05, %v1273_v61  ;;  %v1282_v0 = vadd.f32 1e-05, %v1274_v62 }
 0x3d9   : > { %v1259_v1 = vpop.xlane.xlu1 %1258  ;;  %v1262_v2 = vpop.xlane.xlu0 %1261 }
 0x3da   : > { %4915 = vrsqrt.f32 %v1281_v63  ;;  %v1275_v3 = vmul.f32 0.03125, %v1259_v1  ;;  %v1276_v4 = vmul.f32 0.03125, %v1262_v2 }
 0x3db   : > { %4917 = vrsqrt.f32 %v1282_v0 }
 0x3dc   : > { %v1283_v5 = vadd.f32 1e-05, %v1275_v3  ;;  %v1284_v6 = vadd.f32 1e-05, %v1276_v4 }
 0x3dd   : > { %v1265_v7 = vpop.xlane.xlu1 %1264  ;;  %v1268_v8 = vpop.xlane.xlu0 %1267 }
 0x3de   : > { %4919 = vrsqrt.f32 %v1283_v5  ;;  %v1277_v9 = vmul.f32 0.03125, %v1265_v7  ;;  %v1278_v10 = vmul.f32 0.03125, %v1268_v8 }
 0x3df   : > { %4921 = vrsqrt.f32 %v1284_v6 }
 0x3e0   : > { %v4914_v11 = vpop.eup %4913  ;;  %v1285_v13 = vadd.f32 1e-05, %v1277_v9  ;;  %v1286_v14 = vadd.f32 1e-05, %v1278_v10 }
 0x3e1   : > { %v1296_v15 = vmul.f32 %v4914_v11, %v6791_v20  ;;  %v1271_v16 = vpop.xlane.xlu1 %1270 }
 0x3e2   : > { %4923 = vrsqrt.f32 %v1285_v13  ;;  %v1279_v18 = vmul.f32 0.03125, %v1271_v16 }
 0x3e3   : > { %v1310_v19 = vmul.f32 %v4283_v12, %v1296_v15  ;;  %4925 = vrsqrt.f32 %v1286_v14 }
 0x3e4   : > { %v4916_v22 = vpop.eup %4915  ;;  %v1287_v23 = vadd.f32 1e-05, %v1279_v18 }
 0x3e5   : > { %v4918_v24 = vpop.eup %4917  ;;  %v1324_v25 = vadd.f32 %v4284_v17, %v1310_v19  ;;  %v1297_v26 = vmul.f32 %v4916_v22, %v6799_v28 }
 0x3e6   : > { %v1298_v27 = vmul.f32 %v4918_v24, %v6793_v21  ;;  %4927 = vrsqrt.f32 %v1287_v23 }
 0x3e7   : > { %1332 = vst.msk [vmem:[#allocation2] sm:$0xff] %vm1198_vm0, %v1324_v25  ;;  %v1311_v30 = vmul.f32 %v4283_v12, %v1297_v26 }
 0x3e8   : > { %v4920_v31 = vpop.eup %4919  ;;  %v1312_v20 = vmul.f32 %v4283_v12, %v1298_v27 }
 0x3e9   : > { %v4922_v32 = vpop.eup %4921  ;;  %v1325_v33 = vadd.f32 %v4284_v17, %v1311_v30  ;;  %v1299_v34 = vmul.f32 %v4920_v31, %v6801_v29 }
 0x3ea   : > { %v1326_v35 = vadd.f32 %v4284_v17, %v1312_v20  ;;  %v1300_v36 = vmul.f32 %v4922_v32, %v6809_v38 }
 0x3eb   : > { %1333 = vst.msk [vmem:[#allocation2 + $0x8] sm:$0xff] %vm1198_vm0, %v1325_v33  ;;  %v1313_v37 = vmul.f32 %v4283_v12, %v1299_v34 }
 0x3ec   : > { %v4924_v40 = vpop.eup %4923  ;;  %1334 = vst.msk [vmem:[#allocation2 + $0x10] sm:$0xff] %vm1198_vm0, %v1326_v35  ;;  %v1314_v21 = vmul.f32 %v4283_v12, %v1300_v36 }
 0x3ed   : > { %v4926_v28 = vpop.eup %4925  ;;  %v1327_v41 = vadd.f32 %v4284_v17, %v1313_v37  ;;  %v1301_v42 = vmul.f32 %v4924_v40, %v6811_v39 }
 0x3ee   : > { %v1328_v43 = vadd.f32 %v4284_v17, %v1314_v21  ;;  %v1302_v44 = vmul.f32 %v4926_v28, %v6819_v48 }
 0x3ef   : > { %1335 = vst.msk [vmem:[#allocation2 + $0x18] sm:$0xff] %vm1198_vm0, %v1327_v41  ;;  %v1315_v29 = vmul.f32 %v4283_v12, %v1301_v42 }
 0x3f0   : > { %v4928_v45 = vpop.eup %4927  ;;  %1336 = vst.msk [vmem:[#allocation2 + $0x20] sm:$0xff] %vm1198_vm0, %v1328_v43  ;;  %v1316_v38 = vmul.f32 %v4283_v12, %v1302_v44 }
 0x3f1   : > { %v1329_v46 = vadd.f32 %v4284_v17, %v1315_v29  ;;  %v1303_v47 = vmul.f32 %v4928_v45, %v6821_v49 }
 0x3f2   : > { %v1330_v50 = vadd.f32 %v4284_v17, %v1316_v38 }
 0x3f3   : > { %1337 = vst.msk [vmem:[#allocation2 + $0x28] sm:$0xff] %vm1198_vm0, %v1329_v46  ;;  %v1317_v51 = vmul.f32 %v4283_v12, %v1303_v47 }
 0x3f4   : > { %1338 = vst.msk [vmem:[#allocation2 + $0x30] sm:$0xff] %vm1198_vm0, %v1330_v50 }
 0x3f5   : > { %v1331_v39 = vadd.f32 %v4284_v17, %v1317_v51 }
 0x3f7   : > { %1339 = vst.msk [vmem:[#allocation2 + $0x38] sm:$0xff] %vm1198_vm0, %v1331_v39 }
 0x3f8 PF: > { %v4989_v48 = vld [vmem:[%s966_s26] sm:$0xff]   ;;  %v4990_v52 = vld [vmem:[%s966_s26 + $0x8] sm:$0xff]   ;;  %vm1375_vm1 = vcmask 261120   ;;  %vm1489_vm2 = vcmask 64512   ;;  %s5940_s27 = smov 120   ;;  %s5941_s26 = smov 112  }
 0x3f9   : > { %4470 = vmatprep.subr.bf16.mxu0 %v4989_v48  ;;  %v1340_v53 = vld [vmem:[#allocation2] sm:$0xff]  ;;  %v1341_v54 = vld [vmem:[#allocation2 + $0x8] sm:$0xff]  ;;  %v1342_v55 = vld [vmem:[#allocation2 + $0x10] sm:$0xff]  ;;  %s5943_s6 = smov 96   ;;  %s5944_s24 = smov 64   ;;  %vm2966_vm3 = vcmask 130048  }
 0x3fa   : > { %4471 = vmatpush3.bf16.msra.mxu0 %v4989_v48  ;;  %v1348_v49 = vpack.c.bf16 %v1341_v54, %v1340_v53  ;;  %v1343_v56 = vld [vmem:[#allocation2 + $0x18] sm:$0xff]  ;;  %v1344_v57 = vld [vmem:[#allocation2 + $0x20] sm:$0xff]  ;;  %v1345_v58 = vld [vmem:[#allocation2 + $0x28] sm:$0xff]  ;;  %s5945_s0 = smov 8   ;;  %vm2975_vm4 = vcmask 195584   ;;  %s7845_s22 = scalar_lea.vmem [#allocation17], %s6721_s21 }
 0x3fb   : > { %4472 = vmatprep.subr.bf16.mxu0 %v4990_v52  ;;  %v1349_v59 = vpack.c.bf16 %v1343_v56, %v1342_v55  ;;  %v1350_v60 = vpack.c.bf16 %v1345_v58, %v1344_v57  ;;  %v1346_v61 = vld [vmem:[#allocation2 + $0x30] sm:$0xff]  ;;  %v4285_v1 = vld [vmem:[%s974_s11] ss:$0 sm:$0xff]  ;;  %s5942_s11 = smov 104   ;;  %s7846_s21 = sld [smem:[#allocation51_spill]] }
 0x3fc   : > { %4474 = vmatprep.mubr.msk.bf16.mxu0 %vm1375_vm1, %v1348_v49 }
 0x3fe   : > { %4473 = vmatpush3.bf16.msra.mxu0 %v4990_v52  ;;  %v1347_v62 = vld [vmem:[#allocation2 + $0x38] sm:$0xff] }
 0x3ff   : > { %v1351_v63 = vpack.c.bf16 %v1347_v62, %v1346_v61 }
 0x401   : > { %4475 = vmatmul.mubr.msk.bf16.vlgmr.msra.gmra.mrb[0].mxu0 %vm1375_vm1, %v1349_v59  ;;  %p4351_p10 = scmp.ne.s32.totalorder %s7846_s21, 1 }
 0x402   : > { %4478 = vmatprep.mubr.msk.bf16.mxu0 %vm1375_vm1, %v1350_v60  ;;  %vm5949_vm5 = vmmov (!%p4351_p10), 0   ;;  %vm3682_vm6 = vcmask (!%p4351_p10), 1041409   ;;  %vm3742_vm7 = vcmask (!%p4351_p10), 254976  }
 0x409   : > { %4479 = vmatmul.mubr.msk.bf16.gmra.mrb[4].mxu0 %vm1375_vm1, %v1351_v63 }
 0x4d4   : > { %v4476_v0 = vpop.f32.mrb[0].mxu0 }
 0x4d5   : > { %v1422_v2 = vpop.f32.mrb[1].mxu0  ;;  %v1431_v4 = vadd.f32 %v4476_v0, %v4285_v1 }
 0x4d6   : > { %v4477_v3 = vpop.f32.mrb[2].mxu0  ;;  %v1423_v7 = vadd.f32 %v4285_v1, %v1422_v2 }
 0x4d7   : > { %v1434_v5 = vadd.f32 %v4477_v3, %v4285_v1  ;;  %v1425_v6 = vpop.f32.mrb[3].mxu0 }
 0x4d8   : > { %v1426_v8 = vadd.f32 %v4285_v1, %v1425_v6 }
 0x4d9   : > { %v6857_v9 = vpack.c.bf16 %v1434_v5, %v1431_v4 }
 0x4da   : > { %v6859_v10 = vpack.c.bf16 %v1426_v8, %v1423_v7 }
 0x4dc   : > { %v4480_v11 = vpop.f32.mrb[4].mxu0  ;;  %1461 = vrot.lane.b32.xlu0 %v6859_v10, %s5940_s27  ;;  %4486 = vmatprep.mubr.msk.bf16.mxu0 %vm1489_vm2, %v6859_v10 }
 0x4dd   : > { %v1438_v12 = vpop.f32.mrb[5].mxu0  ;;  %v1447_v14 = vadd.f32 %v4480_v11, %v4285_v1 }
 0x4de   : > { %v4481_v13 = vpop.f32.mrb[6].mxu0  ;;  %v1439_v17 = vadd.f32 %v4285_v1, %v1438_v12 }
 0x4df   : > { %v1450_v15 = vadd.f32 %v4481_v13, %v4285_v1  ;;  %v1441_v16 = vpop.f32.mrb[7].mxu0 }
 0x4e0   : > { %v1442_v18 = vadd.f32 %v4285_v1, %v1441_v16  ;;  %1463 = vrot.lane.b32.xlu0 %v6857_v9, %s5940_s27 }
 0x4e1   : > { %v6865_v19 = vpack.c.bf16 %v1450_v15, %v1447_v14 }
 0x4e2   : > { %v6867_v22 = vpack.c.bf16 %v1442_v18, %v1439_v17 }
 0x4e4   : > { %1465 = vrot.lane.b32.xlu1 %v6867_v22, %s5940_s27  ;;  %1469 = vrot.lane.b32.xlu0 %v6859_v10, %s5941_s26 }
 0x4e8   : > { %1467 = vrot.lane.b32.xlu1 %v6865_v19, %s5940_s27  ;;  %1473 = vrot.lane.b32.xlu0 %v6867_v22, %s5941_s26  ;;  %s5946_s27 = smov 16  }
 0x4ec   : > { %1471 = vrot.lane.b32.xlu1 %v6857_v9, %s5941_s26  ;;  %1477 = vrot.lane.b32.xlu0 %v6859_v10, %s5942_s11 }
 0x4f0   : > { %1475 = vrot.lane.b32.xlu1 %v6865_v19, %s5941_s26  ;;  %1479 = vrot.lane.b32.xlu0 %v6857_v9, %s5942_s11  ;;  %s5947_s26 = smov 24  }
 0x4f4   : > { %1485 = vrot.lane.b32.xlu1 %v6859_v10, %s5943_s6  ;;  %1487 = vrot.lane.b32.xlu0 %v6857_v9, %s5943_s6 }
 0x4f8   : > { %1481 = vrot.lane.b32.xlu1 %v6867_v22, %s5942_s11  ;;  %1551 = vrot.lane.b32.xlu0 %v6867_v22, %s5943_s6 }
 0x4fc   : > { %1483 = vrot.lane.b32.xlu1 %v6865_v19, %s5942_s11 }
 0x500   : > { %1553 = vrot.lane.b32.xlu1 %v6865_v19, %s5943_s6 }
 0x54e   : > { %v1462_v23 = vpop.permute.xlu0 %1461 }
 0x54f   : > { %4502 = vmatprep.mubr.msk.bf16.mxu1 %vm1489_vm2, %v1462_v23  ;;  %1616 = vrot.lane.b32.xlu0 %v1462_v23, %s5943_s6 }
 0x552   : > { %v6889_v24 = vpop.permute.xlu0 %1463 }
 0x553   : > { %1618 = vrot.lane.b32.xlu1 %v6889_v24, %s5943_s6 }
 0x556   : > { %v1466_v25 = vpop.permute.xlu1 %1465  ;;  %v6893_v26 = vpop.permute.xlu0 %1469 }
 0x557   : > { %1681 = vrot.lane.b32.xlu0 %v1466_v25, %s5943_s6 }
 0x55a   : > { %v6896_v27 = vpop.permute.xlu1 %1467  ;;  %v6898_v30 = vpop.permute.xlu0 %1473 }
 0x55b   : > { %1683 = vrot.lane.b32.xlu1 %v6896_v27, %s5943_s6  ;;  %1746 = vrot.lane.b32.xlu0 %v6893_v26, %s5943_s6 }
 0x55e   : > { %v6904_v31 = vpop.permute.xlu1 %1471  ;;  %v6906_v20 = vpop.permute.xlu0 %1477 }
 0x55f   : > { %1748 = vrot.lane.b32.xlu1 %v6904_v31, %s5943_s6  ;;  %1811 = vrot.lane.b32.xlu0 %v6898_v30, %s5943_s6 }
 0x562   : > { %v6912_v32 = vpop.permute.xlu1 %1475  ;;  %v6914_v33 = vpop.permute.xlu0 %1479 }
 0x563   : > { %1813 = vrot.lane.b32.xlu1 %v6912_v32, %s5943_s6  ;;  %1876 = vrot.lane.b32.xlu0 %v6906_v20, %s5943_s6 }
 0x566   : > { %v1486_v34 = vpop.permute.xlu1 %1485  ;;  %v1488_v36 = vpop.permute.xlu0 %1487 }
 0x567   : > { %4674 = vmatprep.subr.msk.bf16.mxu0 %vm1489_vm2, %v1486_v34  ;;  %1878 = vrot.lane.b32.xlu1 %v6914_v33, %s5943_s6  ;;  %v1497_v35 = vsel %vm1489_vm2, %v1486_v34, 0  ;;  %v1500_v21 = vsel %vm1489_vm2, %v1488_v36, 0 }
 0x568   : > { %4483 = vmatpush3.bf16.xpose.msra.mxu0 %v1497_v35 }
 0x569   : > { %4675 = vmatprep.subr.msk.bf16.mxu0 %vm1489_vm2, %v1488_v36 }
 0x56a   : > { %v6925_v37 = vpop.permute.xlu1 %1481  ;;  %v1552_v28 = vpop.permute.xlu0 %1551 }
 0x56b   : > { %1941 = vrot.lane.b32.xlu0 %v6925_v37, %s5943_s6  ;;  %v1562_v41 = vsel %vm1489_vm2, %v1552_v28, 0 }
 0x56e   : > { %v6929_v40 = vpop.permute.xlu1 %1483 }
 0x56f   : > { %2376 = vrot.lane.b32.xlu0 %v6857_v9, %s5944_s24  ;;  %1943 = vrot.lane.b32.xlu1 %v6929_v40, %s5943_s6 }
 0x570   : > { %4485 = vmatpush3.bf16.xpose.msra.mxu0 %v1500_v21 }
 0x571   : > { %4676 = vmatprep.subr.msk.bf16.mxu0 %vm1489_vm2, %v1552_v28 }
 0x572   : > { %v1554_v42 = vpop.permute.xlu1 %1553 }
 0x573   : > { %2435 = vrot.lane.b32.xlu0 %v6867_v22, %s5944_s24  ;;  %2374 = vrot.lane.b32.xlu1 %v6859_v10, %s5944_s24  ;;  %v1565_v43 = vsel %vm1489_vm2, %v1554_v42, 0 }
 0x577   : > { %2437 = vrot.lane.b32.xlu0 %v6865_v19, %s5944_s24  ;;  %2496 = vrot.lane.b32.xlu1 %v1462_v23, %s5944_s24 }
 0x578   : > { %4487 = vmatmul.mubr.msk.bf16.vlgmr.msra.gmra.mrb[8].mxu0 %vm1489_vm2, %v6857_v9 }
 0x579   : > { %4491 = vmatpush3.bf16.xpose.msra.mxu0 %v1562_v41  ;;  %4494 = vmatprep.mubr.msk.bf16.mxu0 %vm1489_vm2, %v6867_v22 }
 0x57a   : > { %4677 = vmatprep.subr.msk.bf16.mxu0 %vm1489_vm2, %v1554_v42 }
 0x57b   : > { %2618 = vrot.lane.b32.xlu0 %v6893_v26, %s5944_s24  ;;  %2498 = vrot.lane.b32.xlu1 %v6889_v24, %s5944_s24 }
 0x57f   : > { %2620 = vrot.lane.b32.xlu0 %v6904_v31, %s5944_s24  ;;  %2559 = vrot.lane.b32.xlu1 %v6896_v27, %s5944_s24 }
 0x581   : > { %4493 = vmatpush3.bf16.xpose.msra.mxu0 %v1565_v43 }
 0x583   : > { %2740 = vrot.lane.b32.xlu0 %v6906_v20, %s5944_s24  ;;  %2679 = vrot.lane.b32.xlu1 %v6898_v30, %s5944_s24 }
 0x587   : > { %2557 = vrot.lane.b32.xlu0 %v1466_v25, %s5944_s24 }
 0x588   : > { %4495 = vmatmul.mubr.msk.bf16.vlgmr.msra.gmra.mrb[12].mxu0 %vm1489_vm2, %v6865_v19 }
 0x589   : > { %4510 = vmatprep.mubr.msk.bf16.mxu0 %vm1489_vm2, %v1466_v25 }
 0x5c1   : > { %v1617_v44 = vpop.permute.xlu0 %1616 }
 0x5c2   : > { %4678 = vmatprep.subr.msk.bf16.mxu1 %vm1489_vm2, %v1617_v44  ;;  %v1627_v29 = vsel %vm1489_vm2, %v1617_v44, 0 }
 0x5c3   : > { %4499 = vmatpush3.bf16.xpose.msra.mxu1 %v1627_v29 }
 0x5c5   : > { %v1619_v45 = vpop.permute.xlu1 %1618 }
 0x5c6   : > { %4679 = vmatprep.subr.msk.bf16.mxu1 %vm1489_vm2, %v1619_v45  ;;  %v1630_v46 = vsel %vm1489_vm2, %v1619_v45, 0 }
 0x5c9   : > { %v1682_v38 = vpop.permute.xlu0 %1681 }
 0x5ca   : > { %4680 = vmatprep.subr.msk.bf16.mxu0 %vm1489_vm2, %v1682_v38  ;;  %v1692_v47 = vsel %vm1489_vm2, %v1682_v38, 0 }
 0x5cb   : > { %4501 = vmatpush3.bf16.xpose.msra.mxu1 %v1630_v46  ;;  %4507 = vmatpush3.bf16.xpose.msra.mxu0 %v1692_v47 }
 0x5cd   : > { %v1684_v50 = vpop.permute.xlu1 %1683  ;;  %v1747_v51 = vpop.permute.xlu0 %1746 }
 0x5ce   : > { %4681 = vmatprep.subr.msk.bf16.mxu0 %vm1489_vm2, %v1684_v50  ;;  %4682 = vmatprep.subr.msk.bf16.mxu1 %vm1489_vm2, %v1747_v51  ;;  %v1695_v39 = vsel %vm1489_vm2, %v1684_v50, 0  ;;  %v1757_v48 = vsel %vm1489_vm2, %v1747_v51, 0 }
 0x5d1   : > { %v1749_v52 = vpop.permute.xlu1 %1748  ;;  %v1812_v53 = vpop.permute.xlu0 %1811 }
 0x5d2   : > { %4503 = vmatmul.mubr.msk.bf16.vlgmr.msra.gmra.mrb[0].mxu1 %vm1489_vm2, %v6889_v24  ;;  %v1760_v49 = vsel %vm1489_vm2, %v1749_v52, 0  ;;  %v1822_v55 = vsel %vm1489_vm2, %v1812_v53, 0 }
 0x5d3   : > { %4509 = vmatpush3.bf16.xpose.msra.mxu0 %v1695_v39  ;;  %4515 = vmatpush3.bf16.xpose.msra.mxu1 %v1757_v48 }
 0x5d4   : > { %4518 = vmatprep.mubr.msk.bf16.mxu1 %vm1489_vm2, %v6893_v26  ;;  %4683 = vmatprep.subr.msk.bf16.mxu1 %vm1489_vm2, %v1749_v52 }
 0x5d5   : > { %4684 = vmatprep.subr.msk.bf16.mxu0 %vm1489_vm2, %v1812_v53  ;;  %v1877_v54 = vpop.permute.xlu0 %1876  ;;  %v1814_v56 = vpop.permute.xlu1 %1813 }
 0x5d6   : > { %v1825_v60 = vsel %vm1489_vm2, %v1814_v56, 0  ;;  %v1887_v61 = vsel %vm1489_vm2, %v1877_v54, 0 }
 0x5d9   : > { %v1879_v59 = vpop.permute.xlu1 %1878 }
 0x5da   : > { %4511 = vmatmul.mubr.msk.bf16.vlgmr.msra.gmra.mrb[16].mxu0 %vm1489_vm2, %v6896_v27  ;;  %v1890_v1 = vsel %vm1489_vm2, %v1879_v59, 0 }
 0x5db   : > { %4517 = vmatpush3.bf16.xpose.msra.mxu1 %v1760_v49  ;;  %4523 = vmatpush3.bf16.xpose.msra.mxu0 %v1822_v55 }
 0x5dc   : > { %4526 = vmatprep.mubr.msk.bf16.mxu0 %vm1489_vm2, %v6898_v30  ;;  %4685 = vmatprep.subr.msk.bf16.mxu0 %vm1489_vm2, %v1814_v56 }
 0x5dd   : > { %4686 = vmatprep.subr.msk.bf16.mxu1 %vm1489_vm2, %v1877_v54  ;;  %v1942_v57 = vpop.permute.xlu0 %1941 }
 0x5de   : > { %v1952_v2 = vsel %vm1489_vm2, %v1942_v57, 0 }
 0x5e1   : > { %v2377_v58 = vpop.permute.xlu0 %2376  ;;  %v1944_v63 = vpop.permute.xlu1 %1943 }
 0x5e2   : > { %4519 = vmatmul.mubr.msk.bf16.vlgmr.msra.gmra.mrb[4].mxu1 %vm1489_vm2, %v6904_v31  ;;  %v1955_v5 = vsel %vm1489_vm2, %v1944_v63, 0 }
 0x5e3   : > { %4525 = vmatpush3.bf16.xpose.msra.mxu0 %v1825_v60  ;;  %4531 = vmatpush3.bf16.xpose.msra.mxu1 %v1887_v61 }
 0x5e4   : > { %4534 = vmatprep.mubr.msk.bf16.mxu1 %vm1489_vm2, %v6906_v20  ;;  %4687 = vmatprep.subr.msk.bf16.mxu1 %vm1489_vm2, %v1879_v59 }
 0x5e5   : > { %4688 = vmatprep.subr.msk.bf16.mxu0 %vm1489_vm2, %v1942_v57  ;;  %v2436_v62 = vpop.permute.xlu0 %2435  ;;  %v2375_v3 = vpop.permute.xlu1 %2374 }
 0x5e9   : > { %v2438_v0 = vpop.permute.xlu0 %2437  ;;  %v7013_v7 = vpop.permute.xlu1 %2496 }
 0x5ea   : > { %4527 = vmatmul.mubr.msk.bf16.vlgmr.msra.gmra.mrb[20].mxu0 %vm1489_vm2, %v6912_v32 }
 0x5eb   : > { %4533 = vmatpush3.bf16.xpose.msra.mxu1 %v1890_v1  ;;  %4539 = vmatpush3.bf16.xpose.msra.mxu0 %v1952_v2 }
 0x5ec   : > { %4542 = vmatprep.mubr.msk.bf16.mxu0 %vm1489_vm2, %v6925_v37  ;;  %4689 = vmatprep.subr.msk.bf16.mxu0 %vm1489_vm2, %v1944_v63 }
 0x5ed   : > { %4546 = vmatprep.subr.bf16.mxu1 %v2375_v3  ;;  %v7006_v4 = vpop.permute.xlu0 %2618 }
 0x5f1   : > { %v7011_v6 = vpop.permute.xlu0 %2620 }
 0x5f2   : > { %4535 = vmatmul.mubr.msk.bf16.vlgmr.msra.gmra.mrb[8].mxu1 %vm1489_vm2, %v6914_v33 }
 0x5f3   : > { %4541 = vmatpush3.bf16.xpose.msra.mxu0 %v1955_v5  ;;  %4547 = vmatpush3.bf16.msra.mxu1 %v2375_v3 }
 0x5f4   : > { %4548 = vmatprep.subr.bf16.mxu1 %v2377_v58  ;;  %4554 = vmatprep.subr.bf16.mxu0 %v2436_v62 }
 0x5f5   : > { %v7016_v8 = vpop.permute.xlu0 %2740 }
 0x5f7   : > { %4549 = vmatpush3.bf16.msra.mxu1 %v2377_v58 }
 0x5f8   : > { %4562 = vmatprep.subr.bf16.mxu1 %v7013_v7 }
 0x5f9   : > { %v7020_v9 = vpop.permute.xlu0 %2557 }
 0x5fa   : > { %4543 = vmatmul.mubr.msk.bf16.vlgmr.msra.gmra.mrb[24].mxu0 %vm1489_vm2, %v6929_v40 }
 0x5fb   : > { %4555 = vmatpush3.bf16.msra.mxu0 %v2436_v62 }
 0x5fc   : > { %4556 = vmatprep.subr.bf16.mxu0 %v2438_v0 }
 0x5ff   : > { %4557 = vmatpush3.bf16.msra.mxu0 %v2438_v0 }
 0x600   : > { %4570 = vmatprep.subr.bf16.mxu0 %v7020_v9 }
 0x64b   : > { %v7023_v10 = vpop.f32.mrb[8].mxu0 }
 0x64c   : > { %v7025_v11 = vpop.f32.mrb[9].mxu0  ;;  %v2012_v12 = vsel %vm1375_vm1, %v7023_v10, -inf }
 0x64d   : > { %2013 = vmax.xlane.f32.xlu0 %v2012_v12  ;;  %v7029_v13 = vpop.f32.mrb[10].mxu0  ;;  %v2006_v16 = vsel %vm1375_vm1, %v7025_v11, -inf }
 0x64e   : > { %v7031_v14 = vpop.f32.mrb[11].mxu0  ;;  %v2015_v17 = vsel %vm1375_vm1, %v7029_v13, -inf }
 0x64f   : > { %v2009_v15 = vsel %vm1375_vm1, %v7031_v14, -inf }
 0x650   : > { %2010 = vmax.xlane.f32.xlu1 %v2009_v15 }
 0x651   : > { %2007 = vmax.xlane.f32.xlu0 %v2006_v16 }
 0x655   : > { %2016 = vmax.xlane.f32.xlu0 %v2015_v17 }
 0x65b   : > { %v7039_v18 = vpop.f32.mrb[12].mxu0 }
 0x65c   : > { %v7041_v19 = vpop.f32.mrb[13].mxu0  ;;  %v2024_v22 = vsel %vm1375_vm1, %v7039_v18, -inf }
 0x65d   : > { %2025 = vmax.xlane.f32.xlu1 %v2024_v22  ;;  %v7045_v23 = vpop.f32.mrb[14].mxu0  ;;  %v2018_v26 = vsel %vm1375_vm1, %v7041_v19, -inf }
 0x65e   : > { %v7047_v24 = vpop.f32.mrb[15].mxu0  ;;  %v2027_v25 = vsel %vm1375_vm1, %v7045_v23, -inf }
 0x65f   : > { %2028 = vmax.xlane.f32.xlu0 %v2027_v25  ;;  %v2021_v27 = vsel %vm1375_vm1, %v7047_v24, -inf }
 0x661   : > { %2019 = vmax.xlane.f32.xlu1 %v2018_v26 }
 0x663   : > { %2022 = vmax.xlane.f32.xlu0 %v2021_v27 }
 0x6a5   : > { %v7055_v30 = vpop.f32.mrb[0].mxu1 }
 0x6a6   : > { %v7057_v31 = vpop.f32.mrb[1].mxu1  ;;  %v2036_v20 = vsel %vm1375_vm1, %v7055_v30, -inf }
 0x6a7   : > { %v7061_v34 = vpop.f32.mrb[2].mxu1  ;;  %2037 = vmax.xlane.f32.xlu1 %v2036_v20  ;;  %v2030_v21 = vsel %vm1375_vm1, %v7057_v31, -inf }
 0x6a8   : > { %v7063_v35 = vpop.f32.mrb[3].mxu1  ;;  %v2039_v36 = vsel %vm1375_vm1, %v7061_v34, -inf }
 0x6a9   : > { %2040 = vmax.xlane.f32.xlu0 %v2039_v36  ;;  %v2033_v28 = vsel %vm1375_vm1, %v7063_v35, -inf  ;;  %v7151_v36 = vpop.permute.xlu1 %2498 }
 0x6ab   : > { %2031 = vmax.xlane.f32.xlu1 %v2030_v21 }
 0x6ad   : > { %2034 = vmax.xlane.f32.xlu0 %v2033_v28  ;;  %v7071_v41 = vpop.f32.mrb[16].mxu0  ;;  %v7155_v28 = vpop.permute.xlu1 %2559 }
 0x6ae   : > { %v7073_v42 = vpop.f32.mrb[17].mxu0  ;;  %v2048_v43 = vsel %vm1375_vm1, %v7071_v41, -inf }
 0x6af   : > { %2049 = vmax.xlane.f32.xlu1 %v2048_v43  ;;  %v7077_v44 = vpop.f32.mrb[18].mxu0  ;;  %v2042_v38 = vsel %vm1375_vm1, %v7073_v42, -inf }
 0x6b0   : > { %v7079_v29 = vpop.f32.mrb[19].mxu0  ;;  %v2051_v45 = vsel %vm1375_vm1, %v7077_v44, -inf }
 0x6b1   : > { %2052 = vmax.xlane.f32.xlu0 %v2051_v45  ;;  %v2045_v46 = vsel %vm1375_vm1, %v7079_v29, -inf  ;;  %v7159_v45 = vpop.permute.xlu1 %2679 }
 0x6b3   : > { %2043 = vmax.xlane.f32.xlu1 %v2042_v38 }
 0x6b5   : > { %v7087_v47 = vpop.f32.mrb[4].mxu1  ;;  %2046 = vmax.xlane.f32.xlu0 %v2045_v46 }
 0x6b6   : > { %v7089_v50 = vpop.f32.mrb[5].mxu1  ;;  %v2060_v51 = vsel %vm1375_vm1, %v7087_v47, -inf }
 0x6b7   : > { %v7093_v39 = vpop.f32.mrb[6].mxu1  ;;  %2061 = vmax.xlane.f32.xlu1 %v2060_v51  ;;  %v2054_v53 = vsel %vm1375_vm1, %v7089_v50, -inf }
 0x6b8   : > { %v7095_v48 = vpop.f32.mrb[7].mxu1  ;;  %v2063_v52 = vsel %vm1375_vm1, %v7093_v39, -inf }
 0x6b9   : > { %2064 = vmax.xlane.f32.xlu0 %v2063_v52  ;;  %v2057_v54 = vsel %vm1375_vm1, %v7095_v48, -inf }
 0x6bb   : > { %2055 = vmax.xlane.f32.xlu1 %v2054_v53 }
 0x6bd   : > { %2058 = vmax.xlane.f32.xlu0 %v2057_v54  ;;  %v7103_v49 = vpop.f32.mrb[20].mxu0 }
 0x6be   : > { %v7105_v55 = vpop.f32.mrb[21].mxu0  ;;  %v2072_v56 = vsel %vm1375_vm1, %v7103_v49, -inf }
 0x6bf   : > { %2073 = vmax.xlane.f32.xlu1 %v2072_v56  ;;  %v7109_v57 = vpop.f32.mrb[22].mxu0  ;;  %v2066_v60 = vsel %vm1375_vm1, %v7105_v55, -inf }
 0x6c0   : > { %v7111_v58 = vpop.f32.mrb[23].mxu0  ;;  %v2075_v59 = vsel %vm1375_vm1, %v7109_v57, -inf }
 0x6c1   : > { %2076 = vmax.xlane.f32.xlu0 %v2075_v59  ;;  %v2069_v61 = vsel %vm1375_vm1, %v7111_v58, -inf }
 0x6c3   : > { %2067 = vmax.xlane.f32.xlu1 %v2066_v60 }
 0x6c5   : > { %v7119_v62 = vpop.f32.mrb[8].mxu1  ;;  %2070 = vmax.xlane.f32.xlu0 %v2069_v61 }
 0x6c6   : > { %v7121_v63 = vpop.f32.mrb[9].mxu1  ;;  %v2084_v0 = vsel %vm1375_vm1, %v7119_v62, -inf }
 0x6c7   : > { %v7125_v1 = vpop.f32.mrb[10].mxu1  ;;  %2085 = vmax.xlane.f32.xlu1 %v2084_v0  ;;  %v2078_v5 = vsel %vm1375_vm1, %v7121_v63, -inf }
 0x6c8   : > { %v7127_v2 = vpop.f32.mrb[11].mxu1  ;;  %v2087_v3 = vsel %vm1375_vm1, %v7125_v1, -inf }
 0x6c9   : > { %2088 = vmax.xlane.f32.xlu0 %v2087_v3  ;;  %v2081_v12 = vsel %vm1375_vm1, %v7127_v2, -inf }
 0x6cb   : > { %2079 = vmax.xlane.f32.xlu1 %v2078_v5 }
 0x6cd   : > { %2082 = vmax.xlane.f32.xlu0 %v2081_v12  ;;  %v7135_v15 = vpop.f32.mrb[24].mxu0 }
 0x6ce   : > { %v7137_v16 = vpop.f32.mrb[25].mxu0  ;;  %v2096_v17 = vsel %vm1375_vm1, %v7135_v15, -inf }
 0x6cf   : > { %2097 = vmax.xlane.f32.xlu1 %v2096_v17  ;;  %v7141_v22 = vpop.f32.mrb[26].mxu0  ;;  %v2090_v27 = vsel %vm1375_vm1, %v7137_v16, -inf }
 0x6d0   : > { %v7143_v25 = vpop.f32.mrb[27].mxu0  ;;  %v2099_v26 = vsel %vm1375_vm1, %v7141_v22, -inf }
 0x6d1   : > { %2100 = vmax.xlane.f32.xlu0 %v2099_v26  ;;  %v2093_v20 = vsel %vm1375_vm1, %v7143_v25, -inf }
 0x6d3   : > { %2091 = vmax.xlane.f32.xlu1 %v2090_v27 }
 0x6d5   : > { %2094 = vmax.xlane.f32.xlu0 %v2093_v20 }
 0x6da   : > { %v2014_v21 = vpop.xlane.xlu0 %2013 }
 0x6db   : > { %v2104_v51 = vsub.f32 %v7023_v10, %v2014_v21 }
 0x6dd   : > { %v2011_v38 = vpop.xlane.xlu1 %2010  ;;  %v2138_v54 = vmul.f32 1.442695, %v2104_v51 }
 0x6de   : > { %v2008_v43 = vpop.xlane.xlu0 %2007  ;;  %v2103_v59 = vsub.f32 %v7031_v14, %v2011_v38 }
 0x6df   : > { %v2102_v56 = vsub.f32 %v7025_v11, %v2008_v43  ;;  %5003 = vpow2.f32 %v2138_v54 }
 0x6e0   : > { %v2136_v3 = vmul.f32 1.442695, %v2103_v59 }
 0x6e1   : > { %v2134_v61 = vmul.f32 1.442695, %v2102_v56 }
 0x6e2   : > { %v2017_v46 = vpop.xlane.xlu0 %2016 }
 0x6e3   : > { %v2105_v52 = vsub.f32 %v7029_v13, %v2017_v46 }
 0x6e4   : > { %2681 = vrot.lane.b32.xlu1 %v6912_v32, %s5944_s24 }
 0x6e5   : > { %v2140_v60 = vmul.f32 1.442695, %v2105_v52 }
 0x6e7   : > { %5005 = vpow2.f32 %v2140_v60 }
 0x6e8   : > { %5007 = vpow2.f32 %v2134_v61 }
 0x6e9   : > { %5009 = vpow2.f32 %v2136_v3  ;;  %v7169_v26 = vpop.eup %5003 }
 0x6ea   : > { %v2026_v53 = vpop.xlane.xlu1 %2025 }
 0x6eb   : > { %2742 = vrot.lane.b32.xlu0 %v6914_v33, %s5944_s24  ;;  %v2108_v33 = vsub.f32 %v7039_v18, %v2026_v53 }
 0x6ec   : > { %v2029_v32 = vpop.xlane.xlu0 %2028 }
 0x6ed   : > { %v2109_v5 = vsub.f32 %v7045_v23, %v2029_v32  ;;  %v2146_v13 = vmul.f32 1.442695, %v2108_v33  ;;  %v2204_v23 = vsel %vm1375_vm1, %v7169_v26, 0.0 }
 0x6ee   : > { %v2020_v0 = vpop.xlane.xlu1 %2019 }
 0x6ef   : > { %v2106_v12 = vsub.f32 %v7041_v19, %v2020_v0  ;;  %v2148_v11 = vmul.f32 1.442695, %v2109_v5  ;;  %5011 = vpow2.f32 %v2146_v13 }
 0x6f0   : > { %v2023_v10 = vpop.xlane.xlu0 %2022 }
 0x6f1   : > { %v2107_v17 = vsub.f32 %v7047_v24, %v2023_v10  ;;  %v2142_v14 = vmul.f32 1.442695, %v2106_v12  ;;  %5013 = vpow2.f32 %v2148_v11  ;;  %v7171_v27 = vpop.eup %5005 }
 0x6f2   : > { %v7175_v20 = vpop.eup %5007  ;;  %v2207_v19 = vsel %vm1375_vm1, %v7171_v27, 0.0 }
 0x6f3   : > { %v2144_v18 = vmul.f32 1.442695, %v2107_v17  ;;  %5015 = vpow2.f32 %v2142_v14  ;;  %v7179_v24 = vpop.eup %5009  ;;  %v2198_v21 = vsel %vm1375_vm1, %v7175_v20, 0.0 }
 0x6f4   : > { %v2201_v38 = vsel %vm1375_vm1, %v7179_v24, 0.0 }
 0x6f5   : > { %5017 = vpow2.f32 %v2144_v18 }
 0x6f9   : > { %v7183_v43 = vpop.eup %5011 }
 0x6fa   : > { %v2216_v51 = vsel %vm1375_vm1, %v7183_v43, 0.0 }
 0x6fb   : > { %v7187_v46 = vpop.eup %5013 }
 0x6fc   : > { %v2219_v53 = vsel %vm1375_vm1, %v7187_v46, 0.0 }
 0x6fd   : > { %v7191_v52 = vpop.eup %5015 }
 0x6fe   : > { %v2210_v56 = vsel %vm1375_vm1, %v7191_v52, 0.0 }
 0x6ff   : > { %v7195_v54 = vpop.eup %5017 }
 0x700   : > { %v2213_v32 = vsel %vm1375_vm1, %v7195_v54, 0.0 }
 0x708   : > { %2205 = vadd.xlane.f32.xlu1 %v2204_v23 }
 0x70a   : > { %2208 = vadd.xlane.f32.xlu0 %v2207_v19 }
 0x70c   : > { %2199 = vadd.xlane.f32.xlu1 %v2198_v21 }
 0x70e   : > { %2202 = vadd.xlane.f32.xlu0 %v2201_v38 }
 0x710   : > { %2217 = vadd.xlane.f32.xlu1 %v2216_v51 }
 0x712   : > { %2220 = vadd.xlane.f32.xlu0 %v2219_v53 }
 0x714   : > { %2211 = vadd.xlane.f32.xlu1 %v2210_v56 }
 0x716   : > { %2214 = vadd.xlane.f32.xlu0 %v2213_v32 }
 0x734   : > { %v2038_v59 = vpop.xlane.xlu1 %2037 }
 0x735   : > { %v2112_v60 = vsub.f32 %v7055_v30, %v2038_v59 }
 0x736   : > { %v2041_v61 = vpop.xlane.xlu0 %2040 }
 0x737   : > { %v2154_v33 = vmul.f32 1.442695, %v2112_v60  ;;  %v2113_v0 = vsub.f32 %v7061_v34, %v2041_v61 }
 0x738   : > { %v2032_v3 = vpop.xlane.xlu1 %2031 }
 0x739   : > { %5019 = vpow2.f32 %v2154_v33  ;;  %v2156_v5 = vmul.f32 1.442695, %v2113_v0  ;;  %v2110_v10 = vsub.f32 %v7057_v31, %v2032_v3 }
 0x73a   : > { %v2035_v13 = vpop.xlane.xlu0 %2034 }
 0x73b   : > { %5021 = vpow2.f32 %v2156_v5  ;;  %v2150_v12 = vmul.f32 1.442695, %v2110_v10  ;;  %v2111_v11 = vsub.f32 %v7063_v35, %v2035_v13 }
 0x73c   : > { %v2050_v17 = vpop.xlane.xlu1 %2049 }
 0x73d   : > { %5023 = vpow2.f32 %v2150_v12  ;;  %v2152_v14 = vmul.f32 1.442695, %v2111_v11  ;;  %v2116_v18 = vsub.f32 %v7071_v41, %v2050_v17 }
 0x73e   : > { %v2053_v30 = vpop.xlane.xlu0 %2052 }
 0x73f   : > { %5025 = vpow2.f32 %v2152_v14  ;;  %v2162_v23 = vmul.f32 1.442695, %v2116_v18  ;;  %v2117_v34 = vsub.f32 %v7077_v44, %v2053_v30 }
 0x740   : > { %v2044_v19 = vpop.xlane.xlu1 %2043 }
 0x741   : > { %5027 = vpow2.f32 %v2162_v23  ;;  %v2164_v21 = vmul.f32 1.442695, %v2117_v34  ;;  %v2114_v31 = vsub.f32 %v7073_v42, %v2044_v19 }
 0x742   : > { %v2047_v38 = vpop.xlane.xlu0 %2046 }
 0x743   : > { %v7208_v51 = vpop.eup %5019  ;;  %5029 = vpow2.f32 %v2164_v21  ;;  %v2158_v35 = vmul.f32 1.442695, %v2114_v31  ;;  %v2115_v53 = vsub.f32 %v7079_v29, %v2047_v38 }
 0x744   : > { %v2062_v56 = vpop.xlane.xlu1 %2061  ;;  %v2228_v41 = vsel %vm1375_vm1, %v7208_v51, 0.0 }
 0x745   : > { %v7213_v32 = vpop.eup %5021  ;;  %5031 = vpow2.f32 %v2158_v35  ;;  %v2160_v44 = vmul.f32 1.442695, %v2115_v53  ;;  %v2120_v59 = vsub.f32 %v7087_v47, %v2062_v56  ;;  %2229 = vadd.xlane.f32.xlu1 %v2228_v41 }
 0x746   : > { %v2065_v60 = vpop.xlane.xlu0 %2064  ;;  %v2231_v42 = vsel %vm1375_vm1, %v7213_v32, 0.0 }
 0x747   : > { %v7218_v61 = vpop.eup %5023  ;;  %5033 = vpow2.f32 %v2160_v44  ;;  %v2170_v33 = vmul.f32 1.442695, %v2120_v59  ;;  %v2121_v29 = vsub.f32 %v7093_v39, %v2065_v60  ;;  %2232 = vadd.xlane.f32.xlu0 %v2231_v42 }
 0x748   : > { %v2056_v0 = vpop.xlane.xlu1 %2055  ;;  %v2222_v3 = vsel %vm1375_vm1, %v7218_v61, 0.0 }
 0x749   : > { %v7223_v5 = vpop.eup %5025  ;;  %5035 = vpow2.f32 %v2170_v33  ;;  %v2172_v47 = vmul.f32 1.442695, %v2121_v29  ;;  %v2118_v10 = vsub.f32 %v7089_v50, %v2056_v0  ;;  %2223 = vadd.xlane.f32.xlu1 %v2222_v3 }
 0x74a   : > { %v2059_v13 = vpop.xlane.xlu0 %2058  ;;  %v2225_v12 = vsel %vm1375_vm1, %v7223_v5, 0.0 }
 0x74b   : > { %v7228_v11 = vpop.eup %5027  ;;  %5037 = vpow2.f32 %v2172_v47  ;;  %v2166_v39 = vmul.f32 1.442695, %v2118_v10  ;;  %v2119_v17 = vsub.f32 %v7095_v48, %v2059_v13  ;;  %2226 = vadd.xlane.f32.xlu0 %v2225_v12 }
 0x74c   : > { %v2074_v14 = vpop.xlane.xlu1 %2073  ;;  %v2240_v18 = vsel %vm1375_vm1, %v7228_v11, 0.0 }
 0x74d   : > { %v7233_v30 = vpop.eup %5029  ;;  %5039 = vpow2.f32 %v2166_v39  ;;  %v2168_v50 = vmul.f32 1.442695, %v2119_v17  ;;  %v2124_v23 = vsub.f32 %v7103_v49, %v2074_v14  ;;  %2241 = vadd.xlane.f32.xlu1 %v2240_v18 }
 0x74e   : > { %v2077_v34 = vpop.xlane.xlu0 %2076  ;;  %v2243_v19 = vsel %vm1375_vm1, %v7233_v30, 0.0 }
 0x74f   : > { %v7238_v21 = vpop.eup %5031  ;;  %5041 = vpow2.f32 %v2168_v50  ;;  %v2178_v48 = vmul.f32 1.442695, %v2124_v23  ;;  %v2125_v31 = vsub.f32 %v7109_v57, %v2077_v34  ;;  %2244 = vadd.xlane.f32.xlu0 %v2243_v19 }
 0x750   : > { %v2068_v38 = vpop.xlane.xlu1 %2067  ;;  %v2234_v35 = vsel %vm1375_vm1, %v7238_v21, 0.0 }
 0x751   : > { %v7243_v53 = vpop.eup %5033  ;;  %5043 = vpow2.f32 %v2178_v48  ;;  %v2122_v49 = vsub.f32 %v7105_v55, %v2068_v38  ;;  %2235 = vadd.xlane.f32.xlu1 %v2234_v35  ;;  %v2180_v59 = vmul.f32 1.442695, %v2125_v31 }
 0x752   : > { %v2071_v56 = vpop.xlane.xlu0 %2070  ;;  %v2237_v41 = vsel %vm1375_vm1, %v7243_v53, 0.0 }
 0x753   : > { %v7248_v44 = vpop.eup %5035  ;;  %v2174_v60 = vmul.f32 1.442695, %v2122_v49  ;;  %v2123_v57 = vsub.f32 %v7111_v58, %v2071_v56  ;;  %2238 = vadd.xlane.f32.xlu0 %v2237_v41 }
 0x754   : > { %v2086_v42 = vpop.xlane.xlu1 %2085  ;;  %v2252_v33 = vsel %vm1375_vm1, %v7248_v44, 0.0 }
 0x755   : > { %v7253_v29 = vpop.eup %5037  ;;  %5045 = vpow2.f32 %v2174_v60  ;;  %2253 = vadd.xlane.f32.xlu1 %v2252_v33  ;;  %v2176_v47 = vmul.f32 1.442695, %v2123_v57  ;;  %v2128_v10 = vsub.f32 %v7119_v62, %v2086_v42 }
 0x756   : > { %v2089_v55 = vpop.xlane.xlu0 %2088  ;;  %v2255_v0 = vsel %vm1375_vm1, %v7253_v29, 0.0  ;;  %5047 = vpow2.f32 %v2180_v59 }
 0x757   : > { %v7257_v3 = vpop.eup %5039  ;;  %2256 = vadd.xlane.f32.xlu0 %v2255_v0  ;;  %5049 = vpow2.f32 %v2176_v47  ;;  %v2186_v18 = vmul.f32 1.442695, %v2128_v10  ;;  %v2129_v23 = vsub.f32 %v7125_v1, %v2089_v55 }
 0x758   : > { %v2080_v58 = vpop.xlane.xlu1 %2079  ;;  %v2246_v13 = vsel %vm1375_vm1, %v7257_v3, 0.0 }
 0x759   : > { %v7262_v12 = vpop.eup %5041  ;;  %2247 = vadd.xlane.f32.xlu1 %v2246_v13  ;;  %v2126_v50 = vsub.f32 %v7121_v63, %v2080_v58  ;;  %5051 = vpow2.f32 %v2186_v18  ;;  %v2188_v35 = vmul.f32 1.442695, %v2129_v23 }
 0x75a   : > { %v2083_v39 = vpop.xlane.xlu0 %2082  ;;  %v2249_v17 = vsel %vm1375_vm1, %v7262_v12, 0.0 }
 0x75b   : > { %v7266_v14 = vpop.eup %5043  ;;  %2250 = vadd.xlane.f32.xlu0 %v2249_v17  ;;  %v2182_v48 = vmul.f32 1.442695, %v2126_v50  ;;  %v2127_v56 = vsub.f32 %v7127_v2, %v2083_v39 }
 0x75c   : > { %v2264_v62 = vsel %vm1375_vm1, %v7266_v14, 0.0  ;;  %v2098_v63 = vpop.xlane.xlu1 %2097 }
 0x75d   : > { %2265 = vadd.xlane.f32.xlu1 %v2264_v62  ;;  %5053 = vpow2.f32 %v2182_v48  ;;  %v2184_v57 = vmul.f32 1.442695, %v2127_v56  ;;  %v2132_v42 = vsub.f32 %v7135_v15, %v2098_v63 }
 0x75e   : > { %v2101_v34 = vpop.xlane.xlu0 %2100  ;;  %5055 = vpow2.f32 %v2188_v35 }
 0x75f   : > { %v7272_v19 = vpop.eup %5045  ;;  %v2194_v2 = vmul.f32 1.442695, %v2132_v42  ;;  %v2133_v15 = vsub.f32 %v7141_v22, %v2101_v34 }
 0x760   : > { %v2258_v31 = vsel %vm1375_vm1, %v7272_v19, 0.0  ;;  %v7276_v38 = vpop.eup %5047  ;;  %v2092_v33 = vpop.xlane.xlu1 %2091 }
 0x761   : > { %2259 = vadd.xlane.f32.xlu0 %v2258_v31  ;;  %v2267_v1 = vsel %vm1375_vm1, %v7276_v38, 0.0  ;;  %v7282_v59 = vpop.eup %5049  ;;  %v2196_v18 = vmul.f32 1.442695, %v2133_v15 }
 0x762   : > { %v2095_v49 = vpop.xlane.xlu0 %2094  ;;  %v2261_v55 = vsel %vm1375_vm1, %v7282_v59, 0.0 }
 0x763   : > { %v2131_v41 = vsub.f32 %v7143_v25, %v2095_v49  ;;  %v7287_v0 = vpop.eup %5051  ;;  %v2130_v25 = vsub.f32 %v7137_v16, %v2092_v33 }
 0x764   : > { %v2276_v47 = vsel %vm1375_vm1, %v7287_v0, 0.0  ;;  %v7323_v49 = vpop.permute.xlu1 %2681 }
 0x765   : > { %v2192_v60 = vmul.f32 1.442695, %v2131_v41  ;;  %2268 = vadd.xlane.f32.xlu0 %v2267_v1  ;;  %v2190_v58 = vmul.f32 1.442695, %v2130_v25 }
 0x766   : > { %v7325_v56 = vpop.permute.xlu0 %2742 }
 0x767   : > { %5057 = vpow2.f32 %v2192_v60  ;;  %v7292_v10 = vpop.eup %5053 }
 0x768   : > { %5059 = vpow2.f32 %v2184_v57  ;;  %v7295_v13 = vpop.eup %5055  ;;  %v2270_v39 = vsel %vm1375_vm1, %v7292_v10, 0.0 }
 0x769   : > { %2262 = vadd.xlane.f32.xlu0 %v2261_v55  ;;  %5061 = vpow2.f32 %v2194_v2  ;;  %v2279_v50 = vsel %vm1375_vm1, %v7295_v13, 0.0 }
 0x76a   : > { %5063 = vpow2.f32 %v2190_v58 }
 0x76b   : > { %5065 = vpow2.f32 %v2196_v18 }
 0x76d   : > { %2277 = vadd.xlane.f32.xlu0 %v2276_v47 }
 0x771   : > { %v7299_v17 = vpop.eup %5057  ;;  %2271 = vadd.xlane.f32.xlu0 %v2270_v39 }
 0x772   : > { %v2285_v16 = vsel %vm1375_vm1, %v7299_v17, 0.0  ;;  %v7305_v62 = vpop.eup %5059 }
 0x773   : > { %2286 = vadd.xlane.f32.xlu1 %v2285_v16  ;;  %v2273_v22 = vsel %vm1375_vm1, %v7305_v62, 0.0  ;;  %v7309_v23 = vpop.eup %5061 }
 0x774   : > { %v2288_v34 = vsel %vm1375_vm1, %v7309_v23, 0.0  ;;  %v7313_v48 = vpop.eup %5063 }
 0x775   : > { %2280 = vadd.xlane.f32.xlu0 %v2279_v50  ;;  %v2282_v31 = vsel %vm1375_vm1, %v7313_v48, 0.0  ;;  %v7317_v35 = vpop.eup %5065 }
 0x776   : > { %v2291_v63 = vsel %vm1375_vm1, %v7317_v35, 0.0 }
 0x779   : > { %2274 = vadd.xlane.f32.xlu0 %v2273_v22 }
 0x77d   : > { %2289 = vadd.xlane.f32.xlu0 %v2288_v34 }
 0x781   : > { %2283 = vadd.xlane.f32.xlu0 %v2282_v31 }
 0x784   : > { %2801 = vrot.lane.b32.xlu1 %v6925_v37, %s5944_s24 }
 0x785   : > { %2292 = vadd.xlane.f32.xlu0 %v2291_v63 }
 0x795   : > { %v2206_v41 = vpop.xlane.xlu1 %2205 }
 0x797   : > { %v2209_v1 = vpop.xlane.xlu0 %2208 }
 0x798   : > { %5067 = vrcp.f32 %v2209_v1 }
 0x799   : > { %v2200_v60 = vpop.xlane.xlu1 %2199 }
 0x79a   : > { %5069 = vrcp.f32 %v2200_v60 }
 0x79b   : > { %5071 = vrcp.f32 %v2206_v41  ;;  %2803 = vrot.lane.b32.xlu0 %v6929_v40, %s5944_s24  ;;  %v2203_v57 = vpop.xlane.xlu0 %2202 }
 0x79c   : > { %5073 = vrcp.f32 %v2203_v57 }
 0x79d   : > { %v2218_v37 = vpop.xlane.xlu1 %2217 }
 0x79f   : > { %v2221_v42 = vpop.xlane.xlu0 %2220 }
 0x7a0   : > { %5075 = vrcp.f32 %v2221_v42 }
 0x7a1   : > { %v2212_v33 = vpop.xlane.xlu1 %2211 }
 0x7a2   : > { %5077 = vrcp.f32 %v2212_v33  ;;  %v5068_v55 = vpop.eup %5067 }
 0x7a3   : > { %5079 = vrcp.f32 %v2218_v37  ;;  %v2215_v2 = vpop.xlane.xlu0 %2214  ;;  %v2301_v58 = vmul.f32 %v5068_v55, %v7171_v27 }
 0x7a4   : > { %v5070_v25 = vpop.eup %5069  ;;  %5081 = vrcp.f32 %v2215_v2 }
 0x7a5   : > { %v5072_v47 = vpop.eup %5071  ;;  %v2295_v39 = vmul.f32 %v5070_v25, %v7175_v20 }
 0x7a6   : > { %v5074_v15 = vpop.eup %5073  ;;  %v2299_v16 = vmul.f32 %v5072_v47, %v7169_v26 }
 0x7a7   : > { %v2297_v40 = vmul.f32 %v5074_v15, %v7179_v24 }
 0x7a8   : > { %v2359_v50 = vpack.c.bf16 %v2301_v58, %v2299_v16 }
 0x7a9   : > { %v2358_v18 = vpack.c.bf16 %v2297_v40, %v2295_v39 }
 0x7aa   : > { %v5076_v22 = vpop.eup %5075 }
 0x7ab   : > { %4550 = vmatprep.mubr.msk.bf16.mxu1 %vm1375_vm1, %v2358_v18  ;;  %v2309_v27 = vmul.f32 %v5076_v22, %v7187_v46 }
 0x7ac   : > { %v5078_v34 = vpop.eup %5077  ;;  %4551 = vmatmul.mubr.msk.bf16.vlgmr.msra.gmra.mrb[12].mxu1 %vm1375_vm1, %v2359_v50 }
 0x7ad   : > { %v5080_v31 = vpop.eup %5079  ;;  %4563 = vmatpush3.bf16.msra.mxu1 %v7013_v7  ;;  %v2303_v20 = vmul.f32 %v5078_v34, %v7191_v52 }
 0x7ae   : > { %v5082_v63 = vpop.eup %5081  ;;  %4564 = vmatprep.subr.bf16.mxu1 %v7151_v36  ;;  %v2307_v24 = vmul.f32 %v5080_v31, %v7183_v43 }
 0x7af   : > { %v2305_v26 = vmul.f32 %v5082_v63, %v7195_v54 }
 0x7b0   : > { %v2361_v1 = vpack.c.bf16 %v2309_v27, %v2307_v24 }
 0x7b1   : > { %4565 = vmatpush3.bf16.msra.mxu1 %v7151_v36  ;;  %v2360_v41 = vpack.c.bf16 %v2305_v26, %v2303_v20 }
 0x7b2   : > { %4578 = vmatprep.subr.bf16.mxu1 %v7006_v4 }
 0x7b3   : > { %4558 = vmatprep.mubr.msk.bf16.mxu0 %vm1375_vm1, %v2360_v41 }
 0x7b4   : > { %4559 = vmatmul.mubr.msk.bf16.vlgmr.msra.gmra.mrb[28].mxu0 %vm1375_vm1, %v2361_v1 }
 0x7b5   : > { %4571 = vmatpush3.bf16.msra.mxu0 %v7020_v9 }
 0x7b6   : > { %4572 = vmatprep.subr.bf16.mxu0 %v7155_v28 }
 0x7b9   : > { %4573 = vmatpush3.bf16.msra.mxu0 %v7155_v28 }
 0x7ba   : > { %4586 = vmatprep.subr.bf16.mxu0 %v7159_v45 }
 0x7d2   : > { %v2230_v7 = vpop.xlane.xlu1 %2229 }
 0x7d4   : > { %v2233_v43 = vpop.xlane.xlu0 %2232 }
 0x7d5   : > { %5083 = vrcp.f32 %v2233_v43 }
 0x7d6   : > { %v2224_v36 = vpop.xlane.xlu1 %2223 }
 0x7d7   : > { %5085 = vrcp.f32 %v2224_v36 }
 0x7d8   : > { %5087 = vrcp.f32 %v2230_v7  ;;  %v2227_v46 = vpop.xlane.xlu0 %2226 }
 0x7d9   : > { %5089 = vrcp.f32 %v2227_v46 }
 0x7da   : > { %v2242_v52 = vpop.xlane.xlu1 %2241 }
 0x7dc   : > { %v2245_v54 = vpop.xlane.xlu0 %2244 }
 0x7dd   : > { %5091 = vrcp.f32 %v2245_v54 }
 0x7de   : > { %v2236_v60 = vpop.xlane.xlu1 %2235 }
 0x7df   : > { %5093 = vrcp.f32 %v2236_v60  ;;  %v5084_v9 = vpop.eup %5083 }
 0x7e0   : > { %5095 = vrcp.f32 %v2242_v52  ;;  %v2239_v57 = vpop.xlane.xlu0 %2238  ;;  %v2317_v55 = vmul.f32 %v5084_v9, %v7213_v32 }
 0x7e1   : > { %v5086_v37 = vpop.eup %5085  ;;  %5097 = vrcp.f32 %v2239_v57 }
 0x7e2   : > { %v5088_v28 = vpop.eup %5087  ;;  %v2254_v42 = vpop.xlane.xlu1 %2253  ;;  %v2311_v25 = vmul.f32 %v5086_v37, %v7218_v61 }
 0x7e3   : > { %v5090_v33 = vpop.eup %5089  ;;  %v2315_v15 = vmul.f32 %v5088_v28, %v7208_v51 }
 0x7e4   : > { %v2257_v2 = vpop.xlane.xlu0 %2256  ;;  %v2313_v47 = vmul.f32 %v5090_v33, %v7223_v5 }
 0x7e5   : > { %5099 = vrcp.f32 %v2257_v2  ;;  %v2363_v40 = vpack.c.bf16 %v2317_v55, %v2315_v15 }
 0x7e6   : > { %v2248_v58 = vpop.xlane.xlu1 %2247  ;;  %v2362_v39 = vpack.c.bf16 %v2313_v47, %v2311_v25 }
 0x7e7   : > { %5101 = vrcp.f32 %v2248_v58  ;;  %v5092_v16 = vpop.eup %5091 }
 0x7e8   : > { %5103 = vrcp.f32 %v2254_v42  ;;  %4566 = vmatprep.mubr.msk.bf16.mxu1 %vm1375_vm1, %v2362_v39  ;;  %v2251_v18 = vpop.xlane.xlu0 %2250  ;;  %v2325_v51 = vmul.f32 %v5092_v16, %v7233_v30 }
 0x7e9   : > { %v5094_v50 = vpop.eup %5093  ;;  %5105 = vrcp.f32 %v2251_v18  ;;  %4567 = vmatmul.mubr.msk.bf16.vlgmr.msra.gmra.mrb[16].mxu1 %vm1375_vm1, %v2363_v40 }
 0x7ea   : > { %v5096_v32 = vpop.eup %5095  ;;  %4579 = vmatpush3.bf16.msra.mxu1 %v7006_v4  ;;  %v2319_v5 = vmul.f32 %v5094_v50, %v7238_v21  ;;  %v2266_v26 = vpop.xlane.xlu1 %2265 }
 0x7eb   : > { %v5098_v61 = vpop.eup %5097  ;;  %4580 = vmatprep.subr.bf16.mxu1 %v7011_v6  ;;  %v2323_v34 = vmul.f32 %v5096_v32, %v7228_v11 }
 0x7ec   : > { %v2321_v22 = vmul.f32 %v5098_v61, %v7243_v53 }
 0x7ed   : > { %v2365_v27 = vpack.c.bf16 %v2325_v51, %v2323_v34 }
 0x7ee   : > { %4581 = vmatpush3.bf16.msra.mxu1 %v7011_v6  ;;  %v2260_v31 = vpop.xlane.xlu0 %2259  ;;  %v2364_v63 = vpack.c.bf16 %v2321_v22, %v2319_v5 }
 0x7ef   : > { %4594 = vmatprep.subr.bf16.mxu1 %v7016_v8  ;;  %v5100_v20 = vpop.eup %5099 }
 0x7f0   : > { %4574 = vmatprep.mubr.msk.bf16.mxu0 %vm1375_vm1, %v2364_v63  ;;  %v2333_v11 = vmul.f32 %v5100_v20, %v7253_v29 }
 0x7f1   : > { %v5102_v4 = vpop.eup %5101  ;;  %4575 = vmatmul.mubr.msk.bf16.vlgmr.msra.gmra.mrb[32].mxu0 %vm1375_vm1, %v2365_v27 }
 0x7f2   : > { %v5104_v30 = vpop.eup %5103  ;;  %4587 = vmatpush3.bf16.msra.mxu0 %v7159_v45  ;;  %v2269_v21 = vpop.xlane.xlu0 %2268  ;;  %v2327_v6 = vmul.f32 %v5102_v4, %v7257_v3 }
 0x7f3   : > { %v5106_v53 = vpop.eup %5105  ;;  %4588 = vmatprep.subr.bf16.mxu0 %v7323_v49  ;;  %5107 = vrcp.f32 %v2269_v21  ;;  %v2331_v41 = vmul.f32 %v5104_v30, %v7248_v44 }
 0x7f4   : > { %v2329_v24 = vmul.f32 %v5106_v53, %v7262_v12  ;;  %5109 = vrcp.f32 %v2260_v31 }
 0x7f5   : > { %5111 = vrcp.f32 %v2266_v26  ;;  %v2367_v7 = vpack.c.bf16 %v2333_v11, %v2331_v41 }
 0x7f6   : > { %4589 = vmatpush3.bf16.msra.mxu0 %v7323_v49  ;;  %v2263_v1 = vpop.xlane.xlu0 %2262  ;;  %v2366_v45 = vpack.c.bf16 %v2329_v24, %v2327_v6  ;;  %v4991_v24 = vld [vmem:[%s983_s9] sm:$0xff]  }
 0x7f7   : > { %5113 = vrcp.f32 %v2263_v1 }
 0x7f8   : > { %4582 = vmatprep.mubr.msk.bf16.mxu1 %vm1375_vm1, %v2366_v45 }
 0x7f9   : > { %4583 = vmatmul.mubr.msk.bf16.vlgmr.msra.gmra.mrb[20].mxu1 %vm1375_vm1, %v2367_v7 }
 0x7fa   : > { %4595 = vmatpush3.bf16.msra.mxu1 %v7016_v8  ;;  %v2278_v29 = vpop.xlane.xlu0 %2277 }
 0x7fb   : > { %4596 = vmatprep.subr.bf16.mxu1 %v7325_v56 }
 0x7fd   : > { %v5108_v3 = vpop.eup %5107 }
 0x7fe   : > { %4597 = vmatpush3.bf16.msra.mxu1 %v7325_v56  ;;  %v2272_v44 = vpop.xlane.xlu0 %2271  ;;  %v5110_v12 = vpop.eup %5109  ;;  %v2341_v46 = vmul.f32 %v5108_v3, %v7276_v38 }
 0x7ff   : > { %v5112_v43 = vpop.eup %5111  ;;  %v2335_v54 = vmul.f32 %v5110_v12, %v7272_v19  ;;  %4610 = vmatprep.subr.bf16.mxu1 %v4991_v24 }
 0x800   : > { %v2287_v49 = vpop.xlane.xlu1 %2286  ;;  %v2339_v8 = vmul.f32 %v5112_v43, %v7266_v14 }
 0x801   : > { %v5114_v36 = vpop.eup %5113 }
 0x802   : > { %v2281_v52 = vpop.xlane.xlu0 %2280  ;;  %v2337_v60 = vmul.f32 %v5114_v36, %v7282_v59  ;;  %v2369_v56 = vpack.c.bf16 %v2341_v46, %v2339_v8 }
 0x803   : > { %5115 = vrcp.f32 %v2281_v52 }
 0x804   : > { %v2802_v9 = vpop.permute.xlu1 %2801  ;;  %v2368_v57 = vpack.c.bf16 %v2337_v60, %v2335_v54  ;;  %5117 = vrcp.f32 %v2272_v44  ;;  %v4992_v54 = vld [vmem:[%s983_s9 + $0x8] sm:$0xff]  }
 0x805   : > { %4602 = vmatprep.subr.bf16.mxu0 %v2802_v9  ;;  %5119 = vrcp.f32 %v2278_v29 }
 0x806   : > { %4590 = vmatprep.mubr.msk.bf16.mxu0 %vm1375_vm1, %v2368_v57  ;;  %v2275_v37 = vpop.xlane.xlu0 %2274 }
 0x807   : > { %5121 = vrcp.f32 %v2275_v37  ;;  %4591 = vmatmul.mubr.msk.bf16.vlgmr.msra.gmra.mrb[36].mxu0 %vm1375_vm1, %v2369_v56 }
 0x808   : > { %4603 = vmatpush3.bf16.msra.mxu0 %v2802_v9  ;;  %5123 = vrcp.f32 %v2287_v49 }
 0x80a   : > { %v2290_v38 = vpop.xlane.xlu0 %2289 }
 0x80d   : > { %v5116_v19 = vpop.eup %5115 }
 0x80e   : > { %v2284_v59 = vpop.xlane.xlu0 %2283  ;;  %v5118_v28 = vpop.eup %5117  ;;  %v2349_v33 = vmul.f32 %v5116_v19, %v7295_v13 }
 0x80f   : > { %5125 = vrcp.f32 %v2284_v59  ;;  %v5120_v14 = vpop.eup %5119  ;;  %v2343_v2 = vmul.f32 %v5118_v28, %v7292_v10 }
 0x810   : > { %5127 = vrcp.f32 %v2290_v38  ;;  %v2347_v47 = vmul.f32 %v5120_v14, %v7287_v0 }
 0x811   : > { %v5122_v42 = vpop.eup %5121 }
 0x812   : > { %v2293_v55 = vpop.xlane.xlu0 %2292  ;;  %v2345_v25 = vmul.f32 %v5122_v42, %v7305_v62  ;;  %v2371_v58 = vpack.c.bf16 %v2349_v33, %v2347_v47  ;;  %v5124_v40 = vpop.eup %5123 }
 0x813   : > { %5129 = vrcp.f32 %v2293_v55  ;;  %v2353_v10 = vmul.f32 %v5124_v40, %v7299_v17 }
 0x814   : > { %v2370_v15 = vpack.c.bf16 %v2345_v25, %v2343_v2 }
 0x816   : > { %4598 = vmatprep.mubr.msk.bf16.mxu1 %vm1375_vm1, %v2370_v15  ;;  %v2804_v39 = vpop.permute.xlu0 %2803 }
 0x817   : > { %4599 = vmatmul.mubr.msk.bf16.vlgmr.msra.gmra.mrb[24].mxu1 %vm1375_vm1, %v2371_v58  ;;  %4604 = vmatprep.subr.bf16.mxu0 %v2804_v39 }
 0x818   : > { %4605 = vmatpush3.bf16.msra.mxu0 %v2804_v39  ;;  %4611 = vmatpush3.bf16.msra.mxu1 %v4991_v24 }
 0x819   : > { %v5126_v13 = vpop.eup %5125  ;;  %4612 = vmatprep.subr.bf16.mxu1 %v4992_v54 }
 0x81a   : > { %v2351_v16 = vmul.f32 %v5126_v13, %v7313_v48  ;;  %v5128_v18 = vpop.eup %5127 }
 0x81b   : > { %v2355_v0 = vmul.f32 %v5128_v18, %v7309_v23 }
 0x81c   : > { %v2372_v62 = vpack.c.bf16 %v2353_v10, %v2351_v16  ;;  %4613 = vmatpush3.bf16.msra.mxu1 %v4992_v54 }
 0x81d   : > { %v5130_v50 = vpop.eup %5129 }
 0x81e   : > { %v2357_v32 = vmul.f32 %v5130_v50, %v7317_v35  ;;  %4606 = vmatprep.mubr.msk.bf16.mxu0 %vm1375_vm1, %v2372_v62 }
 0x820   : > { %v2373_v61 = vpack.c.bf16 %v2357_v32, %v2355_v0 }
 0x822   : > { %4607 = vmatmul.mubr.msk.bf16.vlgmr.msra.gmra.mrb[40].mxu0 %vm1375_vm1, %v2373_v61 }
 0x87f   : > { %v7395_v51 = vpop.f32.mrb[12].mxu1 }
 0x880   : > { %v7397_v5 = vpop.f32.mrb[13].mxu1 }
 0x881   : > { %v7399_v22 = vpop.f32.mrb[14].mxu1 }
 0x882   : > { %v7401_v48 = vpop.f32.mrb[15].mxu1 }
 0x887   : > { %v7403_v17 = vpop.f32.mrb[28].mxu0 }
 0x888   : > { %v7405_v34 = vpop.f32.mrb[29].mxu0 }
 0x889   : > { %v7407_v23 = vpop.f32.mrb[30].mxu0 }
 0x88a   : > { %v7409_v35 = vpop.f32.mrb[31].mxu0 }
 0x8bc   : > { %v4568_v31 = vpop.f32.mrb[16].mxu1 }
 0x8bd   : > { %v2542_v63 = vpop.f32.mrb[17].mxu1 }
 0x8be   : > { %v4569_v27 = vpop.f32.mrb[18].mxu1 }
 0x8bf   : > { %v4929_v20 = vpack.i.bf16 %v4569_v27, %v4568_v31  ;;  %v2545_v4 = vpop.f32.mrb[19].mxu1 }
 0x8c0   : > { %v4934_v30 = vpack.i.bf16 %v2545_v4, %v2542_v63 }
 0x8c1   : > { %4930 = vrot.lane.b32.xlu0 %v4929_v20, %s5945_s0 }
 0x8c2   : > { %4935 = vrot.lane.b32.xlu1 %v4934_v30, %s5945_s0 }
 0x8c4   : > { %v4576_v21 = vpop.f32.mrb[32].mxu0 }
 0x8c5   : > { %v2603_v53 = vpop.f32.mrb[33].mxu0 }
 0x8c6   : > { %v4577_v11 = vpop.f32.mrb[34].mxu0 }
 0x8c7   : > { %v4939_v26 = vpack.i.bf16 %v4577_v11, %v4576_v21  ;;  %v2606_v6 = vpop.f32.mrb[35].mxu0 }
 0x8c8   : > { %v4944_v41 = vpack.i.bf16 %v2606_v6, %v2603_v53 }
 0x8c9   : > { %4940 = vrot.lane.b32.xlu0 %v4939_v26, %s5945_s0 }
 0x8ca   : > { %4945 = vrot.lane.b32.xlu1 %v4944_v41, %s5945_s0 }
 0x8cc   : > { %v4584_v1 = vpop.f32.mrb[20].mxu1 }
 0x8cd   : > { %v2664_v45 = vpop.f32.mrb[21].mxu1 }
 0x8ce   : > { %v4585_v7 = vpop.f32.mrb[22].mxu1 }
 0x8cf   : > { %v4949_v29 = vpack.i.bf16 %v4585_v7, %v4584_v1  ;;  %v2667_v3 = vpop.f32.mrb[23].mxu1 }
 0x8d0   : > { %v4954_v44 = vpack.i.bf16 %v2667_v3, %v2664_v45 }
 0x8d1   : > { %4950 = vrot.lane.b32.xlu0 %v4949_v29, %s5946_s27 }
 0x8d2   : > { %4955 = vrot.lane.b32.xlu1 %v4954_v44, %s5946_s27 }
 0x8da   : > { %v4592_v12 = vpop.f32.mrb[36].mxu0 }
 0x8db   : > { %v2725_v43 = vpop.f32.mrb[37].mxu0 }
 0x8dc   : > { %v4593_v49 = vpop.f32.mrb[38].mxu0 }
 0x8dd   : > { %v4974_v36 = vpack.i.bf16 %v4593_v49, %v4592_v12  ;;  %v2728_v46 = vpop.f32.mrb[39].mxu0 }
 0x8de   : > { %v4969_v52 = vpack.i.bf16 %v2728_v46, %v2725_v43 }
 0x8ea   : > { %v4600_v60 = vpop.f32.mrb[24].mxu1 }
 0x8eb   : > { %v2786_v8 = vpop.f32.mrb[25].mxu1 }
 0x8ec   : > { %v4601_v9 = vpop.f32.mrb[26].mxu1 }
 0x8ed   : > { %v4959_v57 = vpack.i.bf16 %v4601_v9, %v4600_v60  ;;  %v2789_v56 = vpop.f32.mrb[27].mxu1 }
 0x8ee   : > { %v4964_v37 = vpack.i.bf16 %v2789_v56, %v2786_v8 }
 0x8ef   : > { %4960 = vrot.lane.b32.xlu0 %v4959_v57, %s5947_s26 }
 0x8f0   : > { %4965 = vrot.lane.b32.xlu1 %v4964_v37, %s5947_s26 }
 0x8f3   : > { %4975 = vrot.lane.b32.xlu0 %v4974_v36, %s5946_s27 }
 0x8f4   : > { %4970 = vrot.lane.b32.xlu1 %v4969_v52, %s5946_s27 }
 0x8f5   : > { %v4608_v38 = vpop.f32.mrb[40].mxu0 }
 0x8f6   : > { %v2847_v19 = vpop.f32.mrb[41].mxu0 }
 0x8f7   : > { %v4609_v59 = vpop.f32.mrb[42].mxu0 }
 0x8f8   : > { %v4984_v28 = vpack.i.bf16 %v4609_v59, %v4608_v38  ;;  %v2850_v14 = vpop.f32.mrb[43].mxu0 }
 0x8f9   : > { %v4979_v42 = vpack.i.bf16 %v2850_v14, %v2847_v19 }
 0x8fa   : > { %4985 = vrot.lane.b32.xlu0 %v4984_v28, %s5947_s26 }
 0x8fb   : > { %4980 = vrot.lane.b32.xlu1 %v4979_v42, %s5947_s26 }
 0x933   : > { %v4931_v33 = vpop.permute.xlu0 %4930 }
 0x934   : > { %v4936_v55 = vpop.permute.xlu1 %4935  ;;  %v4933_v15 = vunpack.i.h.bf16 %v4931_v33  ;;  %v4932_v58 = vunpack.i.l.bf16 %v4931_v33  ;;  %v4324_v33 = vld [vmem:[%s991_s15] ss:$0 sm:$0xff] }
 0x935   : > { %v4938_v40 = vunpack.i.h.bf16 %v4936_v55  ;;  %v4937_v13 = vunpack.i.l.bf16 %v4936_v55 }
 0x936   : > { %v2961_v50 = vsel %vm1489_vm2, %v7399_v22, %v4933_v15  ;;  %v2960_v0 = vsel %vm1489_vm2, %v7395_v51, %v4932_v58 }
 0x937   : > { %v2959_v61 = vsel %vm1489_vm2, %v7401_v48, %v4938_v40  ;;  %v2958_v31 = vsel %vm1489_vm2, %v7397_v5, %v4937_v13  ;;  %v5163_v40 = vld [vmem:[#allocation2] sm:$0xff] }
 0x93b   : > { %v4941_v2 = vpop.permute.xlu0 %4940 }
 0x93c   : > { %v4946_v25 = vpop.permute.xlu1 %4945  ;;  %v4943_v1 = vunpack.i.h.bf16 %v4941_v2  ;;  %v4942_v45 = vunpack.i.l.bf16 %v4941_v2 }
 0x93d   : > { %v4948_v29 = vunpack.i.h.bf16 %v4946_v25  ;;  %v4947_v3 = vunpack.i.l.bf16 %v4946_v25 }
 0x93e   : > { %v2965_v36 = vsel %vm1489_vm2, %v7407_v23, %v4943_v1  ;;  %v2964_v46 = vsel %vm1489_vm2, %v7403_v17, %v4942_v45  ;;  %v5170_v45 = vld [vmem:[#allocation2 + $0x38] sm:$0xff] }
 0x93f   : > { %v2963_v54 = vsel %vm1489_vm2, %v7409_v35, %v4948_v29  ;;  %v2962_v60 = vsel %vm1489_vm2, %v7405_v34, %v4947_v3 }
 0x943   : > { %v4951_v47 = vpop.permute.xlu0 %4950 }
 0x944   : > { %v4956_v39 = vpop.permute.xlu1 %4955  ;;  %v4953_v16 = vunpack.i.h.bf16 %v4951_v47  ;;  %v4952_v10 = vunpack.i.l.bf16 %v4951_v47 }
 0x945   : > { %v4958_v18 = vunpack.i.h.bf16 %v4956_v39  ;;  %v4957_v62 = vunpack.i.l.bf16 %v4956_v39 }
 0x946   : > { %v2969_v4 = vsel %vm2966_vm3, %v2960_v0, %v4952_v10  ;;  %v2970_v30 = vsel %vm2966_vm3, %v2961_v50, %v4953_v16  ;;  %v5164_v10 = vld [vmem:[#allocation2 + $0x18] sm:$0xff] }
 0x947   : > { %v2968_v53 = vsel %vm2966_vm3, %v2959_v61, %v4958_v18  ;;  %v2967_v51 = vsel %vm2966_vm3, %v2958_v31, %v4957_v62  ;;  %v5165_v62 = vld [vmem:[#allocation2 + $0x8] sm:$0xff] }
 0x961   : > { %v4961_v32 = vpop.permute.xlu0 %4960 }
 0x962   : > { %v4963_v63 = vunpack.i.h.bf16 %v4961_v32  ;;  %v4962_v27 = vunpack.i.l.bf16 %v4961_v32  ;;  %v4966_v20 = vpop.permute.xlu1 %4965  ;;  %v5166_v32 = vld [vmem:[#allocation2 + $0x10] sm:$0xff] }
 0x963   : > { %v4968_v21 = vunpack.i.h.bf16 %v4966_v20  ;;  %v4967_v22 = vunpack.i.l.bf16 %v4966_v20 }
 0x964   : > { %v2978_v11 = vsel %vm2975_vm4, %v2969_v4, %v4962_v27  ;;  %v2979_v48 = vsel %vm2975_vm4, %v2970_v30, %v4963_v63 }
 0x965   : > { %v2985_v26 = vpack.c.bf16 %v2979_v48, %v2978_v11  ;;  %v2977_v5 = vsel %vm2975_vm4, %v2968_v53, %v4968_v21  ;;  %v2976_v6 = vsel %vm2975_vm4, %v2967_v51, %v4967_v22  ;;  %v4976_v41 = vpop.permute.xlu0 %4975  ;;  %v5167_v51 = vld [vmem:[#allocation2 + $0x20] sm:$0xff] }
 0x966   : > { %v2984_v24 = vpack.c.bf16 %v2977_v5, %v2976_v6  ;;  %v4971_v7 = vpop.permute.xlu1 %4970  ;;  %v4978_v44 = vunpack.i.h.bf16 %v4976_v41  ;;  %v4977_v12 = vunpack.i.l.bf16 %v4976_v41  ;;  %v5168_v5 = vld [vmem:[#allocation2 + $0x30] sm:$0xff] }
 0x967   : > { %v4973_v43 = vunpack.i.h.bf16 %v4971_v7  ;;  %v4972_v49 = vunpack.i.l.bf16 %v4971_v7 }
 0x968   : > { %4614 = vmatprep.mubr.msk.bf16.mxu1 %vm1375_vm1, %v2984_v24  ;;  %v2973_v56 = vsel %vm2966_vm3, %v2964_v46, %v4977_v12  ;;  %v2974_v37 = vsel %vm2966_vm3, %v2965_v36, %v4978_v44  ;;  %v5169_v24 = vld [vmem:[#allocation2 + $0x28] sm:$0xff] }
 0x969   : > { %4615 = vmatmul.mubr.msk.bf16.vlgmr.msra.gmra.mrb[28].mxu1 %vm1375_vm1, %v2985_v26  ;;  %v2972_v19 = vsel %vm2966_vm3, %v2963_v54, %v4973_v43  ;;  %v2971_v17 = vsel %vm2966_vm3, %v2962_v60, %v4972_v49 }
 0x96c   : > { %v4986_v52 = vpop.permute.xlu0 %4985 }
 0x96d   : > { %v4988_v8 = vunpack.i.h.bf16 %v4986_v52  ;;  %v4987_v9 = vunpack.i.l.bf16 %v4986_v52  ;;  %v4981_v57 = vpop.permute.xlu1 %4980 }
 0x96e   : > { %v4983_v38 = vunpack.i.h.bf16 %v4981_v57  ;;  %v4982_v23 = vunpack.i.l.bf16 %v4981_v57 }
 0x96f   : > { %v2982_v59 = vsel %vm2975_vm4, %v2973_v56, %v4987_v9  ;;  %v2983_v35 = vsel %vm2975_vm4, %v2974_v37, %v4988_v8 }
 0x970   : > { %v2987_v28 = vpack.c.bf16 %v2983_v35, %v2982_v59  ;;  %v2981_v34 = vsel %vm2975_vm4, %v2972_v19, %v4983_v38  ;;  %v2980_v14 = vsel %vm2975_vm4, %v2971_v17, %v4982_v23 }
 0x971   : > { %v2986_v42 = vpack.c.bf16 %v2981_v34, %v2980_v14 }
 0x973   : > { %4618 = vmatprep.mubr.msk.bf16.mxu1 %vm1375_vm1, %v2986_v42 }
 0x974   : > { %4619 = vmatmul.mubr.msk.bf16.gmra.mrb[32].mxu1 %vm1375_vm1, %v2987_v28 }
 0xa3c   : > { %v4616_v55 = vpop.f32.mrb[28].mxu1 }
 0xa3d   : > { %v3057_v2 = vpop.f32.mrb[29].mxu1  ;;  %v3066_v39 = vadd.f32 %v4616_v55, %v4324_v33 }
 0xa3e   : > { %v3058_v25 = vadd.f32 %v4324_v33, %v3057_v2  ;;  %v4617_v47 = vpop.f32.mrb[30].mxu1 }
 0xa3f   : > { %v3069_v15 = vadd.f32 %v4617_v47, %v4324_v33  ;;  %v3060_v58 = vpop.f32.mrb[31].mxu1  ;;  %v3090_v61 = vadd.f32 %v5166_v32, %v3066_v39 }
 0xa40   : > { %v3088_v13 = vadd.f32 %v5163_v40, %v3058_v25  ;;  %v3061_v16 = vadd.f32 %v4324_v33, %v3060_v58 }
 0xa41   : > { %v3091_v18 = vadd.f32 %v5164_v10, %v3069_v15  ;;  %v3104_v4 = vsel %vm1375_vm1, %v3090_v61, 0.0 }
 0xa42   : > { %v3089_v50 = vadd.f32 %v5165_v62, %v3061_v16  ;;  %v3098_v0 = vsel %vm1375_vm1, %v3088_v13, 0.0 }
 0xa43   : > { %3099 = vadd.xlane.f32.xlu1 %v3098_v0  ;;  %v3107_v63 = vsel %vm1375_vm1, %v3091_v18, 0.0 }
 0xa44   : > { %v3101_v31 = vsel %vm1375_vm1, %v3089_v50, 0.0 }
 0xa45   : > { %3102 = vadd.xlane.f32.xlu0 %v3101_v31  ;;  %v4994_v31 = vld [vmem:[%s1016_s8 + $0x8] sm:$0xff]  }
 0xa47   : > { %v4620_v27 = vpop.f32.mrb[32].mxu1  ;;  %3108 = vadd.xlane.f32.xlu1 %v3107_v63  ;;  %v4995_v63 = vld [vmem:[%s6756_s17] sm:$0xff]  }
 0xa48   : > { %v3073_v20 = vpop.f32.mrb[33].mxu1  ;;  %v3082_v30 = vadd.f32 %v4620_v27, %v4324_v33  ;;  %v4996_v27 = vld [vmem:[%s6756_s17 + $0x8] sm:$0xff]   ;;  %4634 = vmatprep.subr.bf16.mxu1 %v4995_v63 }
 0xa49   : > { %v3074_v21 = vadd.f32 %v4324_v33, %v3073_v20  ;;  %v4621_v22 = vpop.f32.mrb[34].mxu1  ;;  %3105 = vadd.xlane.f32.xlu0 %v3104_v4  ;;  %4635 = vmatpush3.bf16.msra.mxu1 %v4995_v63  ;;  %v4997_v20 = vld [vmem:[%s6756_s17 + $0x10] sm:$0xff]   ;;  %v4998_v4 = vld [vmem:[%s6756_s17 + $0x18] sm:$0xff]  }
 0xa4a   : > { %v3076_v53 = vpop.f32.mrb[35].mxu1  ;;  %v3085_v48 = vadd.f32 %v4621_v22, %v4324_v33  ;;  %v3094_v6 = vadd.f32 %v5168_v5, %v3082_v30  ;;  %4636 = vmatprep.subr.bf16.mxu1 %v4996_v27  ;;  %v4999_v30 = vld [vmem:[%s6756_s17 + $0x20] sm:$0xff]  }
 0xa4b   : > { %v3092_v11 = vadd.f32 %v5167_v51, %v3074_v21  ;;  %v3077_v26 = vadd.f32 %v4324_v33, %v3076_v53  ;;  %v5000_v21 = vld [vmem:[%s6756_s17 + $0x28] sm:$0xff]  }
 0xa4c   : > { %v3095_v7 = vadd.f32 %v5170_v45, %v3085_v48  ;;  %v3116_v3 = vsel %vm1375_vm1, %v3094_v6, 0.0 }
 0xa4d   : > { %v3093_v41 = vadd.f32 %v5169_v24, %v3077_v26  ;;  %v3110_v1 = vsel %vm1375_vm1, %v3092_v11, 0.0  ;;  %4637 = vmatpush3.bf16.msra.mxu1 %v4996_v27 }
 0xa4e   : > { %3111 = vadd.xlane.f32.xlu0 %v3110_v1  ;;  %v3119_v44 = vsel %vm1375_vm1, %v3095_v7, 0.0  ;;  %4638 = vmatprep.subr.bf16.mxu1 %v4997_v20 }
 0xa4f   : > { %v3113_v29 = vsel %vm1375_vm1, %v3093_v41, 0.0 }
 0xa50   : > { %3114 = vadd.xlane.f32.xlu1 %v3113_v29 }
 0xa51   : > { %4639 = vmatpush3.bf16.msra.mxu1 %v4997_v20 }
 0xa52   : > { %3117 = vadd.xlane.f32.xlu0 %v3116_v3  ;;  %4640 = vmatprep.subr.bf16.mxu1 %v4998_v4 }
 0xa54   : > { %3120 = vadd.xlane.f32.xlu1 %v3119_v44 }
 0xa55   : > { %4641 = vmatpush3.bf16.msra.mxu1 %v4998_v4 }
 0xa56   : > { %4642 = vmatprep.subr.bf16.mxu1 %v4999_v30 }
 0xa59   : > { %4643 = vmatpush3.bf16.msra.mxu1 %v4999_v30 }
 0xa5a   : > { %4644 = vmatprep.subr.bf16.mxu1 %v5000_v21 }
 0xa5d   : > { %4645 = vmatpush3.bf16.msra.mxu1 %v5000_v21  ;;  %v5002_v21 = vld [vmem:[%s6756_s17 + $0x38] sm:$0xff]  }
 0xad0   : > { %v3100_v12 = vpop.xlane.xlu1 %3099 }
 0xad1   : > { %v3123_v43 = vmul.f32 0.03125, %v3100_v12 }
 0xad2   : > { %v3103_v49 = vpop.xlane.xlu0 %3102 }
 0xad3   : > { %v7461_v36 = vsub.f32 %v3088_v13, %v3123_v43  ;;  %v3124_v46 = vmul.f32 0.03125, %v3103_v49 }
 0xad4   : > { %v3109_v52 = vpop.xlane.xlu1 %3108 }
 0xad5   : > { %v7463_v54 = vsub.f32 %v3089_v50, %v3124_v46  ;;  %v3126_v60 = vmul.f32 0.03125, %v3109_v52  ;;  %v3139_v8 = vmul.f32 %v7461_v36, %v7461_v36  ;;  %v4331_v52 = vld [vmem:[%s999_s2] ss:$0 sm:$0xff] }
 0xad6   : > { %v3106_v9 = vpop.xlane.xlu0 %3105 }
 0xad7   : > { %v7467_v57 = vsub.f32 %v3091_v18, %v3126_v60  ;;  %v3125_v56 = vmul.f32 0.03125, %v3106_v9  ;;  %v3147_v37 = vsel %vm1375_vm1, %v3139_v8, 0.0  ;;  %v3140_v38 = vmul.f32 %v7463_v54, %v7463_v54 }
 0xad8   : > { %3148 = vadd.xlane.f32.xlu0 %v3147_v37 }
 0xad9   : > { %v7472_v23 = vsub.f32 %v3090_v61, %v3125_v56  ;;  %v3150_v19 = vsel %vm1375_vm1, %v3140_v38, 0.0  ;;  %v3142_v17 = vmul.f32 %v7467_v57, %v7467_v57  ;;  %v4993_v61 = vld [vmem:[%s1016_s8] sm:$0xff]  }
 0xada   : > { %3151 = vadd.xlane.f32.xlu1 %v3150_v19  ;;  %4622 = vmatprep.subr.bf16.mxu0 %v4993_v61 }
 0xadb   : > { %v3112_v59 = vpop.xlane.xlu0 %3111  ;;  %v3141_v35 = vmul.f32 %v7472_v23, %v7472_v23  ;;  %v3156_v42 = vsel %vm1375_vm1, %v3142_v17, 0.0  ;;  %4623 = vmatpush3.bf16.msra.mxu0 %v4993_v61  ;;  %v4332_v17 = vld [vmem:[%s7845_s22] ss:$0 sm:$0xff] }
 0xadc   : > { %v3127_v28 = vmul.f32 0.03125, %v3112_v59  ;;  %4624 = vmatprep.subr.bf16.mxu0 %v4994_v31 }
 0xadd   : > { %v3115_v34 = vpop.xlane.xlu1 %3114  ;;  %v3153_v14 = vsel %vm1375_vm1, %v3141_v35, 0.0 }
 0xade   : > { %v7481_v33 = vsub.f32 %v3092_v11, %v3127_v28  ;;  %v3128_v55 = vmul.f32 0.03125, %v3115_v34  ;;  %3154 = vadd.xlane.f32.xlu0 %v3153_v14  ;;  %3157 = vadd.xlane.f32.xlu1 %v3156_v42 }
 0xadf   : > { %v3118_v2 = vpop.xlane.xlu0 %3117  ;;  %4625 = vmatpush3.bf16.msra.mxu0 %v4994_v31 }
 0xae0   : > { %v7483_v25 = vsub.f32 %v3093_v41, %v3128_v55  ;;  %v3129_v47 = vmul.f32 0.03125, %v3118_v2  ;;  %v3143_v15 = vmul.f32 %v7481_v33, %v7481_v33 }
 0xae1   : > { %v3121_v58 = vpop.xlane.xlu1 %3120 }
 0xae2   : > { %v7487_v39 = vsub.f32 %v3094_v6, %v3129_v47  ;;  %v3130_v40 = vmul.f32 0.03125, %v3121_v58  ;;  %v3159_v13 = vsel %vm1375_vm1, %v3143_v15, 0.0  ;;  %v3144_v16 = vmul.f32 %v7483_v25, %v7483_v25 }
 0xae3   : > { %3160 = vadd.xlane.f32.xlu0 %v3159_v13 }
 0xae4   : > { %v7492_v10 = vsub.f32 %v3095_v7, %v3130_v40  ;;  %v3162_v18 = vsel %vm1375_vm1, %v3144_v16, 0.0  ;;  %v3145_v62 = vmul.f32 %v7487_v39, %v7487_v39 }
 0xae5   : > { %3163 = vadd.xlane.f32.xlu1 %v3162_v18 }
 0xae6   : > { %v3165_v50 = vsel %vm1375_vm1, %v3145_v62, 0.0  ;;  %v3146_v0 = vmul.f32 %v7492_v10, %v7492_v10 }
 0xae7   : > { %3166 = vadd.xlane.f32.xlu0 %v3165_v50 }
 0xae8   : > { %v3168_v32 = vsel %vm1375_vm1, %v3146_v0, 0.0 }
 0xae9   : > { %3169 = vadd.xlane.f32.xlu1 %v3168_v32 }
 0xb65   : > { %v3149_v22 = vpop.xlane.xlu0 %3148 }
 0xb66   : > { %v3171_v53 = vmul.f32 0.03125, %v3149_v22  ;;  %v4333_v22 = vld [vmem:[%s1024_s1] ss:$0 sm:$0xff] }
 0xb67   : > { %v3152_v51 = vpop.xlane.xlu1 %3151 }
 0xb68   : > { %v3179_v11 = vadd.f32 1e-05, %v3171_v53  ;;  %v3172_v48 = vmul.f32 0.03125, %v3152_v51 }
 0xb6a   : > { %5131 = vrsqrt.f32 %v3179_v11  ;;  %v3180_v26 = vadd.f32 1e-05, %v3172_v48 }
 0xb6b   : > { %v3155_v5 = vpop.xlane.xlu0 %3154  ;;  %v3158_v6 = vpop.xlane.xlu1 %3157 }
 0xb6c   : > { %5133 = vrsqrt.f32 %v3180_v26  ;;  %v3173_v24 = vmul.f32 0.03125, %v3155_v5  ;;  %v3174_v41 = vmul.f32 0.03125, %v3158_v6 }
 0xb6e   : > { %v3181_v1 = vadd.f32 1e-05, %v3173_v24  ;;  %v3182_v45 = vadd.f32 1e-05, %v3174_v41 }
 0xb70   : > { %5135 = vrsqrt.f32 %v3181_v1  ;;  %v3161_v7 = vpop.xlane.xlu0 %3160 }
 0xb71   : > { %5137 = vrsqrt.f32 %v3182_v45  ;;  %v3175_v29 = vmul.f32 0.03125, %v3161_v7 }
 0xb72   : > { %v3164_v3 = vpop.xlane.xlu1 %3163 }
 0xb73   : > { %v3183_v44 = vadd.f32 1e-05, %v3175_v29  ;;  %v3176_v12 = vmul.f32 0.03125, %v3164_v3 }
 0xb74   : > { %v5132_v43 = vpop.eup %5131  ;;  %v3167_v49 = vpop.xlane.xlu0 %3166 }
 0xb75   : > { %v3195_v46 = vmul.f32 %v5132_v43, %v7461_v36  ;;  %5139 = vrsqrt.f32 %v3183_v44  ;;  %v3184_v60 = vadd.f32 1e-05, %v3176_v12  ;;  %v3177_v8 = vmul.f32 0.03125, %v3167_v49 }
 0xb76   : > { %v5134_v9 = vpop.eup %5133  ;;  %v3170_v56 = vpop.xlane.xlu1 %3169 }
 0xb77   : > { %v3196_v37 = vmul.f32 %v5134_v9, %v7463_v54  ;;  %5141 = vrsqrt.f32 %v3184_v60  ;;  %v3185_v38 = vadd.f32 1e-05, %v3177_v8  ;;  %v3178_v19 = vmul.f32 0.03125, %v3170_v56 }
 0xb78   : > { %v3209_v59 = vmul.f32 %v4331_v52, %v3195_v46 }
 0xb79   : > { %5143 = vrsqrt.f32 %v3185_v38  ;;  %v3186_v35 = vadd.f32 1e-05, %v3178_v19  ;;  %v3210_v28 = vmul.f32 %v4331_v52, %v3196_v37 }
 0xb7a   : > { %v5136_v34 = vpop.eup %5135  ;;  %v7518_v42 = vadd.f32 %v4332_v17, %v3209_v59  ;;  %v4340_v59 = vld [vmem:[%s1041_s28] ss:$0 sm:$0xff] }
 0xb7b   : > { %v5138_v36 = vpop.eup %5137  ;;  %v3197_v14 = vmul.f32 %v5136_v34, %v7472_v23  ;;  %5145 = vrsqrt.f32 %v3186_v35  ;;  %v7520_v55 = vadd.f32 %v4332_v17, %v3210_v28 }
 0xb7c   : > { %v3198_v54 = vmul.f32 %v5138_v36, %v7467_v57 }
 0xb7d   : > { %v3211_v2 = vmul.f32 %v4331_v52, %v3197_v14  ;;  %v3231_v47 = vpack.c.bf16 %v7520_v55, %v7518_v42 }
 0xb7e   : > { %v3212_v15 = vmul.f32 %v4331_v52, %v3198_v54 }
 0xb7f   : > { %v5140_v58 = vpop.eup %5139  ;;  %4626 = vmatprep.mubr.msk.bf16.mxu0 %vm1375_vm1, %v3231_v47  ;;  %v7526_v40 = vadd.f32 %v4332_v17, %v3211_v2 }
 0xb80   : > { %v3199_v13 = vmul.f32 %v5140_v58, %v7481_v33  ;;  %v7529_v23 = vadd.f32 %v4332_v17, %v3212_v15 }
 0xb81   : > { %v5142_v16 = vpop.eup %5141 }
 0xb82   : > { %v3200_v18 = vmul.f32 %v5142_v16, %v7483_v25  ;;  %v3232_v57 = vpack.c.bf16 %v7529_v23, %v7526_v40  ;;  %v3213_v62 = vmul.f32 %v4331_v52, %v3199_v13 }
 0xb83   : > { %v5144_v50 = vpop.eup %5143 }
 0xb84   : > { %v3201_v0 = vmul.f32 %v5144_v50, %v7487_v39  ;;  %4627 = vmatmul.mubr.msk.bf16.vlgmr.msra.gmra.mrb[44].mxu0 %vm1375_vm1, %v3232_v57  ;;  %v3214_v32 = vmul.f32 %v4331_v52, %v3200_v18  ;;  %v7537_v31 = vadd.f32 %v4332_v17, %v3213_v62 }
 0xb85   : > { %v5146_v61 = vpop.eup %5145 }
 0xb86   : > { %v3202_v33 = vmul.f32 %v5146_v61, %v7492_v10  ;;  %v7539_v63 = vadd.f32 %v4332_v17, %v3214_v32  ;;  %v3215_v25 = vmul.f32 %v4331_v52, %v3201_v0  ;;  %v5001_v10 = vld [vmem:[%s6756_s17 + $0x30] sm:$0xff]  }
 0xb87   : > { %4646 = vmatprep.subr.bf16.mxu1 %v5001_v10 }
 0xb88   : > { %v3233_v27 = vpack.c.bf16 %v7539_v63, %v7537_v31  ;;  %v3216_v20 = vmul.f32 %v4331_v52, %v3202_v33  ;;  %v7544_v39 = vadd.f32 %v4332_v17, %v3215_v25  ;;  %4647 = vmatpush3.bf16.msra.mxu1 %v5001_v10 }
 0xb89   : > { %4648 = vmatprep.subr.bf16.mxu1 %v5002_v21 }
 0xb8a   : > { %4630 = vmatprep.mubr.msk.bf16.mxu0 %vm1375_vm1, %v3233_v27  ;;  %v7546_v4 = vadd.f32 %v4332_v17, %v3216_v20 }
 0xb8c   : > { %v3234_v30 = vpack.c.bf16 %v7546_v4, %v7544_v39  ;;  %4649 = vmatpush3.bf16.msra.mxu1 %v5002_v21 }
 0xb8e   : > { %4631 = vmatmul.mubr.msk.bf16.gmra.mrb[48].mxu0 %vm1375_vm1, %v3234_v30 }
 0xc57   : > { %v4628_v53 = vpop.f32.mrb[44].mxu0 }
 0xc58   : > { %v3313_v51 = vadd.f32 %v4628_v53, %v4333_v22  ;;  %v3304_v11 = vpop.f32.mrb[45].mxu0 }
 0xc59   : > { %v3305_v48 = vadd.f32 %v4333_v22, %v3304_v11  ;;  %v4629_v26 = vpop.f32.mrb[46].mxu0 }
 0xc5a   : > { %v3316_v5 = vadd.f32 %v4629_v26, %v4333_v22  ;;  %v3307_v6 = vpop.f32.mrb[47].mxu0  ;;  %v3337_v41 = vmax.f32 %v3313_v51, 0.0 }
 0xc5b   : > { %v3308_v24 = vadd.f32 %v4333_v22, %v3307_v6  ;;  %v3335_v45 = vmax.f32 %v3305_v48, 0.0 }
 0xc5c   : > { %v3338_v1 = vmax.f32 %v3316_v5, 0.0 }
 0xc5d   : > { %v3336_v7 = vmax.f32 %v3308_v24, 0.0 }
 0xc5e   : > { %v3344_v29 = vpack.c.bf16 %v3338_v1, %v3337_v41 }
 0xc5f   : > { %v3343_v3 = vpack.c.bf16 %v3336_v7, %v3335_v45 }
 0xc61   : > { %4650 = vmatprep.mubr.bf16.mxu1 %v3343_v3  ;;  %v4632_v44 = vpop.f32.mrb[48].mxu0 }
 0xc62   : > { %v3329_v12 = vadd.f32 %v4632_v44, %v4333_v22  ;;  %4651 = vmatmul.mubr.bf16.vlgmr.msra.gmra.mrb[36].mxu1 %v3344_v29  ;;  %v3320_v43 = vpop.f32.mrb[49].mxu0 }
 0xc63   : > { %v3321_v49 = vadd.f32 %v4333_v22, %v3320_v43  ;;  %v4633_v46 = vpop.f32.mrb[50].mxu0 }
 0xc64   : > { %v3332_v52 = vadd.f32 %v4633_v46, %v4333_v22  ;;  %v3323_v60 = vpop.f32.mrb[51].mxu0  ;;  %v3341_v9 = vmax.f32 %v3329_v12, 0.0 }
 0xc65   : > { %v3324_v8 = vadd.f32 %v4333_v22, %v3323_v60  ;;  %v3339_v37 = vmax.f32 %v3321_v49, 0.0 }
 0xc66   : > { %v3342_v56 = vmax.f32 %v3332_v52, 0.0 }
 0xc67   : > { %v3340_v38 = vmax.f32 %v3324_v8, 0.0 }
 0xc68   : > { %v3346_v19 = vpack.c.bf16 %v3342_v56, %v3341_v9 }
 0xc69   : > { %v3345_v17 = vpack.c.bf16 %v3340_v38, %v3339_v37 }
 0xc6b   : > { %4654 = vmatprep.mubr.bf16.mxu1 %v3345_v17 }
 0xc6c   : > { %4655 = vmatmul.mubr.bf16.gmra.mrb[40].mxu1 %v3346_v19 }
 0xd35   : > { %v4652_v35 = vpop.f32.mrb[36].mxu1 }
 0xd36   : > { %v3461_v28 = vadd.f32 %v4652_v35, %v4340_v59  ;;  %v3452_v34 = vpop.f32.mrb[37].mxu1 }
 0xd37   : > { %v3453_v36 = vadd.f32 %v4340_v59, %v3452_v34  ;;  %v4653_v14 = vpop.f32.mrb[38].mxu1 }
 0xd38   : > { %v3485_v54 = vadd.f32 %v3461_v28, %v7526_v40  ;;  %v3464_v2 = vadd.f32 %v4653_v14, %v4340_v59  ;;  %v3455_v47 = vpop.f32.mrb[39].mxu1 }
 0xd39   : > { %v3456_v15 = vadd.f32 %v4340_v59, %v3455_v47  ;;  %v3483_v58 = vadd.f32 %v3453_v36, %v7518_v42 }
 0xd3a   : > { %v3486_v13 = vadd.f32 %v3464_v2, %v7529_v23  ;;  %v3499_v16 = vsel %vm1375_vm1, %v3485_v54, 0.0 }
 0xd3b   : > { %3500 = vadd.xlane.f32.xlu0 %v3499_v16  ;;  %v3484_v18 = vadd.f32 %v3456_v15, %v7520_v55  ;;  %v3493_v62 = vsel %vm1375_vm1, %v3483_v58, 0.0 }
 0xd3c   : > { %v3502_v57 = vsel %vm1375_vm1, %v3486_v13, 0.0 }
 0xd3d   : > { %3503 = vadd.xlane.f32.xlu1 %v3502_v57  ;;  %v3496_v40 = vsel %vm1375_vm1, %v3484_v18, 0.0 }
 0xd3f   : > { %3494 = vadd.xlane.f32.xlu0 %v3493_v62  ;;  %v4656_v50 = vpop.f32.mrb[40].mxu1 }
 0xd40   : > { %v3468_v0 = vpop.f32.mrb[41].mxu1  ;;  %v3477_v32 = vadd.f32 %v4656_v50, %v4340_v59 }
 0xd41   : > { %3497 = vadd.xlane.f32.xlu1 %v3496_v40  ;;  %v3469_v42 = vadd.f32 %v4340_v59, %v3468_v0  ;;  %v4657_v61 = vpop.f32.mrb[42].mxu1 }
 0xd42   : > { %v3471_v23 = vpop.f32.mrb[43].mxu1  ;;  %v3480_v25 = vadd.f32 %v4657_v61, %v4340_v59  ;;  %v3489_v55 = vadd.f32 %v3477_v32, %v7544_v39 }
 0xd43   : > { %v3487_v33 = vadd.f32 %v3469_v42, %v7537_v31  ;;  %v3472_v27 = vadd.f32 %v4340_v59, %v3471_v23 }
 0xd44   : > { %v3490_v10 = vadd.f32 %v3480_v25, %v7546_v4  ;;  %v3511_v22 = vsel %vm1375_vm1, %v3489_v55, 0.0 }
 0xd45   : > { %v3488_v20 = vadd.f32 %v3472_v27, %v7539_v63  ;;  %v3505_v30 = vsel %vm1375_vm1, %v3487_v33, 0.0 }
 0xd46   : > { %3506 = vadd.xlane.f32.xlu0 %v3505_v30  ;;  %v3514_v53 = vsel %vm1375_vm1, %v3490_v10, 0.0 }
 0xd47   : > { %v3508_v21 = vsel %vm1375_vm1, %v3488_v20, 0.0 }
 0xd48   : > { %3509 = vadd.xlane.f32.xlu1 %v3508_v21 }
 0xd4a   : > { %3512 = vadd.xlane.f32.xlu0 %v3511_v22 }
 0xd4c   : > { %3515 = vadd.xlane.f32.xlu1 %v3514_v53 }
 0xdc8   : > { %v3501_v31 = vpop.xlane.xlu0 %3500 }
 0xdc9   : > { %v3519_v51 = vmul.f32 0.03125, %v3501_v31  ;;  %v4350_v31 = vld [vmem:[%s1057_s25] ss:$0 sm:$0xff] }
 0xdca   : > { %v3504_v11 = vpop.xlane.xlu1 %3503 }
 0xdcb   : > { %v7573_v39 = vsub.f32 %v3485_v54, %v3519_v51  ;;  %v3520_v63 = vmul.f32 0.03125, %v3504_v11 }
 0xdcc   : > { %v3495_v48 = vpop.xlane.xlu0 %3494 }
 0xdcd   : > { %v7575_v26 = vsub.f32 %v3486_v13, %v3520_v63  ;;  %v3517_v5 = vmul.f32 0.03125, %v3495_v48  ;;  %v3535_v4 = vmul.f32 %v7573_v39, %v7573_v39 }
 0xdce   : > { %v3498_v6 = vpop.xlane.xlu1 %3497 }
 0xdcf   : > { %v7579_v24 = vsub.f32 %v3483_v58, %v3517_v5  ;;  %v3518_v41 = vmul.f32 0.03125, %v3498_v6  ;;  %v3547_v1 = vsel %vm1375_vm1, %v3535_v4, 0.0  ;;  %v3536_v45 = vmul.f32 %v7575_v26, %v7575_v26 }
 0xdd0   : > { %3548 = vadd.xlane.f32.xlu0 %v3547_v1 }
 0xdd1   : > { %v7584_v7 = vsub.f32 %v3484_v18, %v3518_v41  ;;  %v3550_v29 = vsel %vm1375_vm1, %v3536_v45, 0.0  ;;  %v3533_v3 = vmul.f32 %v7579_v24, %v7579_v24 }
 0xdd2   : > { %3551 = vadd.xlane.f32.xlu1 %v3550_v29 }
 0xdd3   : > { %v3541_v44 = vsel %vm1375_vm1, %v3533_v3, 0.0  ;;  %v3507_v12 = vpop.xlane.xlu0 %3506  ;;  %v3534_v43 = vmul.f32 %v7584_v7, %v7584_v7 }
 0xdd4   : > { %3542 = vadd.xlane.f32.xlu0 %v3541_v44  ;;  %v3521_v49 = vmul.f32 0.03125, %v3507_v12 }
 0xdd5   : > { %v3544_v46 = vsel %vm1375_vm1, %v3534_v43, 0.0  ;;  %v3510_v52 = vpop.xlane.xlu1 %3509 }
 0xdd6   : > { %v7593_v60 = vsub.f32 %v3487_v33, %v3521_v49  ;;  %3545 = vadd.xlane.f32.xlu1 %v3544_v46  ;;  %v3522_v8 = vmul.f32 0.03125, %v3510_v52 }
 0xdd7   : > { %v3513_v9 = vpop.xlane.xlu0 %3512 }
 0xdd8   : > { %v7595_v56 = vsub.f32 %v3488_v20, %v3522_v8  ;;  %v3523_v37 = vmul.f32 0.03125, %v3513_v9  ;;  %v3537_v38 = vmul.f32 %v7593_v60, %v7593_v60  ;;  %v4349_v20 = vld [vmem:[%s1049_s7] ss:$0 sm:$0xff] }
 0xdd9   : > { %v3516_v19 = vpop.xlane.xlu1 %3515 }
 0xdda   : > { %v7599_v17 = vsub.f32 %v3489_v55, %v3523_v37  ;;  %v3524_v59 = vmul.f32 0.03125, %v3516_v19  ;;  %v3553_v35 = vsel %vm1375_vm1, %v3537_v38, 0.0  ;;  %v3538_v28 = vmul.f32 %v7595_v56, %v7595_v56 }
 0xddb   : > { %3554 = vadd.xlane.f32.xlu0 %v3553_v35 }
 0xddc   : > { %v7604_v34 = vsub.f32 %v3490_v10, %v3524_v59  ;;  %v3556_v36 = vsel %vm1375_vm1, %v3538_v28, 0.0  ;;  %v3539_v14 = vmul.f32 %v7599_v17, %v7599_v17 }
 0xddd   : > { %3557 = vadd.xlane.f32.xlu1 %v3556_v36 }
 0xdde   : > { %v3559_v54 = vsel %vm1375_vm1, %v3539_v14, 0.0  ;;  %v3540_v2 = vmul.f32 %v7604_v34, %v7604_v34 }
 0xddf   : > { %3560 = vadd.xlane.f32.xlu0 %v3559_v54 }
 0xde0   : > { %v3562_v47 = vsel %vm1375_vm1, %v3540_v2, 0.0 }
 0xde1   : > { %3563 = vadd.xlane.f32.xlu1 %v3562_v47 }
 0xe5d   : > { %v3549_v15 = vpop.xlane.xlu0 %3548 }
 0xe5e   : > { %v3567_v58 = vmul.f32 0.03125, %v3549_v15 }
 0xe5f   : > { %v3552_v13 = vpop.xlane.xlu1 %3551 }
 0xe60   : > { %v3575_v16 = vadd.f32 1e-05, %v3567_v58  ;;  %v3568_v18 = vmul.f32 0.03125, %v3552_v13 }
 0xe61   : > { %v3543_v57 = vpop.xlane.xlu0 %3542 }
 0xe62   : > { %5147 = vrsqrt.f32 %v3575_v16  ;;  %v3576_v62 = vadd.f32 1e-05, %v3568_v18  ;;  %v3565_v50 = vmul.f32 0.03125, %v3543_v57 }
 0xe63   : > { %v3546_v40 = vpop.xlane.xlu1 %3545 }
 0xe64   : > { %5149 = vrsqrt.f32 %v3576_v62  ;;  %v3573_v0 = vadd.f32 1e-05, %v3565_v50  ;;  %v3566_v32 = vmul.f32 0.03125, %v3546_v40 }
 0xe66   : > { %5151 = vrsqrt.f32 %v3573_v0  ;;  %v3574_v42 = vadd.f32 1e-05, %v3566_v32 }
 0xe68   : > { %5153 = vrsqrt.f32 %v3574_v42  ;;  %v3555_v61 = vpop.xlane.xlu0 %3554 }
 0xe69   : > { %v3569_v23 = vmul.f32 0.03125, %v3555_v61 }
 0xe6a   : > { %v3558_v33 = vpop.xlane.xlu1 %3557 }
 0xe6b   : > { %v3577_v25 = vadd.f32 1e-05, %v3569_v23  ;;  %v3570_v27 = vmul.f32 0.03125, %v3558_v33 }
 0xe6c   : > { %v5148_v55 = vpop.eup %5147  ;;  %v3561_v30 = vpop.xlane.xlu0 %3560 }
 0xe6d   : > { %v3591_v10 = vmul.f32 %v5148_v55, %v7573_v39  ;;  %5155 = vrsqrt.f32 %v3577_v25  ;;  %v3578_v21 = vadd.f32 1e-05, %v3570_v27  ;;  %v3571_v22 = vmul.f32 0.03125, %v3561_v30 }
 0xe6e   : > { %v5150_v53 = vpop.eup %5149  ;;  %v3564_v51 = vpop.xlane.xlu1 %3563 }
 0xe6f   : > { %v3605_v11 = vmul.f32 %v4349_v20, %v3591_v10  ;;  %v3592_v63 = vmul.f32 %v5150_v53, %v7575_v26  ;;  %5157 = vrsqrt.f32 %v3578_v21  ;;  %v3579_v48 = vadd.f32 1e-05, %v3571_v22 }
 0xe70   : > { %v5152_v5 = vpop.eup %5151  ;;  %v3572_v4 = vmul.f32 0.03125, %v3564_v51 }
 0xe71   : > { %v3619_v6 = vadd.f32 %v4350_v31, %v3605_v11  ;;  %v3606_v41 = vmul.f32 %v4349_v20, %v3592_v63  ;;  %v3589_v1 = vmul.f32 %v5152_v5, %v7579_v24  ;;  %5159 = vrsqrt.f32 %v3579_v48 }
 0xe72   : > { %v5154_v39 = vpop.eup %5153  ;;  %v3580_v45 = vadd.f32 1e-05, %v3572_v4 }
 0xe73   : > { %3627 = vst.msk [vmem:[#allocation2 + $0x10] sm:$0xff] %vm1375_vm1, %v3619_v6  ;;  %v3620_v29 = vadd.f32 %v4350_v31, %v3606_v41  ;;  %v3603_v3 = vmul.f32 %v4349_v20, %v3589_v1  ;;  %v3590_v44 = vmul.f32 %v5154_v39, %v7584_v7  ;;  %v3640_v47 = vsel (!%p4351_p10), %vm1375_vm1, %v3619_v6, 0.0  ;;  %v4352_v6 = vld [vmem:[#allocation29] ss:$0 sm:$0xff] (!%p4351_p10) }
 0xe74   : > { %5161 = vrsqrt.f32 %v3580_v45 }
 0xe75   : > { %3628 = vst.msk [vmem:[#allocation2 + $0x18] sm:$0xff] %vm1375_vm1, %v3620_v29  ;;  %v3617_v26 = vadd.f32 %v4350_v31, %v3603_v3  ;;  %v3604_v12 = vmul.f32 %v4349_v20, %v3590_v44  ;;  %v3642_v18 = vsel (!%p4351_p10), %vm1375_vm1, %v3620_v29, 0.0 }
 0xe77   : > { %v5156_v43 = vpop.eup %5155  ;;  %3625 = vst.msk [vmem:[#allocation2] sm:$0xff] %vm1375_vm1, %v3617_v26  ;;  %v3618_v49 = vadd.f32 %v4350_v31, %v3604_v12  ;;  %v3637_v54 = vsel (!%p4351_p10), %vm1375_vm1, %v3617_v26, 0.0 }
 0xe78   : > { %v3593_v24 = vmul.f32 %v5156_v43, %v7593_v60 }
 0xe79   : > { %v5158_v46 = vpop.eup %5157  ;;  %3626 = vst.msk [vmem:[#allocation2 + $0x8] sm:$0xff] %vm1375_vm1, %v3618_v49  ;;  %v3638_v2 = vsel (!%p4351_p10), %vm1375_vm1, %v3618_v49, 0.0 }
 0xe7a   : > { %v3607_v52 = vmul.f32 %v4349_v20, %v3593_v24  ;;  %v3594_v8 = vmul.f32 %v5158_v46, %v7595_v56  ;;  %v5171_v56 = vld [vmem:[#allocation27] sm:$0xff] (!%p4351_p10)   ;;  %v3639_v15 = vadd.f32 (!%p4351_p10), %v3638_v2, %v3637_v54  ;;  %v5173_v24 = vld [vmem:[#allocation33] sm:$0xff] (!%p4351_p10)  }
 0xe7b   : > { %v5160_v9 = vpop.eup %5159  ;;  %v5174_v46 = vld [vmem:[#allocation33 + $0x8] sm:$0xff] (!%p4351_p10)  }
 0xe7c   : > { %v3621_v37 = vadd.f32 %v4350_v31, %v3607_v52  ;;  %v3608_v7 = vmul.f32 %v4349_v20, %v3594_v8  ;;  %v3595_v38 = vmul.f32 %v5160_v9, %v7599_v17  ;;  %v5948_v17 = vmov (!%p4351_p10), 0.0  }
 0xe7d   : > { %4658 = vmatprep.subr.bf16.mxu0 (!%p4351_p10), %v5948_v17  ;;  %4666 = vmatprep.subr.bf16.mxu1 (!%p4351_p10), %v5948_v17  ;;  %v3641_v62 = vadd.f32 (!%p4351_p10), %v3640_v47, %v3639_v15 }
 0xe7e   : > { %v5162_v19 = vpop.eup %5161  ;;  %3629 = vst.msk [vmem:[#allocation2 + $0x20] sm:$0xff] %vm1375_vm1, %v3621_v37  ;;  %v3622_v59 = vadd.f32 %v4350_v31, %v3608_v7  ;;  %v3609_v35 = vmul.f32 %v4349_v20, %v3595_v38  ;;  %4659 = vmatpush3.bf16.msra.mxu0 (!%p4351_p10), %v5171_v56  ;;  %4662 = vmatprep.mubr.msk.bf16.mxu0 (!%p4351_p10), %vm5949_vm5, %v5948_v17  ;;  %v3650_v58 = vsel (!%p4351_p10), %vm1375_vm1, %v3621_v37, 0.0  ;;  %v4356_v7 = vld [vmem:[#allocation30] ss:$0 sm:$0xff] (!%p4351_p10) }
 0xe7f   : > { %v3596_v28 = vmul.f32 %v5162_v19, %v7604_v34  ;;  %3636 = sbr.rel (%p4351_p10) target bundleno = 4532 (0x11b4), region = 196  ;;  %v5172_v34 = vld [vmem:[#allocation27 + $0x8] sm:$0xff] (!%p4351_p10)   ;;  %4660 = vmatprep.subr.bf16.mxu0 (!%p4351_p10), %v5948_v17  ;;  %4670 = vmatprep.mubr.msk.bf16.mxu1 (!%p4351_p10), %vm5949_vm5, %v5948_v17  ;;  %v3643_v0 = vadd.f32 (!%p4351_p10), %v3642_v18, %v3641_v62  ;;  %v4357_v19 = vld [vmem:[#allocation32] ss:$0 sm:$0xff] (!%p4351_p10) }
 0xe80   : > { %3630 = vst.msk [vmem:[#allocation2 + $0x28] sm:$0xff] %vm1375_vm1, %v3622_v59  ;;  %v3623_v60 = vadd.f32 %v4350_v31, %v3609_v35  ;;  %v3651_v13 = vsel (!%p4351_p10), %vm1375_vm1, %v3622_v59, 0.0  ;;  %4667 = vmatpush3.bf16.msra.mxu1 (!%p4351_p10), %v5173_v24 }
 0xe81   : > { %v3610_v36 = vmul.f32 %v4349_v20, %v3596_v28  ;;  %v3652_v57 = vadd.f32 (!%p4351_p10), %v3651_v13, %v3650_v58  ;;  %v3644_v42 = vrot.slane (!%p4351_p10), %v3643_v0, 4  ;;  %4668 = vmatprep.subr.bf16.mxu1 (!%p4351_p10), %v5948_v17 }
 0xe82   : > { %3631 = vst.msk [vmem:[#allocation2 + $0x30] sm:$0xff] %vm1375_vm1, %v3623_v60  ;;  %v3653_v16 = vsel (!%p4351_p10), %vm1375_vm1, %v3623_v60, 0.0  ;;  %4661 = vmatpush3.bf16.msra.mxu0 (!%p4351_p10), %v5172_v34 }
 0xe83   : > { %v3624_v14 = vadd.f32 %v4350_v31, %v3610_v36  ;;  %v3654_v40 = vadd.f32 (!%p4351_p10), %v3653_v16, %v3652_v57  ;;  %v3645_v23 = vadd.f32 (!%p4351_p10), %v3644_v42, %v3643_v0 }
 0xe84   : > { %4669 = vmatpush3.bf16.msra.mxu1 (!%p4351_p10), %v5174_v46 }
 0xe85   : > { %3632 = vst.msk [vmem:[#allocation2 + $0x38] sm:$0xff] %vm1375_vm1, %v3624_v14  ;;  %v3655_v50 = vsel (!%p4351_p10), %vm1375_vm1, %v3624_v14, 0.0  ;;  %v3646_v25 = vrot.slane (!%p4351_p10), %v3645_v23, 2 }
 0xe86   : > { %v3656_v32 = vadd.f32 %v3655_v50, %v3654_v40 }
 0xe87   : > { %v3647_v55 = vadd.f32 %v3646_v25, %v3645_v23 }
 0xe88   : > { %v3657_v61 = vrot.slane %v3656_v32, 4 }
 0xe89   : > { %v3648_v30 = vrot.slane %v3647_v55, 1 }
 0xe8a   : > { %v3658_v33 = vadd.f32 %v3657_v61, %v3656_v32  ;;  %v5950_v32 = vmov -1.0  }
 0xe8b   : > { %v3649_v21 = vadd.f32 %v3648_v30, %v3647_v55  ;;  %v4358_v55 = vld [vmem:[#allocation35] ss:$0 sm:$0xff] }
 0xe8c   : > { %v3659_v27 = vrot.slane %v3658_v33, 2 }
 0xe8d   : > { %v3663_v53 = vmul.f32 0.03125, %v3649_v21 }
 0xe8e   : > { %v3660_v20 = vadd.f32 %v3659_v27, %v3658_v33 }
 0xe8f   : > { %v3665_v51 = vpack.c.bf16 %v3663_v53, %v3663_v53 }
 0xe90   : > { %v3661_v10 = vrot.slane %v3660_v20, 1 }
 0xe91   : > { %v3680_v63 = vunpack.c.l.b16 %v3665_v51 }
 0xe92   : > { %v3662_v22 = vadd.f32 %v3661_v10, %v3660_v20 }
 0xe94   : > { %v3664_v31 = vmul.f32 0.03125, %v3662_v22 }
 0xe96   : > { %v3666_v11 = vpack.c.bf16 %v3664_v31, %v3664_v31 }
 0xe98   : > { %v3681_v48 = vunpack.c.l.b16 %v3666_v11 }
 0xe9a   : > { %v3683_v5 = vsel %vm3682_vm6, %v3681_v48, %v3680_v63 }
 0xe9b   : > { %v3684_v4 = vpack.c.b16 %v3683_v5, %v3683_v5 }
 0xe9d   : > { %4663 = vmatmul.mubr.msk.bf16.vlgmr.msra.gmra.mrb[0].mxu0 %vm1375_vm1, %v3684_v4 }
 0xf70   : > { %v3734_v41 = vpop.f32.mrb[0].mxu0 }
 0xf71   : > { %v3735_v1 = vadd.f32 %v4352_v6, %v3734_v41  ;;  %v4664_v39 = vpop.f32.mrb[1].mxu0 }
 0xf72   : > { %v3737_v45 = vpop.f32.mrb[2].mxu0 }
 0xf73   : > { %v4665_v29 = vpop.f32.mrb[3].mxu0  ;;  %v3743_v3 = vsel %vm3742_vm7, %v3735_v1, 0.0 }
 0xf74   : > { %3744 = vadd.xlane.f32.xlu0 %v3743_v3 }
0x1001   : > { %v3745_v44 = vpop.xlane.xlu0 %3744 }
0x1002   : > { %v3746_v26 = vmul.f32 0.03125, %v3745_v44 }
0x1004   : > { %v3747_v12 = vsub.f32 %v3735_v1, %v3746_v26 }
0x1006   : > { %v3748_v43 = vmul.f32 %v3747_v12, %v3747_v12 }
0x1008   : > { %v3749_v49 = vsel %vm3742_vm7, %v3748_v43, 0.0 }
0x1009   : > { %3750 = vadd.xlane.f32.xlu0 %v3749_v49 }
0x1096   : > { %v3751_v52 = vpop.xlane.xlu0 %3750 }
0x1097   : > { %v3752_v8 = vmul.f32 0.03125, %v3751_v52 }
0x1099   : > { %v3753_v9 = vadd.f32 1e-05, %v3752_v8 }
0x109b   : > { %5175 = vrsqrt.f32 %v3753_v9 }
0x10a5   : > { %v5176_v37 = vpop.eup %5175 }
0x10a6   : > { %v3755_v38 = vmul.f32 %v5176_v37, %v3747_v12 }
0x10a8   : > { %v3762_v59 = vmul.f32 %v4356_v7, %v3755_v38 }
0x10aa   : > { %v3769_v35 = vadd.f32 %v4357_v19, %v3762_v59 }
0x10ac   : > { %v3771_v28 = vmul.f32 0.70710677, %v3769_v35  ;;  %v3770_v23 = vmul.f32 0.5, %v3769_v35 }
0x10ae   : > { %v3774_v60 = vand.u32 2147483647, %v3771_v28  ;;  %vm3772_vm8 = vcmp.ge.f32.partialorder %v3771_v28, 0.0 }
0x10af   : > { %v3773_v42 = vsel %vm3772_vm8, 1.0, %v5950_v32 }
0x10b0   : > { %v3775_v36 = vmul.f32 0.3275911, %v3774_v60  ;;  %v3788_v56 = vsub.f32 0.0, %v3774_v60 }
0x10b2   : > { %v3776_v14 = vadd.f32 1.0, %v3775_v36  ;;  %v3789_v54 = vmul.f32 %v3788_v56, %v3774_v60 }
0x10b4   : > { %5177 = vrcp.f32 %v3776_v14  ;;  %v3790_v47 = vmul.f32 1.442695, %v3789_v54 }
0x10b6   : > { %5179 = vpow2.f32 %v3790_v47 }
0x10be   : > { %v5178_v34 = vpop.eup %5177 }
0x10bf   : > { %v3779_v17 = vmul.f32 1.0614054, %v5178_v34 }
0x10c0   : > { %v5180_v50 = vpop.eup %5179 }
0x10c1   : > { %v3780_v2 = vadd.f32 -1.4531521, %v3779_v17 }
0x10c3   : > { %v3781_v15 = vmul.f32 %v5178_v34, %v3780_v2 }
0x10c5   : > { %v3782_v58 = vadd.f32 1.4214138, %v3781_v15 }
0x10c7   : > { %v3783_v13 = vmul.f32 %v5178_v34, %v3782_v58 }
0x10c9   : > { %v3784_v16 = vadd.f32 -0.28449672, %v3783_v13 }
0x10cb   : > { %v3785_v18 = vmul.f32 %v5178_v34, %v3784_v16 }
0x10cd   : > { %v3786_v57 = vadd.f32 0.2548296, %v3785_v18 }
0x10cf   : > { %v3787_v62 = vmul.f32 %v5178_v34, %v3786_v57 }
0x10d1   : > { %v3792_v40 = vmul.f32 %v5180_v50, %v3787_v62 }
0x10d3   : > { %v3793_v0 = vsub.f32 1.0, %v3792_v40 }
0x10d5   : > { %v3794_v61 = vmul.f32 %v3793_v0, %v3773_v42 }
0x10d7   : > { %v3795_v33 = vadd.f32 1.0, %v3794_v61 }
0x10d9   : > { %v3796_v25 = vmul.f32 %v3795_v33, %v3770_v23 }
0x10db   : > { %v3797_v27 = vpack.c.bf16 %v3796_v25, %v3796_v25 }
0x10dd   : > { %4671 = vmatmul.mubr.msk.bf16.vlgmr.msra.gmra.mrb[0].mxu1 %vm1375_vm1, %v3797_v27 }
0x11b0   : > { %v3858_v20 = vpop.f32.mrb[0].mxu1 }
0x11b1   : > { %v3859_v30 = vadd.f32 %v4358_v55, %v3858_v20  ;;  %v4672_v10 = vpop.f32.mrb[1].mxu1 }
0x11b2   : > { %v3861_v21 = vpop.f32.mrb[2].mxu1 }
0x11b3   : > { %3864 = vst [vmem:[#allocation36] sm:$0x3] %v3859_v30  ;;  %v4673_v22 = vpop.f32.mrb[3].mxu1 }
0x11b4 PF: > { %p4838_p5 = scmp.eq.s32.totalorder %s6093_s4, 1  ;;  %s5951_s9 = smov [#allocation36]  }
0x11b5   : > { %s3874_s15 = sshll.u32 %s5951_s9, 4  ;;  %s3875_s15 = int_to_ptr.vmem [resolvable:$true] %s3874_s15 }
0x11b6   : > { %s5793_s2 = scalar_lea.vmem %s3875_s15, 32  ;;  %p5800_p9 = scmp.lt.s32.totalorder %s3875_s15, %s3875_s15 }
0x11b7   : > { %p5794_p2 = scmp.ne.s32.totalorder %s3875_s15, %s5793_s2  ;;  %p5801_p3 = scmp.lt.s32.totalorder %s5793_s2, %s5793_s2 }
0x11b9   : > { %p5795_p7 = pnand %p5794_p2, %p4838_p5  ;;  %p5802_p12 = por %p5801_p3, %p5800_p9 }
0x11bb   : > { %p5796_p8 = pneg %p5795_p7 }
0x11bd   : > { %p5803_p11 = pnand %p5802_p12, %p5796_p8 }
0x11bf   : > { %5806 = shalt.err (!%p5803_p11)
}
0x11c0   : > { %s7847_s1 = sld [smem:[#allocation74_spill]] }
0x11c6   : > { %s5807_s17 = scalar_lea.hbm %s7847_s1, 32 }
0x11c7   : > { %p5808_p0 = scmp.ne.s32.totalorder %s7847_s1, %s5807_s17  ;;  %p5813_p4 = scmp.lt.u32.totalorder %s5807_s17, %s7847_s1 }
0x11c9   : > { %p5809_p1 = pnand %p5808_p0, %p4838_p5 }
0x11cb   : > { %p5810_p13 = pneg %p5809_p1 }
0x11cd   : > { %p5815_p6 = pnand %p5813_p4, %p5810_p13 }
0x11cf   : > { %5818 = shalt.err (!%p5815_p6)
}
0x11d0   : > { %4751 = dma.vmem_to_hbm [thread:$0]  (%p4838_p5), %s3875_s15, 32, %s7847_s1, [#allocation5]  }
0x11d1   : > { %5888 = dma.done.wait (%p4838_p5), [#allocation5], 32  }
0x11d2   : > { %5890 = vsyncadd (%p4838_p5), [#allocation5], 4294967264 }
0x11d3 PF: > { %s7848_s27 = sld [smem:[#allocation52_spill]]  ;;  %s7849_s2 = sld [smem:[#allocation49_spill]] }
0x11d4   : > { %s7850_s25 = sld [smem:[#allocation50_spill]]  ;;  %s7851_s26 = sld [smem:[#allocation56_spill]] }
0x11d5   : > { %s7852_s22 = sld [smem:[#allocation54_spill]] }
0x11d9   : > { %s55_s28 = sadd.s32 1, %s7848_s27   ;;  %s7853_s27 = smov %s5909_s3 }
0x11da   : > { %p52_p10 = scmp.ge.s32.totalorder %s55_s28, 4  }
0x11db   : > { %s7854_s3 = smov %s7852_s22 }
0x11dc   :  { %54 = sbr.rel (!%p52_p10) target bundleno = 39 (0x27), region = 319 }
0x11e3   :  { %3887 = vsyncpa [#allocation4], 1 }
0x11e4   :  { %3889 = vsyncpa [#allocation4 + $0x1], 1 }
0x11e5   :  { %3890 = vsyncpa [#allocation7], 1 }
0x11e6   :  { %3891 = vsyncpa [#allocation10], 1 }
0x11e7   :  { %3893 = vsyncpa [#allocation10 + $0x1], 1 }
0x11e8   :  { %3894 = vsyncpa [#allocation13], 1 }
0x11e9   :  { %3896 = vsyncpa [#allocation13 + $0x1], 1 }
0x11ea   :  { %3897 = vsyncpa [#allocation16], 1 }
0x11eb   :  { %3899 = vsyncpa [#allocation16 + $0x1], 1 }
0x11ec   :  { %3900 = vsyncpa [#allocation19], 1 }
0x11ed   :  { %3902 = vsyncpa [#allocation19 + $0x1], 1 }
0x11ee   :  { %3903 = vsyncpa [#allocation22], 1 }
0x11ef   :  { %3905 = vsyncpa [#allocation22 + $0x1], 1 }
0x11f0   :  { %3906 = vsyncpa [#allocation25], 1 }
0x11f1   :  { %3908 = vsyncpa [#allocation25 + $0x1], 1 }
0x11f2   :  { %3909 = vsyncpa [#allocation28], 1 }
0x11f3   :  { %3910 = vsyncpa [#allocation31], 1 }
0x11f4   :  { %3911 = vsyncpa [#allocation34], 1 }
0x11f5   :  { %3912 = vsyncpa [#allocation5], 1 }
0x11f6   :  { %3914 = vsyncpa [#allocation5 + $0x1], 1 }

</bundles_post_ra>
